<compile_context>
chip_gen: v7x
topology: tpu7x:2x2x1
jax: 0.10.0
libtpu: 0.0.40
codegen_flags: <defaults>
</compile_context>

<pallas_src>
import functools

import jax
import jax.numpy as jnp
from jax.experimental import pallas as pl
from jax.experimental.pallas import tpu as pltpu


def _fused_shortcut_kernel(cfgs, x_ref, *refs):
    """Fused multi-layer Conv2d(+bias)(+ReLU) chain for one batch element.

    refs = (wb_0, wb_1, ..., o_ref, pad_scratch_0, pad_scratch_1, ...)
    wb_i : (KH*KW*Ci + 1, Co) dense weight tile, bias in the last row.
    cfgs : per-layer static tuples
           (k, pad, relu, scratch_idx, Hi, Wi, Ci, Ho, Wo, Co).
    """
    n_layers = len(cfgs)
    wb_refs = refs[:n_layers]
    o_ref = refs[n_layers]
    scratch_refs = refs[n_layers + 1:]

    cur = x_ref[0]  # (Hi, Wi, Ci) value: the current layer's input
    for li, (k, pad, relu, s_idx, Hi, Wi, Ci, Ho, Wo, Co) in enumerate(cfgs):
        if pad > 0:
            # In-kernel zero padding: zero the VMEM scratch, write interior.
            # Border zeros are rewritten every grid step so the kernel stays
            # correct when the parallel grid is sharded across cores.
            pscr = scratch_refs[s_idx]
            pscr[...] = jnp.zeros_like(pscr)
            pscr[pad:pad + Hi, pad:pad + Wi, :] = cur.astype(pscr.dtype)

            def window(kh, kw, _src=pscr):
                return _src[kh:kh + Ho, kw:kw + Wo, :]
        else:
            def window(kh, kw, _src=cur):
                return _src[kh:kh + Ho, kw:kw + Wo, :]

        # One dense (k*k*Ci + 1, Co) weight+bias tile per layer, loaded once.
        wb = wb_refs[li][...]
        b_row = wb[k * k * Ci:k * k * Ci + 1, :].astype(jnp.float32)  # (1, Co)

        acc = None
        for kh in range(k):              # k is a small static int -> unrolled
            for kw in range(k):
                t = kh * k + kw
                x_mat = window(kh, kw).reshape(Ho * Wo, Ci)
                part = jnp.dot(x_mat, wb[t * Ci:(t + 1) * Ci, :],
                               preferred_element_type=jnp.float32)
                acc = part if acc is None else acc + part

        y = acc + b_row                  # (Ho*Wo, Co) + (1, Co) broadcast
        if relu:
            y = jnp.maximum(y, 0.0)

        if li == n_layers - 1:
            o_ref[...] = y.reshape(1, Ho * Wo, Co).astype(o_ref.dtype)
        else:
            cur = y.reshape(Ho, Wo, Co)  # stays in VMEM/vregs, never to HBM


def shortcut_conv2d_forward(x_nchw, params, paddings, activation_last=False,
                            compute_dtype=jnp.float32):
    """Forward of ShortcutConv2d. Input/output are NCHW (PyTorch convention).

    params[i] = (w_hwio, b) with w_hwio of shape (k, k, Cin_i, Cout).
    """
    n_layers = len(params)
    assert n_layers == len(paddings) and n_layers >= 1
    N, C0, H0, W0 = x_nchw.shape
    x_nhwc = jnp.transpose(x_nchw, (0, 2, 3, 1)).astype(compute_dtype)

    cfgs, flat_args, scratch_shapes = [], [], []
    in_specs = [pl.BlockSpec((1, H0, W0, C0), lambda n: (n, 0, 0, 0))]

    Hi, Wi, Ci = H0, W0, C0
    for i, ((w, b), pad) in enumerate(zip(params, paddings)):
        KH, KW, wci, Co = w.shape
        assert KH == KW and wci == Ci
        Ho = Hi + 2 * pad - KH + 1
        Wo = Wi + 2 * pad - KW + 1
        relu = (i < n_layers - 1) or activation_last

        if pad > 0:
            s_idx = len(scratch_shapes)
            scratch_shapes.append(
                pltpu.VMEM((Hi + 2 * pad, Wi + 2 * pad, Ci), compute_dtype))
        else:
            s_idx = -1
        cfgs.append((KH, pad, relu, s_idx, Hi, Wi, Ci, Ho, Wo, Co))

        # Pack weight (flattened taps) and bias into one VMEM tile per layer.
        w_flat = jnp.asarray(w).reshape(KH * KW * Ci, Co)
        b_row = jnp.asarray(b).reshape(1, Co)
        wb = jnp.concatenate([w_flat, b_row], axis=0).astype(compute_dtype)
        flat_args.append(wb)
        # Block shape == full array shape, so (8,128) divisibility is waived.
        in_specs.append(pl.BlockSpec((KH * KW * Ci + 1, Co),
                                     lambda n: (0, 0)))
        Hi, Wi, Ci = Ho, Wo, Co

    Hout, Wout, Cout = Hi, Wi, Ci
    kernel = functools.partial(_fused_shortcut_kernel, tuple(cfgs))

    out = pl.pallas_call(
        kernel,
        out_shape=jax.ShapeDtypeStruct((N, Hout * Wout, Cout), x_nchw.dtype),
        grid_spec=pltpu.PrefetchScalarGridSpec(
            num_scalar_prefetch=0,
            grid=(N,),
            in_specs=in_specs,
            out_specs=pl.BlockSpec((1, Hout * Wout, Cout),
                                   lambda n: (n, 0, 0)),
            scratch_shapes=scratch_shapes),
        compiler_params=pltpu.CompilerParams(
            dimension_semantics=("parallel",)),
    )(x_nhwc, *flat_args)

    out = out.reshape(N, Hout, Wout, Cout)
    return jnp.transpose(out, (0, 3, 1, 2))  # NHWC -> NCHW


def init_shortcut_conv2d_params(key, in_channels, out_channels,
                                kernel_sizes, paddings):
    """Deterministic params mimicking nn.Conv2d default (kaiming-uniform-ish)."""
    assert len(kernel_sizes) == len(paddings)
    params = []
    for i, k in enumerate(kernel_sizes):
        inc = in_channels if i == 0 else out_channels
        key, kw_key, kb_key = jax.random.split(key, 3)
        fan_in = inc * k * k
        bound = 1.0 / jnp.sqrt(fan_in)
        # stored HWIO for the kernel (PyTorch stores OIHW)
        w = jax.random.uniform(kw_key, (k, k, inc, out_channels),
                               jnp.float32, -bound, bound)
        b = jax.random.uniform(kb_key, (out_channels,),
                               jnp.float32, -bound, bound)
        params.append((w, b))
    return params


def _reference_forward(x_nchw, params, paddings, activation_last=False):
    """Pure-JAX reference (lax conv) for verification."""
    n_layers = len(params)
    y = x_nchw
    for i, ((w, b), pad) in enumerate(zip(params, paddings)):
        w_oihw = jnp.transpose(w, (3, 2, 0, 1))  # HWIO -> OIHW
        y = jax.lax.conv_general_dilated(
            y, w_oihw, window_strides=(1, 1),
            padding=[(pad, pad), (pad, pad)],
            dimension_numbers=("NCHW", "OIHW", "NCHW"))
        y = y + b.reshape(1, -1, 1, 1)
        if (i < n_layers - 1) or activation_last:
            y = jnp.maximum(y, 0.0)
    return y


if __name__ == "__main__":
    key = jax.random.PRNGKey(0)

    # ShortcutConv2d(in_channels=4, out_channels=8,
    #                kernel_sizes=[3, 3], paddings=[1, 1],
    #                activation_last=False)
    in_channels, out_channels = 4, 8
    kernel_sizes, paddings = [3, 3], [1, 1]
    activation_last = False

    key, xkey, pkey = jax.random.split(key, 3)
    x = jax.random.normal(xkey, (2, in_channels, 16, 16), jnp.float32)  # NCHW

    params = init_shortcut_conv2d_params(
        pkey, in_channels, out_channels, kernel_sizes, paddings)

    y = shortcut_conv2d_forward(x, params, paddings, activation_last)
    y = jax.block_until_ready(y)

    y_ref = _reference_forward(x, params, paddings, activation_last)
    y_ref = jax.block_until_ready(y_ref)

    assert y.shape == (2, out_channels, 16, 16), y.shape
    max_err = float(jnp.max(jnp.abs(y - y_ref)))
    assert jnp.allclose(y, y_ref, atol=1e-4, rtol=1e-4), max_err

    print("KERNEL_OK")
</pallas_src>

<mosaic_0001>
module attributes {stable_mosaic.version = 11 : i64} {
  func.func @_fused_shortcut_kernel(%arg0: i32, %arg1: memref<1x16x16x4xf32, #tpu.memory_space<vmem>>, %arg2: memref<37x8xf32, #tpu.memory_space<vmem>>, %arg3: memref<73x8xf32, #tpu.memory_space<vmem>>, %arg4: memref<1x256x8xf32, #tpu.memory_space<vmem>>, %arg5: memref<18x18x4xf32, #tpu.memory_space<vmem>>, %arg6: memref<18x18x8xf32, #tpu.memory_space<vmem>>) attributes {dimension_semantics = [#tpu.dimension_semantics<parallel>], iteration_bounds = array<i64: 2>, scalar_prefetch = 0 : i64, scratch_operands = 2 : i64, tpu.core_type = #tpu.core_type<tc>, window_params = [{transform_indices = @transform_0, window_bounds = array<i64: 1, 16, 16, 4>}, {pipeline_mode = #tpu.pipeline_mode<synchronous>, transform_indices = @transform_1, window_bounds = array<i64: 37, 8>}, {pipeline_mode = #tpu.pipeline_mode<synchronous>, transform_indices = @transform_2, window_bounds = array<i64: 73, 8>}, {transform_indices = @transform_3, window_bounds = array<i64: 1, 256, 8>}]} {
    %c0 = arith.constant 0 : index
    %c0_0 = arith.constant 0 : index
    %c0_1 = arith.constant 0 : index
    %c0_2 = arith.constant 0 : index
    %0 = vector.load %arg1[%c0, %c0_0, %c0_1, %c0_2] : memref<1x16x16x4xf32, #tpu.memory_space<vmem>>, vector<1x16x16x4xf32>
    %1 = vector.shape_cast %0 : vector<1x16x16x4xf32> to vector<16x16x4xf32>
    %cst = arith.constant 0.000000e+00 : f32
    %2 = vector.broadcast %cst : f32 to vector<18x18x4xf32>
    %c0_3 = arith.constant 0 : index
    %c0_4 = arith.constant 0 : index
    %c0_5 = arith.constant 0 : index
    %3 = vector.load %arg5[%c0_3, %c0_4, %c0_5] : memref<18x18x4xf32, #tpu.memory_space<vmem>>, vector<18x18x4xf32>
    tpu.vector_store %arg5[%c0_3, %c0_4, %c0_5], %2 {strides = array<i32>} : memref<18x18x4xf32, #tpu.memory_space<vmem>>, vector<18x18x4xf32>,
    %c1 = arith.constant 1 : index
    %c1_6 = arith.constant 1 : index
    %c0_7 = arith.constant 0 : index
    %4 = vector.load %arg5[%c1, %c1_6, %c0_7] : memref<18x18x4xf32, #tpu.memory_space<vmem>>, vector<16x16x4xf32>
    tpu.vector_store %arg5[%c1, %c1_6, %c0_7], %1 {strides = array<i32>} : memref<18x18x4xf32, #tpu.memory_space<vmem>>, vector<16x16x4xf32>,
    %c0_8 = arith.constant 0 : index
    %c0_9 = arith.constant 0 : index
    %5 = vector.load %arg2[%c0_8, %c0_9] : memref<37x8xf32, #tpu.memory_space<vmem>>, vector<37x8xf32>
    %6 = vector.extract_strided_slice %5 {offsets = [36, 0], sizes = [1, 8], strides = [1, 1]} : vector<37x8xf32> to vector<1x8xf32>
    %c0_10 = arith.constant 0 : index
    %c0_11 = arith.constant 0 : index
    %c0_12 = arith.constant 0 : index
    %7 = vector.load %arg5[%c0_10, %c0_11, %c0_12] : memref<18x18x4xf32, #tpu.memory_space<vmem>>, vector<16x16x4xf32>
    %8 = vector.shape_cast %7 : vector<16x16x4xf32> to vector<256x4xf32>
    %9 = vector.extract_strided_slice %5 {offsets = [0, 0], sizes = [4, 8], strides = [1, 1]} : vector<37x8xf32> to vector<4x8xf32>
    %cst_13 = arith.constant dense<0.000000e+00> : vector<256x8xf32>
    %10 = tpu.matmul %8, %9, %cst_13 {dimension_numbers = #tpu.dot_dimension_numbers<[1], [0], [0], [1], [0, 0, 1, 1], [], []>} : vector<256x4xf32>, vector<4x8xf32>, vector<256x8xf32> -> vector<256x8xf32>
    %c0_14 = arith.constant 0 : index
    %c1_15 = arith.constant 1 : index
    %c0_16 = arith.constant 0 : index
    %11 = vector.load %arg5[%c0_14, %c1_15, %c0_16] : memref<18x18x4xf32, #tpu.memory_space<vmem>>, vector<16x16x4xf32>
    %12 = vector.shape_cast %11 : vector<16x16x4xf32> to vector<256x4xf32>
    %13 = vector.extract_strided_slice %5 {offsets = [4, 0], sizes = [4, 8], strides = [1, 1]} : vector<37x8xf32> to vector<4x8xf32>
    %cst_17 = arith.constant dense<0.000000e+00> : vector<256x8xf32>
    %14 = tpu.matmul %12, %13, %cst_17 {dimension_numbers = #tpu.dot_dimension_numbers<[1], [0], [0], [1], [0, 0, 1, 1], [], []>} : vector<256x4xf32>, vector<4x8xf32>, vector<256x8xf32> -> vector<256x8xf32>
    %15 = arith.addf %10, %14 : vector<256x8xf32>
    %c0_18 = arith.constant 0 : index
    %c2 = arith.constant 2 : index
    %c0_19 = arith.constant 0 : index
    %16 = vector.load %arg5[%c0_18, %c2, %c0_19] : memref<18x18x4xf32, #tpu.memory_space<vmem>>, vector<16x16x4xf32>
    %17 = vector.shape_cast %16 : vector<16x16x4xf32> to vector<256x4xf32>
    %18 = vector.extract_strided_slice %5 {offsets = [8, 0], sizes = [4, 8], strides = [1, 1]} : vector<37x8xf32> to vector<4x8xf32>
    %cst_20 = arith.constant dense<0.000000e+00> : vector<256x8xf32>
    %19 = tpu.matmul %17, %18, %cst_20 {dimension_numbers = #tpu.dot_dimension_numbers<[1], [0], [0], [1], [0, 0, 1, 1], [], []>} : vector<256x4xf32>, vector<4x8xf32>, vector<256x8xf32> -> vector<256x8xf32>
    %20 = arith.addf %15, %19 : vector<256x8xf32>
    %c1_21 = arith.constant 1 : index
    %c0_22 = arith.constant 0 : index
    %c0_23 = arith.constant 0 : index
    %21 = vector.load %arg5[%c1_21, %c0_22, %c0_23] : memref<18x18x4xf32, #tpu.memory_space<vmem>>, vector<16x16x4xf32>
    %22 = vector.shape_cast %21 : vector<16x16x4xf32> to vector<256x4xf32>
    %23 = vector.extract_strided_slice %5 {offsets = [12, 0], sizes = [4, 8], strides = [1, 1]} : vector<37x8xf32> to vector<4x8xf32>
    %cst_24 = arith.constant dense<0.000000e+00> : vector<256x8xf32>
    %24 = tpu.matmul %22, %23, %cst_24 {dimension_numbers = #tpu.dot_dimension_numbers<[1], [0], [0], [1], [0, 0, 1, 1], [], []>} : vector<256x4xf32>, vector<4x8xf32>, vector<256x8xf32> -> vector<256x8xf32>
    %25 = arith.addf %20, %24 : vector<256x8xf32>
    %c1_25 = arith.constant 1 : index
    %c1_26 = arith.constant 1 : index
    %c0_27 = arith.constant 0 : index
    %26 = vector.load %arg5[%c1_25, %c1_26, %c0_27] : memref<18x18x4xf32, #tpu.memory_space<vmem>>, vector<16x16x4xf32>
    %27 = vector.shape_cast %26 : vector<16x16x4xf32> to vector<256x4xf32>
    %28 = vector.extract_strided_slice %5 {offsets = [16, 0], sizes = [4, 8], strides = [1, 1]} : vector<37x8xf32> to vector<4x8xf32>
    %cst_28 = arith.constant dense<0.000000e+00> : vector<256x8xf32>
    %29 = tpu.matmul %27, %28, %cst_28 {dimension_numbers = #tpu.dot_dimension_numbers<[1], [0], [0], [1], [0, 0, 1, 1], [], []>} : vector<256x4xf32>, vector<4x8xf32>, vector<256x8xf32> -> vector<256x8xf32>
    %30 = arith.addf %25, %29 : vector<256x8xf32>
    %c1_29 = arith.constant 1 : index
    %c2_30 = arith.constant 2 : index
    %c0_31 = arith.constant 0 : index
    %31 = vector.load %arg5[%c1_29, %c2_30, %c0_31] : memref<18x18x4xf32, #tpu.memory_space<vmem>>, vector<16x16x4xf32>
    %32 = vector.shape_cast %31 : vector<16x16x4xf32> to vector<256x4xf32>
    %33 = vector.extract_strided_slice %5 {offsets = [20, 0], sizes = [4, 8], strides = [1, 1]} : vector<37x8xf32> to vector<4x8xf32>
    %cst_32 = arith.constant dense<0.000000e+00> : vector<256x8xf32>
    %34 = tpu.matmul %32, %33, %cst_32 {dimension_numbers = #tpu.dot_dimension_numbers<[1], [0], [0], [1], [0, 0, 1, 1], [], []>} : vector<256x4xf32>, vector<4x8xf32>, vector<256x8xf32> -> vector<256x8xf32>
    %35 = arith.addf %30, %34 : vector<256x8xf32>
    %c2_33 = arith.constant 2 : index
    %c0_34 = arith.constant 0 : index
    %c0_35 = arith.constant 0 : index
    %36 = vector.load %arg5[%c2_33, %c0_34, %c0_35] : memref<18x18x4xf32, #tpu.memory_space<vmem>>, vector<16x16x4xf32>
    %37 = vector.shape_cast %36 : vector<16x16x4xf32> to vector<256x4xf32>
    %38 = vector.extract_strided_slice %5 {offsets = [24, 0], sizes = [4, 8], strides = [1, 1]} : vector<37x8xf32> to vector<4x8xf32>
    %cst_36 = arith.constant dense<0.000000e+00> : vector<256x8xf32>
    %39 = tpu.matmul %37, %38, %cst_36 {dimension_numbers = #tpu.dot_dimension_numbers<[1], [0], [0], [1], [0, 0, 1, 1], [], []>} : vector<256x4xf32>, vector<4x8xf32>, vector<256x8xf32> -> vector<256x8xf32>
    %40 = arith.addf %35, %39 : vector<256x8xf32>
    %c2_37 = arith.constant 2 : index
    %c1_38 = arith.constant 1 : index
    %c0_39 = arith.constant 0 : index
    %41 = vector.load %arg5[%c2_37, %c1_38, %c0_39] : memref<18x18x4xf32, #tpu.memory_space<vmem>>, vector<16x16x4xf32>
    %42 = vector.shape_cast %41 : vector<16x16x4xf32> to vector<256x4xf32>
    %43 = vector.extract_strided_slice %5 {offsets = [28, 0], sizes = [4, 8], strides = [1, 1]} : vector<37x8xf32> to vector<4x8xf32>
    %cst_40 = arith.constant dense<0.000000e+00> : vector<256x8xf32>
    %44 = tpu.matmul %42, %43, %cst_40 {dimension_numbers = #tpu.dot_dimension_numbers<[1], [0], [0], [1], [0, 0, 1, 1], [], []>} : vector<256x4xf32>, vector<4x8xf32>, vector<256x8xf32> -> vector<256x8xf32>
    %45 = arith.addf %40, %44 : vector<256x8xf32>
    %c2_41 = arith.constant 2 : index
    %c2_42 = arith.constant 2 : index
    %c0_43 = arith.constant 0 : index
    %46 = vector.load %arg5[%c2_41, %c2_42, %c0_43] : memref<18x18x4xf32, #tpu.memory_space<vmem>>, vector<16x16x4xf32>
    %47 = vector.shape_cast %46 : vector<16x16x4xf32> to vector<256x4xf32>
    %48 = vector.extract_strided_slice %5 {offsets = [32, 0], sizes = [4, 8], strides = [1, 1]} : vector<37x8xf32> to vector<4x8xf32>
    %cst_44 = arith.constant dense<0.000000e+00> : vector<256x8xf32>
    %49 = tpu.matmul %47, %48, %cst_44 {dimension_numbers = #tpu.dot_dimension_numbers<[1], [0], [0], [1], [0, 0, 1, 1], [], []>} : vector<256x4xf32>, vector<4x8xf32>, vector<256x8xf32> -> vector<256x8xf32>
    %50 = arith.addf %45, %49 : vector<256x8xf32>
    %51 = vector.broadcast %6 : vector<1x8xf32> to vector<256x8xf32>
    %52 = arith.addf %50, %51 : vector<256x8xf32>
    %cst_45 = arith.constant 0.000000e+00 : f32
    %53 = vector.broadcast %cst_45 : f32 to vector<256x8xf32>
    %54 = arith.maximumf %52, %53 : vector<256x8xf32>
    %55 = vector.shape_cast %54 : vector<256x8xf32> to vector<16x16x8xf32>
    %cst_46 = arith.constant 0.000000e+00 : f32
    %56 = vector.broadcast %cst_46 : f32 to vector<18x18x8xf32>
    %c0_47 = arith.constant 0 : index
    %c0_48 = arith.constant 0 : index
    %c0_49 = arith.constant 0 : index
    %57 = vector.load %arg6[%c0_47, %c0_48, %c0_49] : memref<18x18x8xf32, #tpu.memory_space<vmem>>, vector<18x18x8xf32>
    tpu.vector_store %arg6[%c0_47, %c0_48, %c0_49], %56 {strides = array<i32>} : memref<18x18x8xf32, #tpu.memory_space<vmem>>, vector<18x18x8xf32>,
    %c1_50 = arith.constant 1 : index
    %c1_51 = arith.constant 1 : index
    %c0_52 = arith.constant 0 : index
    %58 = vector.load %arg6[%c1_50, %c1_51, %c0_52] : memref<18x18x8xf32, #tpu.memory_space<vmem>>, vector<16x16x8xf32>
    tpu.vector_store %arg6[%c1_50, %c1_51, %c0_52], %55 {strides = array<i32>} : memref<18x18x8xf32, #tpu.memory_space<vmem>>, vector<16x16x8xf32>,
    %c0_53 = arith.constant 0 : index
    %c0_54 = arith.constant 0 : index
    %59 = vector.load %arg3[%c0_53, %c0_54] : memref<73x8xf32, #tpu.memory_space<vmem>>, vector<73x8xf32>
    %60 = vector.extract_strided_slice %59 {offsets = [72, 0], sizes = [1, 8], strides = [1, 1]} : vector<73x8xf32> to vector<1x8xf32>
    %c0_55 = arith.constant 0 : index
    %c0_56 = arith.constant 0 : index
    %c0_57 = arith.constant 0 : index
    %61 = vector.load %arg6[%c0_55, %c0_56, %c0_57] : memref<18x18x8xf32, #tpu.memory_space<vmem>>, vector<16x16x8xf32>
    %62 = vector.shape_cast %61 : vector<16x16x8xf32> to vector<256x8xf32>
    %63 = vector.extract_strided_slice %59 {offsets = [0, 0], sizes = [8, 8], strides = [1, 1]} : vector<73x8xf32> to vector<8x8xf32>
    %cst_58 = arith.constant dense<0.000000e+00> : vector<256x8xf32>
    %64 = tpu.matmul %62, %63, %cst_58 {dimension_numbers = #tpu.dot_dimension_numbers<[1], [0], [0], [1], [0, 0, 1, 1], [], []>} : vector<256x8xf32>, vector<8x8xf32>, vector<256x8xf32> -> vector<256x8xf32>
    %c0_59 = arith.constant 0 : index
    %c1_60 = arith.constant 1 : index
    %c0_61 = arith.constant 0 : index
    %65 = vector.load %arg6[%c0_59, %c1_60, %c0_61] : memref<18x18x8xf32, #tpu.memory_space<vmem>>, vector<16x16x8xf32>
    %66 = vector.shape_cast %65 : vector<16x16x8xf32> to vector<256x8xf32>
    %67 = vector.extract_strided_slice %59 {offsets = [8, 0], sizes = [8, 8], strides = [1, 1]} : vector<73x8xf32> to vector<8x8xf32>
    %cst_62 = arith.constant dense<0.000000e+00> : vector<256x8xf32>
    %68 = tpu.matmul %66, %67, %cst_62 {dimension_numbers = #tpu.dot_dimension_numbers<[1], [0], [0], [1], [0, 0, 1, 1], [], []>} : vector<256x8xf32>, vector<8x8xf32>, vector<256x8xf32> -> vector<256x8xf32>
    %69 = arith.addf %64, %68 : vector<256x8xf32>
    %c0_63 = arith.constant 0 : index
    %c2_64 = arith.constant 2 : index
    %c0_65 = arith.constant 0 : index
    %70 = vector.load %arg6[%c0_63, %c2_64, %c0_65] : memref<18x18x8xf32, #tpu.memory_space<vmem>>, vector<16x16x8xf32>
    %71 = vector.shape_cast %70 : vector<16x16x8xf32> to vector<256x8xf32>
    %72 = vector.extract_strided_slice %59 {offsets = [16, 0], sizes = [8, 8], strides = [1, 1]} : vector<73x8xf32> to vector<8x8xf32>
    %cst_66 = arith.constant dense<0.000000e+00> : vector<256x8xf32>
    %73 = tpu.matmul %71, %72, %cst_66 {dimension_numbers = #tpu.dot_dimension_numbers<[1], [0], [0], [1], [0, 0, 1, 1], [], []>} : vector<256x8xf32>, vector<8x8xf32>, vector<256x8xf32> -> vector<256x8xf32>
    %74 = arith.addf %69, %73 : vector<256x8xf32>
    %c1_67 = arith.constant 1 : index
    %c0_68 = arith.constant 0 : index
    %c0_69 = arith.constant 0 : index
    %75 = vector.load %arg6[%c1_67, %c0_68, %c0_69] : memref<18x18x8xf32, #tpu.memory_space<vmem>>, vector<16x16x8xf32>
    %76 = vector.shape_cast %75 : vector<16x16x8xf32> to vector<256x8xf32>
    %77 = vector.extract_strided_slice %59 {offsets = [24, 0], sizes = [8, 8], strides = [1, 1]} : vector<73x8xf32> to vector<8x8xf32>
    %cst_70 = arith.constant dense<0.000000e+00> : vector<256x8xf32>
    %78 = tpu.matmul %76, %77, %cst_70 {dimension_numbers = #tpu.dot_dimension_numbers<[1], [0], [0], [1], [0, 0, 1, 1], [], []>} : vector<256x8xf32>, vector<8x8xf32>, vector<256x8xf32> -> vector<256x8xf32>
    %79 = arith.addf %74, %78 : vector<256x8xf32>
    %c1_71 = arith.constant 1 : index
    %c1_72 = arith.constant 1 : index
    %c0_73 = arith.constant 0 : index
    %80 = vector.load %arg6[%c1_71, %c1_72, %c0_73] : memref<18x18x8xf32, #tpu.memory_space<vmem>>, vector<16x16x8xf32>
    %81 = vector.shape_cast %80 : vector<16x16x8xf32> to vector<256x8xf32>
    %82 = vector.extract_strided_slice %59 {offsets = [32, 0], sizes = [8, 8], strides = [1, 1]} : vector<73x8xf32> to vector<8x8xf32>
    %cst_74 = arith.constant dense<0.000000e+00> : vector<256x8xf32>
    %83 = tpu.matmul %81, %82, %cst_74 {dimension_numbers = #tpu.dot_dimension_numbers<[1], [0], [0], [1], [0, 0, 1, 1], [], []>} : vector<256x8xf32>, vector<8x8xf32>, vector<256x8xf32> -> vector<256x8xf32>
    %84 = arith.addf %79, %83 : vector<256x8xf32>
    %c1_75 = arith.constant 1 : index
    %c2_76 = arith.constant 2 : index
    %c0_77 = arith.constant 0 : index
    %85 = vector.load %arg6[%c1_75, %c2_76, %c0_77] : memref<18x18x8xf32, #tpu.memory_space<vmem>>, vector<16x16x8xf32>
    %86 = vector.shape_cast %85 : vector<16x16x8xf32> to vector<256x8xf32>
    %87 = vector.extract_strided_slice %59 {offsets = [40, 0], sizes = [8, 8], strides = [1, 1]} : vector<73x8xf32> to vector<8x8xf32>
    %cst_78 = arith.constant dense<0.000000e+00> : vector<256x8xf32>
    %88 = tpu.matmul %86, %87, %cst_78 {dimension_numbers = #tpu.dot_dimension_numbers<[1], [0], [0], [1], [0, 0, 1, 1], [], []>} : vector<256x8xf32>, vector<8x8xf32>, vector<256x8xf32> -> vector<256x8xf32>
    %89 = arith.addf %84, %88 : vector<256x8xf32>
    %c2_79 = arith.constant 2 : index
    %c0_80 = arith.constant 0 : index
    %c0_81 = arith.constant 0 : index
    %90 = vector.load %arg6[%c2_79, %c0_80, %c0_81] : memref<18x18x8xf32, #tpu.memory_space<vmem>>, vector<16x16x8xf32>
    %91 = vector.shape_cast %90 : vector<16x16x8xf32> to vector<256x8xf32>
    %92 = vector.extract_strided_slice %59 {offsets = [48, 0], sizes = [8, 8], strides = [1, 1]} : vector<73x8xf32> to vector<8x8xf32>
    %cst_82 = arith.constant dense<0.000000e+00> : vector<256x8xf32>
    %93 = tpu.matmul %91, %92, %cst_82 {dimension_numbers = #tpu.dot_dimension_numbers<[1], [0], [0], [1], [0, 0, 1, 1], [], []>} : vector<256x8xf32>, vector<8x8xf32>, vector<256x8xf32> -> vector<256x8xf32>
    %94 = arith.addf %89, %93 : vector<256x8xf32>
    %c2_83 = arith.constant 2 : index
    %c1_84 = arith.constant 1 : index
    %c0_85 = arith.constant 0 : index
    %95 = vector.load %arg6[%c2_83, %c1_84, %c0_85] : memref<18x18x8xf32, #tpu.memory_space<vmem>>, vector<16x16x8xf32>
    %96 = vector.shape_cast %95 : vector<16x16x8xf32> to vector<256x8xf32>
    %97 = vector.extract_strided_slice %59 {offsets = [56, 0], sizes = [8, 8], strides = [1, 1]} : vector<73x8xf32> to vector<8x8xf32>
    %cst_86 = arith.constant dense<0.000000e+00> : vector<256x8xf32>
    %98 = tpu.matmul %96, %97, %cst_86 {dimension_numbers = #tpu.dot_dimension_numbers<[1], [0], [0], [1], [0, 0, 1, 1], [], []>} : vector<256x8xf32>, vector<8x8xf32>, vector<256x8xf32> -> vector<256x8xf32>
    %99 = arith.addf %94, %98 : vector<256x8xf32>
    %c2_87 = arith.constant 2 : index
    %c2_88 = arith.constant 2 : index
    %c0_89 = arith.constant 0 : index
    %100 = vector.load %arg6[%c2_87, %c2_88, %c0_89] : memref<18x18x8xf32, #tpu.memory_space<vmem>>, vector<16x16x8xf32>
    %101 = vector.shape_cast %100 : vector<16x16x8xf32> to vector<256x8xf32>
    %102 = vector.extract_strided_slice %59 {offsets = [64, 0], sizes = [8, 8], strides = [1, 1]} : vector<73x8xf32> to vector<8x8xf32>
    %cst_90 = arith.constant dense<0.000000e+00> : vector<256x8xf32>
    %103 = tpu.matmul %101, %102, %cst_90 {dimension_numbers = #tpu.dot_dimension_numbers<[1], [0], [0], [1], [0, 0, 1, 1], [], []>} : vector<256x8xf32>, vector<8x8xf32>, vector<256x8xf32> -> vector<256x8xf32>
    %104 = arith.addf %99, %103 : vector<256x8xf32>
    %105 = vector.broadcast %60 : vector<1x8xf32> to vector<256x8xf32>
    %106 = arith.addf %104, %105 : vector<256x8xf32>
    %107 = vector.shape_cast %106 : vector<256x8xf32> to vector<1x256x8xf32>
    %c0_91 = arith.constant 0 : index
    %c0_92 = arith.constant 0 : index
    %c0_93 = arith.constant 0 : index
    %108 = vector.load %arg4[%c0_91, %c0_92, %c0_93] : memref<1x256x8xf32, #tpu.memory_space<vmem>>, vector<1x256x8xf32>
    tpu.vector_store %arg4[%c0_91, %c0_92, %c0_93], %107 {strides = array<i32>} : memref<1x256x8xf32, #tpu.memory_space<vmem>>, vector<1x256x8xf32>,
    return
  }
  func.func @transform_0(%arg0: i32) -> (i32, i32, i32, i32) {
    %c0_i32 = arith.constant 0 : i32
    %c0_i32_0 = arith.constant 0 : i32
    %c0_i32_1 = arith.constant 0 : i32
    %c0_i32_2 = arith.constant 0 : i32
    return %arg0, %c0_i32, %c0_i32_0, %c0_i32_1 : i32, i32, i32, i32
  }
  func.func @transform_1(%arg0: i32) -> (i32, i32) {
    %c0_i32 = arith.constant 0 : i32
    %c0_i32_0 = arith.constant 0 : i32
    %c0_i32_1 = arith.constant 0 : i32
    return %c0_i32, %c0_i32_0 : i32, i32
  }
  func.func @transform_2(%arg0: i32) -> (i32, i32) {
    %c0_i32 = arith.constant 0 : i32
    %c0_i32_0 = arith.constant 0 : i32
    %c0_i32_1 = arith.constant 0 : i32
    return %c0_i32, %c0_i32_0 : i32, i32
  }
  func.func @transform_3(%arg0: i32) -> (i32, i32, i32) {
    %c0_i32 = arith.constant 0 : i32
    %c0_i32_0 = arith.constant 0 : i32
    %c0_i32_1 = arith.constant 0 : i32
    return %arg0, %c0_i32, %c0_i32_0 : i32, i32, i32
  }
}

</mosaic_0001>

<bundles_post_ra>
// kernel: tpu_custom_call.1
= control target key start
LH: loop header
LB: loop body
LE: loop exit
PB: predicated region body
PF: predicated region fallthrough
CT: control target
= control target key end

     0   :  { %s10062_s12 = smov 0   ;;  %s12144_s0 = inlined_call_operand.vmem [shape: f32[2,16,16,4], index: 0, kind: input, shape index: {}]   ;;  %s12145_s1 = inlined_call_operand.vmem [shape: f32[37,8], index: 1, kind: input, shape index: {}]   ;;  %s12146_s2 = inlined_call_operand.vmem [shape: f32[73,8], index: 2, kind: input, shape index: {}]   ;;  %s12147_s3 = inlined_call_operand.vmem [shape: f32[2,256,8], index: 3, kind: output, shape index: {}]  }
   0x1 LB: > { %s7419_s13 = sadd.s32 4294967295, %s10039_s12   ;;  %p7423_p0 = scmp.ge.s32.totalorder %s10039_s12, 1  ;;  %s10039_s12 = sphi %s10062_s12, %s13_s12  }
   0x2   : > { %p137_p1 = scmp.lt.s32.totalorder %s10039_s12, 3 }
   0x4   : > { %p138_p2 = pnand %p7423_p0, %p137_p1 }
   0x6   : > { %141 = sbr.rel (%p138_p2) target bundleno = 1568 (0x620), region = 32 }
   0xd   : > { %v10073_v0 = vld [vmem:[%s12145_s1] sm:$0xff]  ;;  %vm459_vm0 = vcmask 1043456   ;;  %vm203_vm1 = vcmask 31744   ;;  %vm206_vm2 = vcmask 25600   ;;  %p10077_p3 = scmp.lt.s32.totalorder %s7419_s13, 1  ;;  %v12148_v2 = vmov 0.0  }
   0xe   : > { %v362_v1 = vrot.slane %v10073_v0, 4  ;;  %204 = vst.msk [vmem:[#allocation2] sm:$0xff] %vm203_vm1, %v12148_v2  ;;  %205 = vst.msk [vmem:[#allocation2 + $0x8] sm:$0xff] %vm203_vm1, %v12148_v2  ;;  %v10220_v9 = vld [vmem:[%s12145_s1 + $0x8] sm:$0xff]  ;;  %vm3795_vm3 = vcmask 64512   ;;  %vm3798_vm4 = vcmask 58368  }
   0xf   : > { %208 = vst.msk [vmem:[#allocation2 + $0x18] sm:$0xff] %vm203_vm1, %v12148_v2  ;;  %209 = vst.msk [vmem:[#allocation2 + $0x20] sm:$0xff] %vm203_vm1, %v12148_v2  ;;  %s12423_s13 = smov (!%p10077_p3, %s7419_s13), 1 }
  0x10   : > { %211 = vst.msk [vmem:[#allocation2 + $0x30] sm:$0xff] %vm203_vm1, %v12148_v2  ;;  %212 = vst.msk [vmem:[#allocation2 + $0x38] sm:$0xff] %vm203_vm1, %v12148_v2  ;;  %8612 = vmatprep.subr.msk.mxu0 %vm459_vm0, %v362_v1  ;;  %s8016_s17 = sshll.u32 %s12423_s13, 8 }
  0x11   : > { %214 = vst.msk [vmem:[#allocation2 + $0x48] sm:$0xff] %vm203_vm1, %v12148_v2  ;;  %215 = vst.msk [vmem:[#allocation2 + $0x50] sm:$0xff] %vm203_vm1, %v12148_v2  ;;  %8613 = vmatpush3.msk.msra.mxu0 %vm459_vm0, %v362_v1  ;;  %s10206_s20 = scalar_lea.vmem %s12144_s0, %s8016_s17  ;;  %s12043_s27 = scalar_lea.vmem %s12147_s3, %s8016_s17 }
  0x12   : > { %217 = vst.msk [vmem:[#allocation2 + $0x60] sm:$0xff] %vm203_vm1, %v12148_v2  ;;  %218 = vst.msk [vmem:[#allocation2 + $0x68] sm:$0xff] %vm203_vm1, %v12148_v2  ;;  %8662 = vmatprep.subr.msk.mxu0 %vm459_vm0, %v10073_v0  ;;  %v171_v3 = vld [vmem:[%s10206_s20] sm:$0xff]  ;;  %v172_v4 = vld [vmem:[%s10206_s20 + $0x8] sm:$0xff] }
  0x13   : > { %220 = vst.msk [vmem:[#allocation2 + $0x78] sm:$0xff] %vm203_vm1, %v12148_v2  ;;  %221 = vst.msk [vmem:[#allocation2 + $0x80] sm:$0xff] %vm203_vm1, %v12148_v2  ;;  %v173_v5 = vld [vmem:[%s10206_s20 + $0x10] sm:$0xff]  ;;  %v174_v6 = vld [vmem:[%s10206_s20 + $0x18] sm:$0xff] }
  0x14   : > { %223 = vst.msk [vmem:[#allocation2 + $0x90] sm:$0xff] %vm203_vm1, %v12148_v2  ;;  %224 = vst.msk [vmem:[#allocation2 + $0x98] sm:$0xff] %vm203_vm1, %v12148_v2  ;;  %v175_v7 = vld [vmem:[%s10206_s20 + $0x20] sm:$0xff]  ;;  %v176_v8 = vld [vmem:[%s10206_s20 + $0x28] sm:$0xff] }
  0x15   : > { %226 = vst.msk [vmem:[#allocation2 + $0xa8] sm:$0xff] %vm203_vm1, %v12148_v2  ;;  %227 = vst.msk [vmem:[#allocation2 + $0xb0] sm:$0xff] %vm203_vm1, %v12148_v2  ;;  %v329_v10 = vld [vmem:[#allocation2 + $0x1] sm:$0xff]  ;;  %v177_v12 = vld [vmem:[%s10206_s20 + $0x30] sm:$0xff] }
  0x16   : > { %229 = vst.msk [vmem:[#allocation2 + $0xc0] sm:$0xff] %vm203_vm1, %v12148_v2  ;;  %230 = vst.msk [vmem:[#allocation2 + $0xc8] sm:$0xff] %vm203_vm1, %v12148_v2  ;;  %8614 = vmatprep.mubr.msk.f32.mxu0 %vm203_vm1, %v329_v10  ;;  %v178_v13 = vld [vmem:[%s10206_s20 + $0x38] sm:$0xff]  ;;  %v179_v14 = vld [vmem:[%s10206_s20 + $0x40] sm:$0xff] }
  0x17   : > { %232 = vst.msk [vmem:[#allocation2 + $0xd8] sm:$0xff] %vm203_vm1, %v12148_v2  ;;  %233 = vst.msk [vmem:[#allocation2 + $0xe0] sm:$0xff] %vm203_vm1, %v12148_v2  ;;  %v180_v15 = vld [vmem:[%s10206_s20 + $0x48] sm:$0xff]  ;;  %v181_v16 = vld [vmem:[%s10206_s20 + $0x50] sm:$0xff] }
  0x18   : > { %235 = vst.msk [vmem:[#allocation2 + $0xf0] sm:$0xff] %vm203_vm1, %v12148_v2  ;;  %236 = vst.msk [vmem:[#allocation2 + $0xf8] sm:$0xff] %vm203_vm1, %v12148_v2  ;;  %v182_v17 = vld [vmem:[%s10206_s20 + $0x58] sm:$0xff]  ;;  %v183_v18 = vld [vmem:[%s10206_s20 + $0x60] sm:$0xff] }
  0x19   : > { %238 = vst.msk [vmem:[#allocation2 + $0x108] sm:$0xff] %vm203_vm1, %v12148_v2  ;;  %239 = vst.msk [vmem:[#allocation2 + $0x110] sm:$0xff] %vm203_vm1, %v12148_v2  ;;  %v184_v19 = vld [vmem:[%s10206_s20 + $0x68] sm:$0xff]  ;;  %v185_v20 = vld [vmem:[%s10206_s20 + $0x70] sm:$0xff] }
  0x1a   : > { %241 = vst.msk [vmem:[#allocation2 + $0x120] sm:$0xff] %vm203_vm1, %v12148_v2  ;;  %242 = vst.msk [vmem:[#allocation2 + $0x128] sm:$0xff] %vm203_vm1, %v12148_v2  ;;  %v186_v21 = vld [vmem:[%s10206_s20 + $0x78] sm:$0xff]  ;;  %v187_v22 = vld [vmem:[%s10206_s20 + $0x80] sm:$0xff] }
  0x1b   : > { %244 = vst.msk [vmem:[#allocation2 + $0x138] sm:$0xff] %vm203_vm1, %v12148_v2  ;;  %245 = vst.msk [vmem:[#allocation2 + $0x140] sm:$0xff] %vm203_vm1, %v12148_v2  ;;  %v188_v23 = vld [vmem:[%s10206_s20 + $0x88] sm:$0xff]  ;;  %v189_v24 = vld [vmem:[%s10206_s20 + $0x90] sm:$0xff] }
  0x1c   : > { %247 = vst.msk [vmem:[#allocation2 + $0x150] sm:$0xff] %vm203_vm1, %v12148_v2  ;;  %248 = vst.msk [vmem:[#allocation2 + $0x158] sm:$0xff] %vm203_vm1, %v12148_v2  ;;  %v190_v25 = vld [vmem:[%s10206_s20 + $0x98] sm:$0xff]  ;;  %v191_v26 = vld [vmem:[%s10206_s20 + $0xa0] sm:$0xff] }
  0x1d   : > { %250 = vst.msk [vmem:[#allocation2 + $0x168] sm:$0xff] %vm203_vm1, %v12148_v2  ;;  %251 = vst.msk [vmem:[#allocation2 + $0x170] sm:$0xff] %vm203_vm1, %v12148_v2  ;;  %v192_v27 = vld [vmem:[%s10206_s20 + $0xa8] sm:$0xff]  ;;  %v193_v31 = vld [vmem:[%s10206_s20 + $0xb0] sm:$0xff] }
  0x1e   : > { %253 = vst.msk [vmem:[#allocation2 + $0x180] sm:$0xff] %vm203_vm1, %v12148_v2  ;;  %254 = vst.msk [vmem:[#allocation2 + $0x188] sm:$0xff] %vm203_vm1, %v12148_v2  ;;  %v194_v32 = vld [vmem:[%s10206_s20 + $0xb8] sm:$0xff]  ;;  %v195_v37 = vld [vmem:[%s10206_s20 + $0xc0] sm:$0xff] }
  0x1f   : > { %256 = vst.msk [vmem:[#allocation2 + $0x198] sm:$0xff] %vm203_vm1, %v12148_v2  ;;  %257 = vst.msk [vmem:[#allocation2 + $0x1a0] sm:$0xff] %vm203_vm1, %v12148_v2  ;;  %v196_v38 = vld [vmem:[%s10206_s20 + $0xc8] sm:$0xff]  ;;  %v197_v39 = vld [vmem:[%s10206_s20 + $0xd0] sm:$0xff] }
  0x20   : > { %207 = vst.msk [vmem:[#allocation2 + $0x10] sm:$0x3] %vm206_vm2, %v12148_v2  ;;  %210 = vst.msk [vmem:[#allocation2 + $0x28] sm:$0x3] %vm206_vm2, %v12148_v2  ;;  %v198_v40 = vld [vmem:[%s10206_s20 + $0xd8] sm:$0xff]  ;;  %v199_v41 = vld [vmem:[%s10206_s20 + $0xe0] sm:$0xff] }
  0x21   : > { %213 = vst.msk [vmem:[#allocation2 + $0x40] sm:$0x3] %vm206_vm2, %v12148_v2  ;;  %216 = vst.msk [vmem:[#allocation2 + $0x58] sm:$0x3] %vm206_vm2, %v12148_v2  ;;  %v200_v42 = vld [vmem:[%s10206_s20 + $0xe8] sm:$0xff] }
  0x22   : > { %219 = vst.msk [vmem:[#allocation2 + $0x70] sm:$0x3] %vm206_vm2, %v12148_v2  ;;  %222 = vst.msk [vmem:[#allocation2 + $0x88] sm:$0x3] %vm206_vm2, %v12148_v2 }
  0x23   : > { %225 = vst.msk [vmem:[#allocation2 + $0xa0] sm:$0x3] %vm206_vm2, %v12148_v2  ;;  %228 = vst.msk [vmem:[#allocation2 + $0xb8] sm:$0x3] %vm206_vm2, %v12148_v2 }
  0x24   : > { %231 = vst.msk [vmem:[#allocation2 + $0xd0] sm:$0x3] %vm206_vm2, %v12148_v2  ;;  %234 = vst.msk [vmem:[#allocation2 + $0xe8] sm:$0x3] %vm206_vm2, %v12148_v2 }
  0x25   : > { %237 = vst.msk [vmem:[#allocation2 + $0x100] sm:$0x3] %vm206_vm2, %v12148_v2  ;;  %240 = vst.msk [vmem:[#allocation2 + $0x118] sm:$0x3] %vm206_vm2, %v12148_v2 }
  0x26   : > { %243 = vst.msk [vmem:[#allocation2 + $0x130] sm:$0x3] %vm206_vm2, %v12148_v2  ;;  %246 = vst.msk [vmem:[#allocation2 + $0x148] sm:$0x3] %vm206_vm2, %v12148_v2 }
  0x27   : > { %249 = vst.msk [vmem:[#allocation2 + $0x160] sm:$0x3] %vm206_vm2, %v12148_v2  ;;  %252 = vst.msk [vmem:[#allocation2 + $0x178] sm:$0x3] %vm206_vm2, %v12148_v2  ;;  %v330_v11 = vld [vmem:[#allocation2 + $0x9] sm:$0xff] }
  0x28   : > { %255 = vst.msk [vmem:[#allocation2 + $0x190] sm:$0x3] %vm206_vm2, %v12148_v2  ;;  %258 = vst.msk [vmem:[#allocation2 + $0x1a8] sm:$0x3] %vm206_vm2, %v12148_v2  ;;  %8615 = vmatmul.mubr.msk.f32.vlgmr.msra.gmra.mrb[0].mxu0 %vm203_vm1, %v330_v11  ;;  %v1010_v2 = vld [vmem:[#allocation2 + $0x2] sm:$0xff] }
  0x29   : > { %260 = vst.msk [vmem:[#allocation2 + $0x19] sm:$0xff] %vm203_vm1, %v171_v3  ;;  %261 = vst.msk [vmem:[#allocation2 + $0x21] sm:$0xff] %vm203_vm1, %v172_v4  ;;  %8663 = vmatpush3.msk.msra.mxu0 %vm459_vm0, %v10073_v0  ;;  %v297_v3 = vld [vmem:[#allocation2] sm:$0xff]  ;;  %v298_v4 = vld [vmem:[#allocation2 + $0x8] sm:$0xff] }
  0x2a   : > { %262 = vst.msk [vmem:[#allocation2 + $0x31] sm:$0xff] %vm203_vm1, %v173_v5  ;;  %263 = vst.msk [vmem:[#allocation2 + $0x39] sm:$0xff] %vm203_vm1, %v174_v6  ;;  %8712 = vmatprep.subr.msk.mxu0 %vm459_vm0, %v10220_v9  ;;  %v12150_v5 = vrot.slane %v10220_v9, 4 }
  0x2b   : > { %264 = vst.msk [vmem:[#allocation2 + $0x49] sm:$0xff] %vm203_vm1, %v175_v7  ;;  %265 = vst.msk [vmem:[#allocation2 + $0x51] sm:$0xff] %vm203_vm1, %v176_v8 }
  0x2c   : > { %266 = vst.msk [vmem:[#allocation2 + $0x61] sm:$0xff] %vm203_vm1, %v177_v12  ;;  %267 = vst.msk [vmem:[#allocation2 + $0x69] sm:$0xff] %vm203_vm1, %v178_v13 }
  0x2d   : > { %268 = vst.msk [vmem:[#allocation2 + $0x79] sm:$0xff] %vm203_vm1, %v179_v14  ;;  %269 = vst.msk [vmem:[#allocation2 + $0x81] sm:$0xff] %vm203_vm1, %v180_v15 }
  0x2e   : > { %270 = vst.msk [vmem:[#allocation2 + $0x91] sm:$0xff] %vm203_vm1, %v181_v16  ;;  %271 = vst.msk [vmem:[#allocation2 + $0x99] sm:$0xff] %vm203_vm1, %v182_v17 }
  0x2f   : > { %272 = vst.msk [vmem:[#allocation2 + $0xa9] sm:$0xff] %vm203_vm1, %v183_v18  ;;  %273 = vst.msk [vmem:[#allocation2 + $0xb1] sm:$0xff] %vm203_vm1, %v184_v19 }
  0x30   : > { %274 = vst.msk [vmem:[#allocation2 + $0xc1] sm:$0xff] %vm203_vm1, %v185_v20  ;;  %275 = vst.msk [vmem:[#allocation2 + $0xc9] sm:$0xff] %vm203_vm1, %v186_v21  ;;  %v10260_v28 = vld [vmem:[#allocation2 + $0x19] sm:$0xff]  ;;  %v10262_v29 = vld [vmem:[#allocation2 + $0x21] sm:$0xff] }
  0x31   : > { %276 = vst.msk [vmem:[#allocation2 + $0xd9] sm:$0xff] %vm203_vm1, %v187_v22  ;;  %277 = vst.msk [vmem:[#allocation2 + $0xe1] sm:$0xff] %vm203_vm1, %v188_v23  ;;  %v10264_v30 = vld [vmem:[#allocation2 + $0x31] sm:$0xff]  ;;  %8617 = vmatprep.mubr.msk.f32.mxu0 %vm203_vm1, %v10260_v28  ;;  %v10277_v33 = vld [vmem:[#allocation2 + $0x39] sm:$0xff] }
  0x32   : > { %278 = vst.msk [vmem:[#allocation2 + $0xf1] sm:$0xff] %vm203_vm1, %v189_v24  ;;  %279 = vst.msk [vmem:[#allocation2 + $0xf9] sm:$0xff] %vm203_vm1, %v190_v25  ;;  %8618 = vmatmul.mubr.msk.f32.gmra.mrb[2].mxu0 %vm203_vm1, %v10262_v29  ;;  %v10281_v34 = vld [vmem:[#allocation2 + $0x49] sm:$0xff]  ;;  %v10287_v35 = vld [vmem:[#allocation2 + $0x51] sm:$0xff] }
  0x33   : > { %280 = vst.msk [vmem:[#allocation2 + $0x109] sm:$0xff] %vm203_vm1, %v191_v26  ;;  %281 = vst.msk [vmem:[#allocation2 + $0x111] sm:$0xff] %vm203_vm1, %v192_v27  ;;  %8620 = vmatprep.mubr.msk.f32.mxu0 %vm203_vm1, %v10264_v30  ;;  %v10289_v36 = vld [vmem:[#allocation2 + $0x61] sm:$0xff]  ;;  %v10307_v43 = vld [vmem:[#allocation2 + $0x69] sm:$0xff] }
  0x34   : > { %282 = vst.msk [vmem:[#allocation2 + $0x121] sm:$0xff] %vm203_vm1, %v193_v31  ;;  %283 = vst.msk [vmem:[#allocation2 + $0x129] sm:$0xff] %vm203_vm1, %v194_v32  ;;  %v10309_v44 = vld [vmem:[#allocation2 + $0x79] sm:$0xff]  ;;  %v10315_v45 = vld [vmem:[#allocation2 + $0x81] sm:$0xff] }
  0x35   : > { %284 = vst.msk [vmem:[#allocation2 + $0x139] sm:$0xff] %vm203_vm1, %v195_v37  ;;  %285 = vst.msk [vmem:[#allocation2 + $0x141] sm:$0xff] %vm203_vm1, %v196_v38  ;;  %v10317_v46 = vld [vmem:[#allocation2 + $0x91] sm:$0xff]  ;;  %v10323_v47 = vld [vmem:[#allocation2 + $0x99] sm:$0xff] }
  0x36   : > { %8621 = vmatmul.mubr.msk.f32.gmra.mrb[4].mxu0 %vm203_vm1, %v10277_v33  ;;  %286 = vst.msk [vmem:[#allocation2 + $0x151] sm:$0xff] %vm203_vm1, %v197_v39  ;;  %287 = vst.msk [vmem:[#allocation2 + $0x159] sm:$0xff] %vm203_vm1, %v198_v40  ;;  %v10325_v48 = vld [vmem:[#allocation2 + $0xa9] sm:$0xff]  ;;  %v10331_v49 = vld [vmem:[#allocation2 + $0xb1] sm:$0xff] }
  0x37   : > { %8623 = vmatprep.mubr.msk.f32.mxu0 %vm203_vm1, %v10281_v34  ;;  %288 = vst.msk [vmem:[#allocation2 + $0x169] sm:$0xff] %vm203_vm1, %v199_v41  ;;  %289 = vst.msk [vmem:[#allocation2 + $0x171] sm:$0xff] %vm203_vm1, %v200_v42  ;;  %v10333_v50 = vld [vmem:[#allocation2 + $0xc1] sm:$0xff]  ;;  %v10339_v51 = vld [vmem:[#allocation2 + $0xc9] sm:$0xff] }
  0x38   : > { %v10341_v52 = vld [vmem:[#allocation2 + $0xd9] sm:$0xff]  ;;  %v10347_v53 = vld [vmem:[#allocation2 + $0xe1] sm:$0xff]  ;;  %v10410_v8 = vld [vmem:[#allocation2 + $0x30] sm:$0xff] }
  0x39   : > { %v10349_v54 = vld [vmem:[#allocation2 + $0xf1] sm:$0xff]  ;;  %v10355_v55 = vld [vmem:[#allocation2 + $0xf9] sm:$0xff]  ;;  %v10421_v11 = vld [vmem:[#allocation2 + $0x48] sm:$0xff] }
  0x3a   : > { %8624 = vmatmul.mubr.msk.f32.gmra.mrb[6].mxu0 %vm203_vm1, %v10287_v35  ;;  %v10357_v56 = vld [vmem:[#allocation2 + $0x109] sm:$0xff]  ;;  %v10363_v57 = vld [vmem:[#allocation2 + $0x111] sm:$0xff]  ;;  %v10408_v7 = vld [vmem:[#allocation2 + $0x20] sm:$0xff] }
  0x3b   : > { %8626 = vmatprep.mubr.msk.f32.mxu0 %vm203_vm1, %v10289_v36  ;;  %v10365_v58 = vld [vmem:[#allocation2 + $0x121] sm:$0xff]  ;;  %v10371_v59 = vld [vmem:[#allocation2 + $0x129] sm:$0xff]  ;;  %v10401_v6 = vld [vmem:[#allocation2 + $0x18] sm:$0xff] }
  0x3c   : > { %v10373_v60 = vld [vmem:[#allocation2 + $0x139] sm:$0xff]  ;;  %v10379_v61 = vld [vmem:[#allocation2 + $0x141] sm:$0xff]  ;;  %v10427_v12 = vld [vmem:[#allocation2 + $0x50] sm:$0xff] }
  0x3d   : > { %v10381_v62 = vld [vmem:[#allocation2 + $0x151] sm:$0xff]  ;;  %v10387_v63 = vld [vmem:[#allocation2 + $0x159] sm:$0xff]  ;;  %v10435_v14 = vld [vmem:[#allocation2 + $0x68] sm:$0xff] }
  0x3e   : > { %8627 = vmatmul.mubr.msk.f32.gmra.mrb[8].mxu0 %vm203_vm1, %v10307_v43  ;;  %12264 = vst [vmem:[#allocation4_spill] sm:$0xff] %v10387_v63  ;;  %v10389_v0 = vld [vmem:[#allocation2 + $0x169] sm:$0xff]  ;;  %v10395_v1 = vld [vmem:[#allocation2 + $0x171] sm:$0xff]  ;;  %v10429_v13 = vld [vmem:[#allocation2 + $0x60] sm:$0xff] }
  0x3f   : > { %8629 = vmatprep.mubr.msk.f32.mxu0 %vm203_vm1, %v10309_v44  ;;  %12265 = vst [vmem:[#allocation5_spill] sm:$0xff] %v10389_v0  ;;  %12266 = vst [vmem:[#allocation6_spill] sm:$0xff] %v10395_v1  ;;  %v10419_v10 = vld [vmem:[#allocation2 + $0x38] sm:$0xff]  ;;  %v10443_v16 = vld [vmem:[#allocation2 + $0x80] sm:$0xff] }
  0x40   : > { %v10437_v15 = vld [vmem:[#allocation2 + $0x78] sm:$0xff]  ;;  %v10445_v17 = vld [vmem:[#allocation2 + $0x90] sm:$0xff]  ;;  %v10453_v19 = vld [vmem:[#allocation2 + $0xa8] sm:$0xff] }
  0x41   : > { %v10451_v18 = vld [vmem:[#allocation2 + $0x98] sm:$0xff]  ;;  %v10459_v20 = vld [vmem:[#allocation2 + $0xb0] sm:$0xff]  ;;  %v10461_v21 = vld [vmem:[#allocation2 + $0xc0] sm:$0xff] }
  0x42   : > { %8630 = vmatmul.mubr.msk.f32.gmra.mrb[10].mxu0 %vm203_vm1, %v10315_v45  ;;  %v10467_v22 = vld [vmem:[#allocation2 + $0xc8] sm:$0xff]  ;;  %v10469_v23 = vld [vmem:[#allocation2 + $0xd8] sm:$0xff]  ;;  %v10475_v24 = vld [vmem:[#allocation2 + $0xe0] sm:$0xff] }
  0x43   : > { %8632 = vmatprep.mubr.msk.f32.mxu0 %vm203_vm1, %v10317_v46  ;;  %v10477_v25 = vld [vmem:[#allocation2 + $0xf0] sm:$0xff]  ;;  %v10483_v26 = vld [vmem:[#allocation2 + $0xf8] sm:$0xff]  ;;  %v10485_v27 = vld [vmem:[#allocation2 + $0x108] sm:$0xff] }
  0x44   : > { %v10491_v31 = vld [vmem:[#allocation2 + $0x110] sm:$0xff]  ;;  %v10493_v32 = vld [vmem:[#allocation2 + $0x120] sm:$0xff]  ;;  %v10499_v37 = vld [vmem:[#allocation2 + $0x128] sm:$0xff] }
  0x45   : > { %v10501_v38 = vld [vmem:[#allocation2 + $0x138] sm:$0xff]  ;;  %v10507_v39 = vld [vmem:[#allocation2 + $0x140] sm:$0xff]  ;;  %v10509_v40 = vld [vmem:[#allocation2 + $0x150] sm:$0xff] }
  0x46   : > { %8633 = vmatmul.mubr.msk.f32.gmra.mrb[12].mxu0 %vm203_vm1, %v10323_v47  ;;  %v201_v41 = vld [vmem:[%s10206_s20 + $0xf0] sm:$0xff]  ;;  %v202_v42 = vld [vmem:[%s10206_s20 + $0xf8] sm:$0xff] }
  0x47   : > { %8635 = vmatprep.mubr.msk.f32.mxu0 %vm203_vm1, %v10325_v48  ;;  %290 = vst.msk [vmem:[#allocation2 + $0x181] sm:$0xff] %vm203_vm1, %v201_v41  ;;  %291 = vst.msk [vmem:[#allocation2 + $0x189] sm:$0xff] %vm203_vm1, %v202_v42  ;;  %v10527_v41 = vld [vmem:[#allocation2 + $0x170] sm:$0xff] }
  0x48   : > { %v1011_v42 = vld [vmem:[#allocation2 + $0xa] sm:$0xff] }
  0x4a   : > { %8636 = vmatmul.mubr.msk.f32.gmra.mrb[14].mxu0 %vm203_vm1, %v10331_v49 }
  0x4b   : > { %8638 = vmatprep.mubr.msk.f32.mxu0 %vm203_vm1, %v10333_v50 }
  0x4e   : > { %8639 = vmatmul.mubr.msk.f32.gmra.mrb[16].mxu0 %vm203_vm1, %v10339_v51 }
  0x4f   : > { %8641 = vmatprep.mubr.msk.f32.mxu0 %vm203_vm1, %v10341_v52 }
  0x52   : > { %8642 = vmatmul.mubr.msk.f32.gmra.mrb[18].mxu0 %vm203_vm1, %v10347_v53 }
  0x53   : > { %8644 = vmatprep.mubr.msk.f32.mxu0 %vm203_vm1, %v10349_v54 }
  0x56   : > { %8645 = vmatmul.mubr.msk.f32.gmra.mrb[20].mxu0 %vm203_vm1, %v10355_v55 }
  0x57   : > { %8647 = vmatprep.mubr.msk.f32.mxu0 %vm203_vm1, %v10357_v56 }
  0x5a   : > { %8648 = vmatmul.mubr.msk.f32.gmra.mrb[22].mxu0 %vm203_vm1, %v10363_v57 }
  0x5b   : > { %8650 = vmatprep.mubr.msk.f32.mxu0 %vm203_vm1, %v10365_v58 }
  0x5e   : > { %8651 = vmatmul.mubr.msk.f32.gmra.mrb[24].mxu0 %vm203_vm1, %v10371_v59 }
  0x5f   : > { %8653 = vmatprep.mubr.msk.f32.mxu0 %vm203_vm1, %v10373_v60 }
  0x62   : > { %8654 = vmatmul.mubr.msk.f32.gmra.mrb[26].mxu0 %vm203_vm1, %v10379_v61 }
  0x63   : > { %8656 = vmatprep.mubr.msk.f32.mxu0 %vm203_vm1, %v10381_v62 }
  0x66   : > { %8657 = vmatmul.mubr.msk.f32.gmra.mrb[28].mxu0 %vm203_vm1, %v10387_v63  ;;  %v10545_v63 = vld [vmem:[#allocation2 + $0x22] sm:$0xff] }
  0x67   : > { %8659 = vmatprep.mubr.msk.f32.mxu0 %vm203_vm1, %v10389_v0  ;;  %v12268_v0 = vrot.slane %v10220_v9, 4  ;;  %12269 = vst [vmem:[#allocation8_spill] sm:$0xff] %v10545_v63 }
  0x6a   : > { %8660 = vmatmul.mubr.msk.f32.gmra.mrb[30].mxu0 %vm203_vm1, %v10395_v1  ;;  %v10537_v1 = vld [vmem:[%s12145_s1 + $0x10] sm:$0xff] }
  0x6b   : > { %8664 = vmatprep.mubr.msk.f32.mxu0 %vm203_vm1, %v297_v3  ;;  %v10519_v3 = vld [vmem:[#allocation2 + $0x158] sm:$0xff] }
  0x6e   : > { %8665 = vmatmul.mubr.msk.f32.vlgmr.msra.gmra.mrb[0].mxu0 %vm203_vm1, %v298_v4  ;;  %v10521_v4 = vld [vmem:[#allocation2 + $0x168] sm:$0xff] }
  0x6f   : > { %8713 = vmatpush3.msk.msra.mxu0 %vm459_vm0, %v10220_v9  ;;  %8667 = vmatprep.mubr.msk.f32.mxu0 %vm203_vm1, %v10401_v6  ;;  %v10557_v9 = vld [vmem:[#allocation2 + $0x4a] sm:$0xff] }
  0x70   : > { %8762 = vmatprep.subr.msk.mxu0 %vm459_vm0, %v12150_v5  ;;  %v10532_v5 = vld [vmem:[#allocation2 + $0x1a] sm:$0xff]  ;;  %12272 = vst [vmem:[#allocation11_spill] sm:$0xff] %v10557_v9 }
  0x71   : > { %12267 = vst [vmem:[#allocation7_spill] sm:$0xff] %v10532_v5 }
  0x72   : > { %8668 = vmatmul.mubr.msk.f32.gmra.mrb[2].mxu0 %vm203_vm1, %v10408_v7 }
  0x73   : > { %8670 = vmatprep.mubr.msk.f32.mxu0 %vm203_vm1, %v10410_v8 }
  0x76   : > { %8671 = vmatmul.mubr.msk.f32.gmra.mrb[4].mxu0 %vm203_vm1, %v10419_v10 }
  0x77   : > { %8673 = vmatprep.mubr.msk.f32.mxu0 %vm203_vm1, %v10421_v11 }
  0x7a   : > { %8674 = vmatmul.mubr.msk.f32.gmra.mrb[6].mxu0 %vm203_vm1, %v10427_v12 }
  0x7b   : > { %8676 = vmatprep.mubr.msk.f32.mxu0 %vm203_vm1, %v10429_v13 }
  0x7e   : > { %8677 = vmatmul.mubr.msk.f32.gmra.mrb[8].mxu0 %vm203_vm1, %v10435_v14 }
  0x7f   : > { %8679 = vmatprep.mubr.msk.f32.mxu0 %vm203_vm1, %v10437_v15 }
  0x82   : > { %8680 = vmatmul.mubr.msk.f32.gmra.mrb[10].mxu0 %vm203_vm1, %v10443_v16 }
  0x83   : > { %8682 = vmatprep.mubr.msk.f32.mxu0 %vm203_vm1, %v10445_v17 }
  0x86   : > { %8683 = vmatmul.mubr.msk.f32.gmra.mrb[12].mxu0 %vm203_vm1, %v10451_v18 }
  0x87   : > { %8685 = vmatprep.mubr.msk.f32.mxu0 %vm203_vm1, %v10453_v19 }
  0x8a   : > { %8686 = vmatmul.mubr.msk.f32.gmra.mrb[14].mxu0 %vm203_vm1, %v10459_v20 }
  0x8b   : > { %8688 = vmatprep.mubr.msk.f32.mxu0 %vm203_vm1, %v10461_v21 }
  0x8e   : > { %8689 = vmatmul.mubr.msk.f32.gmra.mrb[16].mxu0 %vm203_vm1, %v10467_v22 }
  0x8f   : > { %8691 = vmatprep.mubr.msk.f32.mxu0 %vm203_vm1, %v10469_v23 }
  0x92   : > { %8692 = vmatmul.mubr.msk.f32.gmra.mrb[18].mxu0 %vm203_vm1, %v10475_v24 }
  0x93   : > { %8694 = vmatprep.mubr.msk.f32.mxu0 %vm203_vm1, %v10477_v25 }
  0x96   : > { %8695 = vmatmul.mubr.msk.f32.gmra.mrb[20].mxu0 %vm203_vm1, %v10483_v26 }
  0x97   : > { %8697 = vmatprep.mubr.msk.f32.mxu0 %vm203_vm1, %v10485_v27 }
  0x9a   : > { %8698 = vmatmul.mubr.msk.f32.gmra.mrb[22].mxu0 %vm203_vm1, %v10491_v31 }
  0x9b   : > { %8700 = vmatprep.mubr.msk.f32.mxu0 %vm203_vm1, %v10493_v32 }
  0x9e   : > { %8701 = vmatmul.mubr.msk.f32.gmra.mrb[24].mxu0 %vm203_vm1, %v10499_v37 }
  0x9f   : > { %8703 = vmatprep.mubr.msk.f32.mxu0 %vm203_vm1, %v10501_v38 }
  0xa2   : > { %8704 = vmatmul.mubr.msk.f32.gmra.mrb[26].mxu0 %vm203_vm1, %v10507_v39 }
  0xa3   : > { %8706 = vmatprep.mubr.msk.f32.mxu0 %vm203_vm1, %v10509_v40 }
  0xa6   : > { %8707 = vmatmul.mubr.msk.f32.gmra.mrb[28].mxu0 %vm203_vm1, %v10519_v3 }
  0xa7   : > { %8709 = vmatprep.mubr.msk.f32.mxu0 %vm203_vm1, %v10521_v4 }
  0xaa   : > { %8710 = vmatmul.mubr.msk.f32.gmra.mrb[30].mxu0 %vm203_vm1, %v10527_v41 }
  0xab   : > { %8714 = vmatprep.mubr.msk.f32.mxu0 %vm203_vm1, %v1010_v2  ;;  %v10547_v2 = vld [vmem:[#allocation2 + $0x32] sm:$0xff] }
  0xac   : > { %12270 = vst [vmem:[#allocation9_spill] sm:$0xff] %v10547_v2 }
  0xae   : > { %8715 = vmatmul.mubr.msk.f32.vlgmr.msra.gmra.mrb[0].mxu0 %vm203_vm1, %v1011_v42  ;;  %v10555_v42 = vld [vmem:[#allocation2 + $0x3a] sm:$0xff] }
  0xaf   : > { %8763 = vmatpush3.msk.msra.mxu0 %vm459_vm0, %v12268_v0  ;;  %8717 = vmatprep.mubr.msk.f32.mxu0 %vm203_vm1, %v10532_v5  ;;  %12271 = vst [vmem:[#allocation10_spill] sm:$0xff] %v10555_v42  ;;  %v10563_v0 = vld [vmem:[#allocation2 + $0x52] sm:$0xff]  ;;  %v10565_v5 = vld [vmem:[#allocation2 + $0x62] sm:$0xff] }
  0xb0   : > { %8812 = vmatprep.subr.msk.mxu0 %vm459_vm0, %v10537_v1  ;;  %12273 = vst [vmem:[#allocation12_spill] sm:$0xff] %v10563_v0  ;;  %12274 = vst [vmem:[#allocation13_spill] sm:$0xff] %v10565_v5 }
  0xb2   : > { %8718 = vmatmul.mubr.msk.f32.gmra.mrb[2].mxu0 %vm203_vm1, %v10545_v63  ;;  %v10573_v63 = vld [vmem:[#allocation2 + $0x7a] sm:$0xff] }
  0xb3   : > { %8720 = vmatprep.mubr.msk.f32.mxu0 %vm203_vm1, %v10547_v2  ;;  %v10571_v2 = vld [vmem:[#allocation2 + $0x6a] sm:$0xff]  ;;  %12276 = vst [vmem:[#allocation15_spill] sm:$0xff] %v10573_v63 }
  0xb4   : > { %12275 = vst [vmem:[#allocation14_spill] sm:$0xff] %v10571_v2 }
  0xb6   : > { %8721 = vmatmul.mubr.msk.f32.gmra.mrb[4].mxu0 %vm203_vm1, %v10555_v42  ;;  %v10581_v42 = vld [vmem:[#allocation2 + $0x92] sm:$0xff] }
  0xb7   : > { %8723 = vmatprep.mubr.msk.f32.mxu0 %vm203_vm1, %v10557_v9  ;;  %v10579_v9 = vld [vmem:[#allocation2 + $0x82] sm:$0xff]  ;;  %12278 = vst [vmem:[#allocation17_spill] sm:$0xff] %v10581_v42 }
  0xb8   : > { %12277 = vst [vmem:[#allocation16_spill] sm:$0xff] %v10579_v9 }
  0xba   : > { %8724 = vmatmul.mubr.msk.f32.gmra.mrb[6].mxu0 %vm203_vm1, %v10563_v0  ;;  %v10589_v0 = vld [vmem:[#allocation2 + $0xaa] sm:$0xff] }
  0xbb   : > { %8726 = vmatprep.mubr.msk.f32.mxu0 %vm203_vm1, %v10565_v5  ;;  %v10587_v5 = vld [vmem:[#allocation2 + $0x9a] sm:$0xff]  ;;  %12280 = vst [vmem:[#allocation19_spill] sm:$0xff] %v10589_v0 }
  0xbc   : > { %12279 = vst [vmem:[#allocation18_spill] sm:$0xff] %v10587_v5 }
  0xbe   : > { %8727 = vmatmul.mubr.msk.f32.gmra.mrb[8].mxu0 %vm203_vm1, %v10571_v2  ;;  %v10597_v2 = vld [vmem:[#allocation2 + $0xc2] sm:$0xff] }
  0xbf   : > { %8729 = vmatprep.mubr.msk.f32.mxu0 %vm203_vm1, %v10573_v63  ;;  %v10595_v63 = vld [vmem:[#allocation2 + $0xb2] sm:$0xff]  ;;  %12282 = vst [vmem:[#allocation21_spill] sm:$0xff] %v10597_v2 }
  0xc0   : > { %12281 = vst [vmem:[#allocation20_spill] sm:$0xff] %v10595_v63 }
  0xc2   : > { %8730 = vmatmul.mubr.msk.f32.gmra.mrb[10].mxu0 %vm203_vm1, %v10579_v9  ;;  %v10605_v9 = vld [vmem:[#allocation2 + $0xda] sm:$0xff] }
  0xc3   : > { %8732 = vmatprep.mubr.msk.f32.mxu0 %vm203_vm1, %v10581_v42  ;;  %v10603_v42 = vld [vmem:[#allocation2 + $0xca] sm:$0xff]  ;;  %12284 = vst [vmem:[#allocation23_spill] sm:$0xff] %v10605_v9 }
  0xc4   : > { %12283 = vst [vmem:[#allocation22_spill] sm:$0xff] %v10603_v42 }
  0xc6   : > { %8733 = vmatmul.mubr.msk.f32.gmra.mrb[12].mxu0 %vm203_vm1, %v10587_v5  ;;  %v10613_v5 = vld [vmem:[#allocation2 + $0xf2] sm:$0xff] }
  0xc7   : > { %8735 = vmatprep.mubr.msk.f32.mxu0 %vm203_vm1, %v10589_v0  ;;  %v10611_v0 = vld [vmem:[#allocation2 + $0xe2] sm:$0xff]  ;;  %12286 = vst [vmem:[#allocation25_spill] sm:$0xff] %v10613_v5 }
  0xc8   : > { %12285 = vst [vmem:[#allocation24_spill] sm:$0xff] %v10611_v0 }
  0xca   : > { %8736 = vmatmul.mubr.msk.f32.gmra.mrb[14].mxu0 %vm203_vm1, %v10595_v63  ;;  %v10621_v63 = vld [vmem:[#allocation2 + $0x10a] sm:$0xff] }
  0xcb   : > { %8738 = vmatprep.mubr.msk.f32.mxu0 %vm203_vm1, %v10597_v2  ;;  %v10619_v2 = vld [vmem:[#allocation2 + $0xfa] sm:$0xff]  ;;  %12288 = vst [vmem:[#allocation27_spill] sm:$0xff] %v10621_v63 }
  0xcc   : > { %12287 = vst [vmem:[#allocation26_spill] sm:$0xff] %v10619_v2 }
  0xce   : > { %8739 = vmatmul.mubr.msk.f32.gmra.mrb[16].mxu0 %vm203_vm1, %v10603_v42  ;;  %v10629_v42 = vld [vmem:[#allocation2 + $0x122] sm:$0xff] }
  0xcf   : > { %8741 = vmatprep.mubr.msk.f32.mxu0 %vm203_vm1, %v10605_v9  ;;  %v10627_v9 = vld [vmem:[#allocation2 + $0x112] sm:$0xff]  ;;  %12290 = vst [vmem:[#allocation29_spill] sm:$0xff] %v10629_v42 }
  0xd0   : > { %12289 = vst [vmem:[#allocation28_spill] sm:$0xff] %v10627_v9 }
  0xd2   : > { %8742 = vmatmul.mubr.msk.f32.gmra.mrb[18].mxu0 %vm203_vm1, %v10611_v0  ;;  %v10637_v0 = vld [vmem:[#allocation2 + $0x13a] sm:$0xff] }
  0xd3   : > { %8744 = vmatprep.mubr.msk.f32.mxu0 %vm203_vm1, %v10613_v5  ;;  %v10635_v5 = vld [vmem:[#allocation2 + $0x12a] sm:$0xff]  ;;  %12291 = vst [vmem:[#allocation30_spill] sm:$0xff] %v10637_v0 }
  0xd6   : > { %8745 = vmatmul.mubr.msk.f32.gmra.mrb[20].mxu0 %vm203_vm1, %v10619_v2  ;;  %v10645_v2 = vld [vmem:[#allocation2 + $0x152] sm:$0xff] }
  0xd7   : > { %8747 = vmatprep.mubr.msk.f32.mxu0 %vm203_vm1, %v10621_v63  ;;  %v10643_v63 = vld [vmem:[#allocation2 + $0x142] sm:$0xff]  ;;  %12292 = vst [vmem:[#allocation31_spill] sm:$0xff] %v10645_v2 }
  0xda   : > { %8748 = vmatmul.mubr.msk.f32.gmra.mrb[22].mxu0 %vm203_vm1, %v10627_v9  ;;  %v10653_v9 = vld [vmem:[#allocation2 + $0x16a] sm:$0xff] }
  0xdb   : > { %8750 = vmatprep.mubr.msk.f32.mxu0 %vm203_vm1, %v10629_v42  ;;  %v10651_v42 = vld [vmem:[#allocation2 + $0x15a] sm:$0xff]  ;;  %12293 = vst [vmem:[#allocation32_spill] sm:$0xff] %v10653_v9 }
  0xde   : > { %8751 = vmatmul.mubr.msk.f32.gmra.mrb[24].mxu0 %vm203_vm1, %v10635_v5 }
  0xdf   : > { %8753 = vmatprep.mubr.msk.f32.mxu0 %vm203_vm1, %v10637_v0  ;;  %v10659_v0 = vld [vmem:[#allocation2 + $0x172] sm:$0xff] }
  0xe2   : > { %8754 = vmatmul.mubr.msk.f32.gmra.mrb[26].mxu0 %vm203_vm1, %v10643_v63 }
  0xe3   : > { %8756 = vmatprep.mubr.msk.f32.mxu0 %vm203_vm1, %v10645_v2  ;;  %v2206_v2 = vrot.slane %v10537_v1, 4 }
  0xe6   : > { %8757 = vmatmul.mubr.msk.f32.gmra.mrb[28].mxu0 %vm203_vm1, %v10651_v42 }
  0xe7   : > { %8759 = vmatprep.mubr.msk.f32.mxu0 %vm203_vm1, %v10653_v9 }
  0xea   : > { %8760 = vmatmul.mubr.msk.f32.gmra.mrb[30].mxu0 %vm203_vm1, %v10659_v0 }
  0xeb   : > { %8764 = vmatprep.mubr.msk.f32.mxu0 %vm203_vm1, %v10401_v6  ;;  %v10731_v6 = vld [vmem:[#allocation2 + $0x188] sm:$0xff] }
  0xee   : > { %8765 = vmatmul.mubr.msk.f32.vlgmr.msra.gmra.mrb[0].mxu0 %vm203_vm1, %v10408_v7  ;;  %v10740_v7 = vld [vmem:[%s12145_s1 + $0x18] sm:$0xff] }
  0xef   : > { %8813 = vmatpush3.msk.msra.mxu0 %vm459_vm0, %v10537_v1  ;;  %8767 = vmatprep.mubr.msk.f32.mxu0 %vm203_vm1, %v10410_v8  ;;  %v10725_v1 = vld [vmem:[#allocation2 + $0x180] sm:$0xff] }
  0xf0   : > { %8862 = vmatprep.subr.msk.mxu0 %vm459_vm0, %v2206_v2 }
  0xf2   : > { %8768 = vmatmul.mubr.msk.f32.gmra.mrb[2].mxu0 %vm203_vm1, %v10419_v10 }
  0xf3   : > { %8770 = vmatprep.mubr.msk.f32.mxu0 %vm203_vm1, %v10421_v11 }
  0xf6   : > { %8771 = vmatmul.mubr.msk.f32.gmra.mrb[4].mxu0 %vm203_vm1, %v10427_v12 }
  0xf7   : > { %8773 = vmatprep.mubr.msk.f32.mxu0 %vm203_vm1, %v10429_v13 }
  0xfa   : > { %8774 = vmatmul.mubr.msk.f32.gmra.mrb[6].mxu0 %vm203_vm1, %v10435_v14 }
  0xfb   : > { %8776 = vmatprep.mubr.msk.f32.mxu0 %vm203_vm1, %v10437_v15 }
  0xfe   : > { %8777 = vmatmul.mubr.msk.f32.gmra.mrb[8].mxu0 %vm203_vm1, %v10443_v16 }
  0xff   : > { %8779 = vmatprep.mubr.msk.f32.mxu0 %vm203_vm1, %v10445_v17 }
 0x102   : > { %8780 = vmatmul.mubr.msk.f32.gmra.mrb[10].mxu0 %vm203_vm1, %v10451_v18 }
 0x103   : > { %8782 = vmatprep.mubr.msk.f32.mxu0 %vm203_vm1, %v10453_v19 }
 0x106   : > { %8783 = vmatmul.mubr.msk.f32.gmra.mrb[12].mxu0 %vm203_vm1, %v10459_v20 }
 0x107   : > { %8785 = vmatprep.mubr.msk.f32.mxu0 %vm203_vm1, %v10461_v21 }
 0x10a   : > { %8786 = vmatmul.mubr.msk.f32.gmra.mrb[14].mxu0 %vm203_vm1, %v10467_v22 }
 0x10b   : > { %8788 = vmatprep.mubr.msk.f32.mxu0 %vm203_vm1, %v10469_v23 }
 0x10e   : > { %8789 = vmatmul.mubr.msk.f32.gmra.mrb[16].mxu0 %vm203_vm1, %v10475_v24 }
 0x10f   : > { %8791 = vmatprep.mubr.msk.f32.mxu0 %vm203_vm1, %v10477_v25 }
 0x112   : > { %8792 = vmatmul.mubr.msk.f32.gmra.mrb[18].mxu0 %vm203_vm1, %v10483_v26 }
 0x113   : > { %8794 = vmatprep.mubr.msk.f32.mxu0 %vm203_vm1, %v10485_v27 }
 0x116   : > { %8795 = vmatmul.mubr.msk.f32.gmra.mrb[20].mxu0 %vm203_vm1, %v10491_v31 }
 0x117   : > { %8797 = vmatprep.mubr.msk.f32.mxu0 %vm203_vm1, %v10493_v32 }
 0x11a   : > { %8798 = vmatmul.mubr.msk.f32.gmra.mrb[22].mxu0 %vm203_vm1, %v10499_v37 }
 0x11b   : > { %8800 = vmatprep.mubr.msk.f32.mxu0 %vm203_vm1, %v10501_v38 }
 0x11e   : > { %8801 = vmatmul.mubr.msk.f32.gmra.mrb[24].mxu0 %vm203_vm1, %v10507_v39 }
 0x11f   : > { %8803 = vmatprep.mubr.msk.f32.mxu0 %vm203_vm1, %v10509_v40 }
 0x122   : > { %8804 = vmatmul.mubr.msk.f32.gmra.mrb[26].mxu0 %vm203_vm1, %v10519_v3 }
 0x123   : > { %8806 = vmatprep.mubr.msk.f32.mxu0 %vm203_vm1, %v10521_v4 }
 0x126   : > { %8807 = vmatmul.mubr.msk.f32.gmra.mrb[28].mxu0 %vm203_vm1, %v10527_v41 }
 0x127   : > { %8809 = vmatprep.mubr.msk.f32.mxu0 %vm203_vm1, %v10725_v1 }
 0x12a   : > { %8810 = vmatmul.mubr.msk.f32.gmra.mrb[30].mxu0 %vm203_vm1, %v10731_v6 }
 0x12b   : > { %8814 = vmatprep.mubr.msk.f32.mxu0 %vm203_vm1, %v10260_v28  ;;  %v12294_v28 = vld [vmem:[#allocation4_spill] sm:$0xff] }
 0x12e   : > { %8815 = vmatmul.mubr.msk.f32.vlgmr.msra.gmra.mrb[0].mxu0 %vm203_vm1, %v10262_v29  ;;  %v12295_v29 = vld [vmem:[#allocation5_spill] sm:$0xff] }
 0x12f   : > { %8863 = vmatpush3.msk.msra.mxu0 %vm459_vm0, %v2206_v2  ;;  %8817 = vmatprep.mubr.msk.f32.mxu0 %vm203_vm1, %v10264_v30  ;;  %v10801_v30 = vld [vmem:[#allocation2 + $0x181] sm:$0xff] }
 0x130   : > { %8912 = vmatprep.subr.msk.mxu0 %vm459_vm0, %v10740_v7  ;;  %12296 = vst [vmem:[#allocation4_spill] sm:$0xff] %v10801_v30  ;;  %v12301_v2 = vld [vmem:[#allocation9_spill] sm:$0xff] }
 0x132   : > { %8818 = vmatmul.mubr.msk.f32.gmra.mrb[2].mxu0 %vm203_vm1, %v10277_v33  ;;  %v12297_v33 = vld [vmem:[#allocation6_spill] sm:$0xff] }
 0x133   : > { %8820 = vmatprep.mubr.msk.f32.mxu0 %vm203_vm1, %v10281_v34  ;;  %v10807_v34 = vld [vmem:[#allocation2 + $0x189] sm:$0xff] }
 0x134   : > { %12298 = vst [vmem:[#allocation33_spill] sm:$0xff] %v10807_v34 }
 0x136   : > { %8821 = vmatmul.mubr.msk.f32.gmra.mrb[4].mxu0 %vm203_vm1, %v10287_v35  ;;  %v12299_v35 = vld [vmem:[#allocation7_spill] sm:$0xff] }
 0x137   : > { %8823 = vmatprep.mubr.msk.f32.mxu0 %vm203_vm1, %v10289_v36  ;;  %v2983_v36 = vrot.slane %v10740_v7, 4 }
 0x13a   : > { %8824 = vmatmul.mubr.msk.f32.gmra.mrb[6].mxu0 %vm203_vm1, %v10307_v43  ;;  %v12300_v43 = vld [vmem:[#allocation8_spill] sm:$0xff] }
 0x13b   : > { %8826 = vmatprep.mubr.msk.f32.mxu0 %vm203_vm1, %v10309_v44 }
 0x13e   : > { %8827 = vmatmul.mubr.msk.f32.gmra.mrb[8].mxu0 %vm203_vm1, %v10315_v45 }
 0x13f   : > { %8829 = vmatprep.mubr.msk.f32.mxu0 %vm203_vm1, %v10317_v46 }
 0x142   : > { %8830 = vmatmul.mubr.msk.f32.gmra.mrb[10].mxu0 %vm203_vm1, %v10323_v47 }
 0x143   : > { %8832 = vmatprep.mubr.msk.f32.mxu0 %vm203_vm1, %v10325_v48 }
 0x146   : > { %8833 = vmatmul.mubr.msk.f32.gmra.mrb[12].mxu0 %vm203_vm1, %v10331_v49 }
 0x147   : > { %8835 = vmatprep.mubr.msk.f32.mxu0 %vm203_vm1, %v10333_v50 }
 0x14a   : > { %8836 = vmatmul.mubr.msk.f32.gmra.mrb[14].mxu0 %vm203_vm1, %v10339_v51 }
 0x14b   : > { %8838 = vmatprep.mubr.msk.f32.mxu0 %vm203_vm1, %v10341_v52 }
 0x14e   : > { %8839 = vmatmul.mubr.msk.f32.gmra.mrb[16].mxu0 %vm203_vm1, %v10347_v53 }
 0x14f   : > { %8841 = vmatprep.mubr.msk.f32.mxu0 %vm203_vm1, %v10349_v54 }
 0x152   : > { %8842 = vmatmul.mubr.msk.f32.gmra.mrb[18].mxu0 %vm203_vm1, %v10355_v55 }
 0x153   : > { %8844 = vmatprep.mubr.msk.f32.mxu0 %vm203_vm1, %v10357_v56 }
 0x156   : > { %8845 = vmatmul.mubr.msk.f32.gmra.mrb[20].mxu0 %vm203_vm1, %v10363_v57 }
 0x157   : > { %8847 = vmatprep.mubr.msk.f32.mxu0 %vm203_vm1, %v10365_v58 }
 0x15a   : > { %8848 = vmatmul.mubr.msk.f32.gmra.mrb[22].mxu0 %vm203_vm1, %v10371_v59 }
 0x15b   : > { %8850 = vmatprep.mubr.msk.f32.mxu0 %vm203_vm1, %v10373_v60 }
 0x15e   : > { %8851 = vmatmul.mubr.msk.f32.gmra.mrb[24].mxu0 %vm203_vm1, %v10379_v61 }
 0x15f   : > { %8853 = vmatprep.mubr.msk.f32.mxu0 %vm203_vm1, %v10381_v62 }
 0x162   : > { %8854 = vmatmul.mubr.msk.f32.gmra.mrb[26].mxu0 %vm203_vm1, %v12294_v28 }
 0x163   : > { %8856 = vmatprep.mubr.msk.f32.mxu0 %vm203_vm1, %v12295_v29  ;;  %v12309_v29 = vld [vmem:[#allocation17_spill] sm:$0xff] }
 0x166   : > { %8857 = vmatmul.mubr.msk.f32.gmra.mrb[28].mxu0 %vm203_vm1, %v12297_v33  ;;  %v12305_v33 = vld [vmem:[#allocation13_spill] sm:$0xff] }
 0x167   : > { %8859 = vmatprep.mubr.msk.f32.mxu0 %vm203_vm1, %v10801_v30  ;;  %v12302_v30 = vld [vmem:[#allocation10_spill] sm:$0xff] }
 0x16a   : > { %8860 = vmatmul.mubr.msk.f32.gmra.mrb[30].mxu0 %vm203_vm1, %v10807_v34  ;;  %v12303_v34 = vld [vmem:[#allocation11_spill] sm:$0xff] }
 0x16b   : > { %8864 = vmatprep.mubr.msk.f32.mxu0 %vm203_vm1, %v12299_v35  ;;  %v12304_v35 = vld [vmem:[#allocation12_spill] sm:$0xff] }
 0x16e   : > { %8865 = vmatmul.mubr.msk.f32.vlgmr.msra.gmra.mrb[0].mxu0 %vm203_vm1, %v12300_v43  ;;  %v12306_v43 = vld [vmem:[#allocation14_spill] sm:$0xff] }
 0x16f   : > { %8913 = vmatpush3.msk.msra.mxu0 %vm459_vm0, %v10740_v7  ;;  %8867 = vmatprep.mubr.msk.f32.mxu0 %vm203_vm1, %v12301_v2  ;;  %v12307_v7 = vld [vmem:[#allocation15_spill] sm:$0xff]  ;;  %v12308_v2 = vld [vmem:[#allocation16_spill] sm:$0xff] }
 0x170   : > { %8962 = vmatprep.subr.msk.mxu0 %vm459_vm0, %v2983_v36 }
 0x172   : > { %8868 = vmatmul.mubr.msk.f32.gmra.mrb[2].mxu0 %vm203_vm1, %v12302_v30  ;;  %v12310_v30 = vld [vmem:[#allocation18_spill] sm:$0xff] }
 0x173   : > { %8870 = vmatprep.mubr.msk.f32.mxu0 %vm203_vm1, %v12303_v34  ;;  %v12311_v34 = vld [vmem:[#allocation19_spill] sm:$0xff] }
 0x176   : > { %8871 = vmatmul.mubr.msk.f32.gmra.mrb[4].mxu0 %vm203_vm1, %v12304_v35  ;;  %v12312_v35 = vld [vmem:[#allocation20_spill] sm:$0xff] }
 0x177   : > { %8873 = vmatprep.mubr.msk.f32.mxu0 %vm203_vm1, %v12305_v33  ;;  %v12313_v33 = vld [vmem:[#allocation21_spill] sm:$0xff] }
 0x17a   : > { %8874 = vmatmul.mubr.msk.f32.gmra.mrb[6].mxu0 %vm203_vm1, %v12306_v43  ;;  %v12314_v43 = vld [vmem:[#allocation22_spill] sm:$0xff] }
 0x17b   : > { %8876 = vmatprep.mubr.msk.f32.mxu0 %vm203_vm1, %v12307_v7  ;;  %v12315_v7 = vld [vmem:[#allocation23_spill] sm:$0xff] }
 0x17e   : > { %8877 = vmatmul.mubr.msk.f32.gmra.mrb[8].mxu0 %vm203_vm1, %v12308_v2  ;;  %v12316_v2 = vld [vmem:[#allocation24_spill] sm:$0xff] }
 0x17f   : > { %8879 = vmatprep.mubr.msk.f32.mxu0 %vm203_vm1, %v12309_v29  ;;  %v12317_v29 = vld [vmem:[#allocation25_spill] sm:$0xff] }
 0x182   : > { %8880 = vmatmul.mubr.msk.f32.gmra.mrb[10].mxu0 %vm203_vm1, %v12310_v30  ;;  %v12318_v30 = vld [vmem:[#allocation26_spill] sm:$0xff] }
 0x183   : > { %8882 = vmatprep.mubr.msk.f32.mxu0 %vm203_vm1, %v12311_v34  ;;  %v12319_v34 = vld [vmem:[#allocation27_spill] sm:$0xff] }
 0x186   : > { %8883 = vmatmul.mubr.msk.f32.gmra.mrb[12].mxu0 %vm203_vm1, %v12312_v35  ;;  %v12320_v35 = vld [vmem:[#allocation28_spill] sm:$0xff] }
 0x187   : > { %8885 = vmatprep.mubr.msk.f32.mxu0 %vm203_vm1, %v12313_v33  ;;  %v12321_v33 = vld [vmem:[#allocation29_spill] sm:$0xff] }
 0x18a   : > { %8886 = vmatmul.mubr.msk.f32.gmra.mrb[14].mxu0 %vm203_vm1, %v12314_v43 }
 0x18b   : > { %8888 = vmatprep.mubr.msk.f32.mxu0 %vm203_vm1, %v12315_v7  ;;  %v12322_v7 = vld [vmem:[#allocation30_spill] sm:$0xff] }
 0x18e   : > { %8889 = vmatmul.mubr.msk.f32.gmra.mrb[16].mxu0 %vm203_vm1, %v12316_v2 }
 0x18f   : > { %8891 = vmatprep.mubr.msk.f32.mxu0 %vm203_vm1, %v12317_v29  ;;  %v12323_v29 = vld [vmem:[#allocation31_spill] sm:$0xff] }
 0x192   : > { %8892 = vmatmul.mubr.msk.f32.gmra.mrb[18].mxu0 %vm203_vm1, %v12318_v30 }
 0x193   : > { %8894 = vmatprep.mubr.msk.f32.mxu0 %vm203_vm1, %v12319_v34 }
 0x196   : > { %8895 = vmatmul.mubr.msk.f32.gmra.mrb[20].mxu0 %vm203_vm1, %v12320_v35  ;;  %v10873_v35 = vld [vmem:[#allocation2 + $0x182] sm:$0xff] }
 0x197   : > { %8897 = vmatprep.mubr.msk.f32.mxu0 %vm203_vm1, %v12321_v33 }
 0x19a   : > { %8898 = vmatmul.mubr.msk.f32.gmra.mrb[22].mxu0 %vm203_vm1, %v10635_v5 }
 0x19b   : > { %8900 = vmatprep.mubr.msk.f32.mxu0 %vm203_vm1, %v12322_v7  ;;  %v10879_v7 = vld [vmem:[#allocation2 + $0x18a] sm:$0xff] }
 0x19e   : > { %8901 = vmatmul.mubr.msk.f32.gmra.mrb[24].mxu0 %vm203_vm1, %v10643_v63 }
 0x19f   : > { %8903 = vmatprep.mubr.msk.f32.mxu0 %vm203_vm1, %v12323_v29 }
 0x1a2   : > { %8904 = vmatmul.mubr.msk.f32.gmra.mrb[26].mxu0 %vm203_vm1, %v10651_v42 }
 0x1a3   : > { %8906 = vmatprep.mubr.msk.f32.mxu0 %vm203_vm1, %v10653_v9  ;;  %v10888_v9 = vld [vmem:[%s12145_s1 + $0x20] sm:$0x1f] }
 0x1a6   : > { %8907 = vmatmul.mubr.msk.f32.gmra.mrb[28].mxu0 %vm203_vm1, %v10659_v0 }
 0x1a7   : > { %8909 = vmatprep.mubr.msk.f32.mxu0 %vm203_vm1, %v10873_v35 }
 0x1aa   : > { %8910 = vmatmul.mubr.msk.f32.gmra.mrb[30].mxu0 %vm203_vm1, %v10879_v7 }
 0x1ab   : > { %8914 = vmatprep.mubr.msk.f32.mxu0 %vm203_vm1, %v10410_v8  ;;  %v2593_v8 = vld [vmem:[#allocation2 + $0x198] sm:$0xff] }
 0x1ae   : > { %8915 = vmatmul.mubr.msk.f32.vlgmr.msra.gmra.mrb[0].mxu0 %vm203_vm1, %v10419_v10  ;;  %v2594_v10 = vld [vmem:[#allocation2 + $0x1a0] sm:$0xff] }
 0x1af   : > { %8963 = vmatpush3.msk.msra.mxu0 %vm459_vm0, %v2983_v36  ;;  %8917 = vmatprep.mubr.msk.f32.mxu0 %vm203_vm1, %v10421_v11  ;;  %v2951_v11 = vld [vmem:[#allocation2 + $0x31] sm:$0xff] }
 0x1b0   : > { %9012 = vmatprep.subr.msk.mxu0 %vm459_vm0, %v10888_v9 }
 0x1b2   : > { %8918 = vmatmul.mubr.msk.f32.gmra.mrb[2].mxu0 %vm203_vm1, %v10427_v12  ;;  %v2952_v12 = vld [vmem:[#allocation2 + $0x39] sm:$0xff] }
 0x1b3   : > { %8920 = vmatprep.mubr.msk.f32.mxu0 %vm203_vm1, %v10429_v13  ;;  %v2953_v13 = vld [vmem:[#allocation2 + $0x49] sm:$0xff] }
 0x1b6   : > { %8921 = vmatmul.mubr.msk.f32.gmra.mrb[4].mxu0 %vm203_vm1, %v10435_v14  ;;  %v2954_v14 = vld [vmem:[#allocation2 + $0x51] sm:$0xff] }
 0x1b7   : > { %8923 = vmatprep.mubr.msk.f32.mxu0 %vm203_vm1, %v10437_v15  ;;  %v2955_v15 = vld [vmem:[#allocation2 + $0x61] sm:$0xff] }
 0x1ba   : > { %8924 = vmatmul.mubr.msk.f32.gmra.mrb[6].mxu0 %vm203_vm1, %v10443_v16  ;;  %v2956_v16 = vld [vmem:[#allocation2 + $0x69] sm:$0xff] }
 0x1bb   : > { %8926 = vmatprep.mubr.msk.f32.mxu0 %vm203_vm1, %v10445_v17  ;;  %v12341_v17 = vld [vmem:[#allocation23_spill] sm:$0xff] }
 0x1be   : > { %8927 = vmatmul.mubr.msk.f32.gmra.mrb[8].mxu0 %vm203_vm1, %v10451_v18  ;;  %v12342_v18 = vld [vmem:[#allocation25_spill] sm:$0xff] }
 0x1bf   : > { %8929 = vmatprep.mubr.msk.f32.mxu0 %vm203_vm1, %v10453_v19  ;;  %v12343_v19 = vld [vmem:[#allocation28_spill] sm:$0xff] }
 0x1c2   : > { %8930 = vmatmul.mubr.msk.f32.gmra.mrb[10].mxu0 %vm203_vm1, %v10459_v20  ;;  %v12344_v20 = vld [vmem:[#allocation30_spill] sm:$0xff] }
 0x1c3   : > { %8932 = vmatprep.mubr.msk.f32.mxu0 %vm203_vm1, %v10461_v21  ;;  %v12345_v21 = vld [vmem:[#allocation32_spill] sm:$0xff] }
 0x1c6   : > { %8933 = vmatmul.mubr.msk.f32.gmra.mrb[12].mxu0 %vm203_vm1, %v10467_v22  ;;  %v12346_v22 = vmov 0.0  }
 0x1c7   : > { %8935 = vmatprep.mubr.msk.f32.mxu0 %vm203_vm1, %v10469_v23  ;;  %3801 = vst.msk [vmem:[#allocation3 + $0x20] sm:$0xff] %vm3795_vm3, %v12346_v22  ;;  %3796 = vst.msk [vmem:[#allocation3] sm:$0xff] %vm3795_vm3, %v12346_v22  ;;  %v3885_v23 = vld [vmem:[%s12146_s2 + $0x8] sm:$0xff] }
 0x1c8   : > { %3797 = vst.msk [vmem:[#allocation3 + $0x8] sm:$0xff] %vm3795_vm3, %v12346_v22  ;;  %3800 = vst.msk [vmem:[#allocation3 + $0x18] sm:$0xff] %vm3795_vm3, %v12346_v22  ;;  %9062 = vmatprep.subr.mxu1 %v3885_v23 }
 0x1c9   : > { %3803 = vst.msk [vmem:[#allocation3 + $0x30] sm:$0xff] %vm3795_vm3, %v12346_v22  ;;  %3804 = vst.msk [vmem:[#allocation3 + $0x38] sm:$0xff] %vm3795_vm3, %v12346_v22  ;;  %9063 = vmatpush3.msra.mxu1 %v3885_v23 }
 0x1ca   : > { %8936 = vmatmul.mubr.msk.f32.gmra.mrb[14].mxu0 %vm203_vm1, %v10475_v24  ;;  %3806 = vst.msk [vmem:[#allocation3 + $0x48] sm:$0xff] %vm3795_vm3, %v12346_v22  ;;  %3807 = vst.msk [vmem:[#allocation3 + $0x50] sm:$0xff] %vm3795_vm3, %v12346_v22 }
 0x1cb   : > { %8938 = vmatprep.mubr.msk.f32.mxu0 %vm203_vm1, %v10477_v25  ;;  %3809 = vst.msk [vmem:[#allocation3 + $0x60] sm:$0xff] %vm3795_vm3, %v12346_v22  ;;  %3810 = vst.msk [vmem:[#allocation3 + $0x68] sm:$0xff] %vm3795_vm3, %v12346_v22 }
 0x1cc   : > { %3812 = vst.msk [vmem:[#allocation3 + $0x78] sm:$0xff] %vm3795_vm3, %v12346_v22  ;;  %3813 = vst.msk [vmem:[#allocation3 + $0x80] sm:$0xff] %vm3795_vm3, %v12346_v22 }
 0x1cd   : > { %3815 = vst.msk [vmem:[#allocation3 + $0x90] sm:$0xff] %vm3795_vm3, %v12346_v22  ;;  %3816 = vst.msk [vmem:[#allocation3 + $0x98] sm:$0xff] %vm3795_vm3, %v12346_v22 }
 0x1ce   : > { %8939 = vmatmul.mubr.msk.f32.gmra.mrb[16].mxu0 %vm203_vm1, %v10483_v26  ;;  %3818 = vst.msk [vmem:[#allocation3 + $0xa8] sm:$0xff] %vm3795_vm3, %v12346_v22  ;;  %3819 = vst.msk [vmem:[#allocation3 + $0xb0] sm:$0xff] %vm3795_vm3, %v12346_v22  ;;  %v3884_v26 = vld [vmem:[%s12146_s2] sm:$0xff] }
 0x1cf   : > { %8941 = vmatprep.mubr.msk.f32.mxu0 %vm203_vm1, %v10485_v27  ;;  %3821 = vst.msk [vmem:[#allocation3 + $0xc0] sm:$0xff] %vm3795_vm3, %v12346_v22  ;;  %3822 = vst.msk [vmem:[#allocation3 + $0xc8] sm:$0xff] %vm3795_vm3, %v12346_v22  ;;  %v3926_v24 = vld [vmem:[#allocation3 + $0x1] sm:$0xff]  ;;  %9112 = vmatprep.subr.mxu1 %v3884_v26 }
 0x1d0   : > { %3824 = vst.msk [vmem:[#allocation3 + $0xd8] sm:$0xff] %vm3795_vm3, %v12346_v22  ;;  %3825 = vst.msk [vmem:[#allocation3 + $0xe0] sm:$0xff] %vm3795_vm3, %v12346_v22  ;;  %9064 = vmatprep.mubr.msk.f32.mxu1 %vm3795_vm3, %v3926_v24  ;;  %v11192_v27 = vld [vmem:[%s12146_s2 + $0x10] sm:$0xff] }
 0x1d1   : > { %3827 = vst.msk [vmem:[#allocation3 + $0xf0] sm:$0xff] %vm3795_vm3, %v12346_v22  ;;  %3828 = vst.msk [vmem:[#allocation3 + $0xf8] sm:$0xff] %vm3795_vm3, %v12346_v22 }
 0x1d2   : > { %8942 = vmatmul.mubr.msk.f32.gmra.mrb[18].mxu0 %vm203_vm1, %v10491_v31  ;;  %3830 = vst.msk [vmem:[#allocation3 + $0x108] sm:$0xff] %vm3795_vm3, %v12346_v22  ;;  %3831 = vst.msk [vmem:[#allocation3 + $0x110] sm:$0xff] %vm3795_vm3, %v12346_v22  ;;  %v3727_v31 = vlaneseq }
 0x1d3   : > { %8944 = vmatprep.mubr.msk.f32.mxu0 %vm203_vm1, %v10493_v32  ;;  %3833 = vst.msk [vmem:[#allocation3 + $0x120] sm:$0xff] %vm3795_vm3, %v12346_v22  ;;  %3834 = vst.msk [vmem:[#allocation3 + $0x128] sm:$0xff] %vm3795_vm3, %v12346_v22 }
 0x1d4   : > { %3836 = vst.msk [vmem:[#allocation3 + $0x138] sm:$0xff] %vm3795_vm3, %v12346_v22  ;;  %3837 = vst.msk [vmem:[#allocation3 + $0x140] sm:$0xff] %vm3795_vm3, %v12346_v22  ;;  %v3728_v32 = vshrl.u32 %v3727_v31, 7 }
 0x1d5   : > { %3839 = vst.msk [vmem:[#allocation3 + $0x150] sm:$0xff] %vm3795_vm3, %v12346_v22  ;;  %3840 = vst.msk [vmem:[#allocation3 + $0x158] sm:$0xff] %vm3795_vm3, %v12346_v22 }
 0x1d6   : > { %8945 = vmatmul.mubr.msk.f32.gmra.mrb[20].mxu0 %vm203_vm1, %v10499_v37  ;;  %3842 = vst.msk [vmem:[#allocation3 + $0x168] sm:$0xff] %vm3795_vm3, %v12346_v22  ;;  %3843 = vst.msk [vmem:[#allocation3 + $0x170] sm:$0xff] %vm3795_vm3, %v12346_v22  ;;  %v3729_v37 = vsub.s32 4, %v3728_v32 }
 0x1d7   : > { %8947 = vmatprep.mubr.msk.f32.mxu0 %vm203_vm1, %v10501_v38  ;;  %3845 = vst.msk [vmem:[#allocation3 + $0x180] sm:$0xff] %vm3795_vm3, %v12346_v22  ;;  %3846 = vst.msk [vmem:[#allocation3 + $0x188] sm:$0xff] %vm3795_vm3, %v12346_v22 }
 0x1d8   : > { %3848 = vst.msk [vmem:[#allocation3 + $0x198] sm:$0xff] %vm3795_vm3, %v12346_v22  ;;  %3849 = vst.msk [vmem:[#allocation3 + $0x1a0] sm:$0xff] %vm3795_vm3, %v12346_v22  ;;  %v11196_v38 = vrot.slane %v10888_v9, %v3729_v37 }
 0x1d9   : > { %3802 = vst.msk [vmem:[#allocation3 + $0x28] sm:$0x3] %vm3798_vm4, %v12346_v22  ;;  %3799 = vst.msk [vmem:[#allocation3 + $0x10] sm:$0x3] %vm3798_vm4, %v12346_v22 }
 0x1da   : > { %8948 = vmatmul.mubr.msk.f32.gmra.mrb[22].mxu0 %vm203_vm1, %v10507_v39  ;;  %3805 = vst.msk [vmem:[#allocation3 + $0x40] sm:$0x3] %vm3798_vm4, %v12346_v22  ;;  %3808 = vst.msk [vmem:[#allocation3 + $0x58] sm:$0x3] %vm3798_vm4, %v12346_v22 }
 0x1db   : > { %8950 = vmatprep.mubr.msk.f32.mxu0 %vm203_vm1, %v10509_v40  ;;  %3811 = vst.msk [vmem:[#allocation3 + $0x70] sm:$0x3] %vm3798_vm4, %v12346_v22  ;;  %3814 = vst.msk [vmem:[#allocation3 + $0x88] sm:$0x3] %vm3798_vm4, %v12346_v22 }
 0x1dc   : > { %3817 = vst.msk [vmem:[#allocation3 + $0xa0] sm:$0x3] %vm3798_vm4, %v12346_v22  ;;  %3820 = vst.msk [vmem:[#allocation3 + $0xb8] sm:$0x3] %vm3798_vm4, %v12346_v22 }
 0x1dd   : > { %3823 = vst.msk [vmem:[#allocation3 + $0xd0] sm:$0x3] %vm3798_vm4, %v12346_v22  ;;  %3826 = vst.msk [vmem:[#allocation3 + $0xe8] sm:$0x3] %vm3798_vm4, %v12346_v22 }
 0x1de   : > { %8951 = vmatmul.mubr.msk.f32.gmra.mrb[24].mxu0 %vm203_vm1, %v10519_v3  ;;  %3829 = vst.msk [vmem:[#allocation3 + $0x100] sm:$0x3] %vm3798_vm4, %v12346_v22  ;;  %3832 = vst.msk [vmem:[#allocation3 + $0x118] sm:$0x3] %vm3798_vm4, %v12346_v22 }
 0x1df   : > { %8953 = vmatprep.mubr.msk.f32.mxu0 %vm203_vm1, %v10521_v4  ;;  %3835 = vst.msk [vmem:[#allocation3 + $0x130] sm:$0x3] %vm3798_vm4, %v12346_v22  ;;  %3838 = vst.msk [vmem:[#allocation3 + $0x148] sm:$0x3] %vm3798_vm4, %v12346_v22 }
 0x1e0   : > { %3841 = vst.msk [vmem:[#allocation3 + $0x160] sm:$0x3] %vm3798_vm4, %v12346_v22  ;;  %3844 = vst.msk [vmem:[#allocation3 + $0x178] sm:$0x3] %vm3798_vm4, %v12346_v22  ;;  %v3927_v25 = vld [vmem:[#allocation3 + $0x9] sm:$0xff] }
 0x1e1   : > { %3847 = vst.msk [vmem:[#allocation3 + $0x190] sm:$0x3] %vm3798_vm4, %v12346_v22  ;;  %3850 = vst.msk [vmem:[#allocation3 + $0x1a8] sm:$0x3] %vm3798_vm4, %v12346_v22  ;;  %9065 = vmatmul.mubr.msk.f32.vlgmr.msra.gmra.mrb[0].mxu1 %vm3795_vm3, %v3927_v25 }
 0x1e2   : > { %8954 = vmatmul.mubr.msk.f32.gmra.mrb[26].mxu0 %vm203_vm1, %v10527_v41  ;;  %9113 = vmatpush3.msra.mxu1 %v3884_v26 }
 0x1e3   : > { %8956 = vmatprep.mubr.msk.f32.mxu0 %vm203_vm1, %v10725_v1  ;;  %9162 = vmatprep.subr.mxu1 %v11192_v27 }
 0x1e6   : > { %8957 = vmatmul.mubr.msk.f32.gmra.mrb[28].mxu0 %vm203_vm1, %v10731_v6 }
 0x1e7   : > { %8959 = vmatprep.mubr.msk.f32.mxu0 %vm203_vm1, %v2593_v8 }
 0x1ea   : > { %8960 = vmatmul.mubr.msk.f32.gmra.mrb[30].mxu0 %vm203_vm1, %v2594_v10 }
 0x1eb   : > { %8964 = vmatprep.mubr.msk.f32.mxu0 %vm203_vm1, %v2951_v11 }
 0x1ee   : > { %8965 = vmatmul.mubr.msk.f32.vlgmr.msra.gmra.mrb[0].mxu0 %vm203_vm1, %v2952_v12 }
 0x1ef   : > { %9013 = vmatpush3.msk.msra.mxu0 %vm459_vm0, %v10888_v9  ;;  %8967 = vmatprep.mubr.msk.f32.mxu0 %vm203_vm1, %v2953_v13 }
 0x1f2   : > { %8968 = vmatmul.mubr.msk.f32.gmra.mrb[2].mxu0 %vm203_vm1, %v2954_v14 }
 0x1f3   : > { %8970 = vmatprep.mubr.msk.f32.mxu0 %vm203_vm1, %v2955_v15 }
 0x1f6   : > { %8971 = vmatmul.mubr.msk.f32.gmra.mrb[4].mxu0 %vm203_vm1, %v2956_v16 }
 0x1f7   : > { %8973 = vmatprep.mubr.msk.f32.mxu0 %vm203_vm1, %v10309_v44  ;;  %v12324_v44 = vld [vmem:[#allocation5_spill] sm:$0xff] }
 0x1fa   : > { %8974 = vmatmul.mubr.msk.f32.gmra.mrb[6].mxu0 %vm203_vm1, %v10315_v45  ;;  %v12325_v45 = vld [vmem:[#allocation6_spill] sm:$0xff] }
 0x1fb   : > { %8976 = vmatprep.mubr.msk.f32.mxu0 %vm203_vm1, %v10317_v46  ;;  %v12326_v46 = vld [vmem:[#allocation4_spill] sm:$0xff] }
 0x1fe   : > { %8977 = vmatmul.mubr.msk.f32.gmra.mrb[8].mxu0 %vm203_vm1, %v10323_v47  ;;  %v2981_v47 = vld [vmem:[#allocation2 + $0x199] sm:$0xff] }
 0x1ff   : > { %8979 = vmatprep.mubr.msk.f32.mxu0 %vm203_vm1, %v10325_v48  ;;  %v12327_v48 = vld [vmem:[#allocation33_spill] sm:$0xff] }
 0x202   : > { %8980 = vmatmul.mubr.msk.f32.gmra.mrb[10].mxu0 %vm203_vm1, %v10331_v49  ;;  %v2982_v49 = vld [vmem:[#allocation2 + $0x1a1] sm:$0xff] }
 0x203   : > { %8982 = vmatprep.mubr.msk.f32.mxu0 %vm203_vm1, %v10333_v50  ;;  %v12328_v50 = vld [vmem:[#allocation9_spill] sm:$0xff] }
 0x206   : > { %8983 = vmatmul.mubr.msk.f32.gmra.mrb[12].mxu0 %vm203_vm1, %v10339_v51  ;;  %v12329_v51 = vld [vmem:[#allocation10_spill] sm:$0xff] }
 0x207   : > { %8985 = vmatprep.mubr.msk.f32.mxu0 %vm203_vm1, %v10341_v52  ;;  %v12330_v52 = vld [vmem:[#allocation11_spill] sm:$0xff] }
 0x20a   : > { %8986 = vmatmul.mubr.msk.f32.gmra.mrb[14].mxu0 %vm203_vm1, %v10347_v53  ;;  %v12331_v53 = vld [vmem:[#allocation12_spill] sm:$0xff] }
 0x20b   : > { %8988 = vmatprep.mubr.msk.f32.mxu0 %vm203_vm1, %v10349_v54  ;;  %v12332_v54 = vld [vmem:[#allocation13_spill] sm:$0xff] }
 0x20e   : > { %8989 = vmatmul.mubr.msk.f32.gmra.mrb[16].mxu0 %vm203_vm1, %v10355_v55  ;;  %v12333_v55 = vld [vmem:[#allocation14_spill] sm:$0xff] }
 0x20f   : > { %8991 = vmatprep.mubr.msk.f32.mxu0 %vm203_vm1, %v10357_v56  ;;  %v12334_v56 = vld [vmem:[#allocation15_spill] sm:$0xff] }
 0x212   : > { %8992 = vmatmul.mubr.msk.f32.gmra.mrb[18].mxu0 %vm203_vm1, %v10363_v57  ;;  %v12335_v57 = vld [vmem:[#allocation16_spill] sm:$0xff] }
 0x213   : > { %8994 = vmatprep.mubr.msk.f32.mxu0 %vm203_vm1, %v10365_v58  ;;  %v12336_v58 = vld [vmem:[#allocation17_spill] sm:$0xff] }
 0x216   : > { %8995 = vmatmul.mubr.msk.f32.gmra.mrb[20].mxu0 %vm203_vm1, %v10371_v59  ;;  %v12337_v59 = vld [vmem:[#allocation18_spill] sm:$0xff] }
 0x217   : > { %8997 = vmatprep.mubr.msk.f32.mxu0 %vm203_vm1, %v10373_v60  ;;  %v12338_v60 = vld [vmem:[#allocation19_spill] sm:$0xff] }
 0x21a   : > { %8998 = vmatmul.mubr.msk.f32.gmra.mrb[22].mxu0 %vm203_vm1, %v10379_v61  ;;  %v12339_v61 = vld [vmem:[#allocation20_spill] sm:$0xff] }
 0x21b   : > { %9000 = vmatprep.mubr.msk.f32.mxu0 %vm203_vm1, %v10381_v62  ;;  %v12340_v62 = vld [vmem:[#allocation21_spill] sm:$0xff] }
 0x21e   : > { %9001 = vmatmul.mubr.msk.f32.gmra.mrb[24].mxu0 %vm203_vm1, %v12294_v28 }
 0x21f   : > { %9003 = vmatprep.mubr.msk.f32.mxu0 %vm203_vm1, %v12324_v44 }
 0x222   : > { %9004 = vmatmul.mubr.msk.f32.gmra.mrb[26].mxu0 %vm203_vm1, %v12325_v45 }
 0x223   : > { %9006 = vmatprep.mubr.msk.f32.mxu0 %vm203_vm1, %v12326_v46 }
 0x226   : > { %9007 = vmatmul.mubr.msk.f32.gmra.mrb[28].mxu0 %vm203_vm1, %v12327_v48 }
 0x227   : > { %9009 = vmatprep.mubr.msk.f32.mxu0 %vm203_vm1, %v2981_v47 }
 0x22a   : > { %9010 = vmatmul.mubr.msk.f32.gmra.mrb[30].mxu0 %vm203_vm1, %v2982_v49 }
 0x22b   : > { %9014 = vmatprep.mubr.msk.f32.mxu0 %vm203_vm1, %v12328_v50 }
 0x22e   : > { %9015 = vmatmul.mubr.msk.f32.vlgmr.msra.gmra.mrb[0].mxu0 %vm203_vm1, %v12329_v51 }
 0x22f   : > { %9017 = vmatprep.mubr.msk.f32.mxu0 %vm203_vm1, %v12330_v52 }
 0x232   : > { %9018 = vmatmul.mubr.msk.f32.gmra.mrb[2].mxu0 %vm203_vm1, %v12331_v53 }
 0x233   : > { %9020 = vmatprep.mubr.msk.f32.mxu0 %vm203_vm1, %v12332_v54 }
 0x236   : > { %9021 = vmatmul.mubr.msk.f32.gmra.mrb[4].mxu0 %vm203_vm1, %v12333_v55 }
 0x237   : > { %9023 = vmatprep.mubr.msk.f32.mxu0 %vm203_vm1, %v12334_v56 }
 0x23a   : > { %9024 = vmatmul.mubr.msk.f32.gmra.mrb[6].mxu0 %vm203_vm1, %v12335_v57 }
 0x23b   : > { %9026 = vmatprep.mubr.msk.f32.mxu0 %vm203_vm1, %v12336_v58 }
 0x23e   : > { %9027 = vmatmul.mubr.msk.f32.gmra.mrb[8].mxu0 %vm203_vm1, %v12337_v59 }
 0x23f   : > { %9029 = vmatprep.mubr.msk.f32.mxu0 %vm203_vm1, %v12338_v60 }
 0x242   : > { %9030 = vmatmul.mubr.msk.f32.gmra.mrb[10].mxu0 %vm203_vm1, %v12339_v61 }
 0x243   : > { %9032 = vmatprep.mubr.msk.f32.mxu0 %vm203_vm1, %v12340_v62 }
 0x246   : > { %9033 = vmatmul.mubr.msk.f32.gmra.mrb[12].mxu0 %vm203_vm1, %v12314_v43 }
 0x247   : > { %9035 = vmatprep.mubr.msk.f32.mxu0 %vm203_vm1, %v12341_v17 }
 0x24a   : > { %9036 = vmatmul.mubr.msk.f32.gmra.mrb[14].mxu0 %vm203_vm1, %v12316_v2 }
 0x24b   : > { %9038 = vmatprep.mubr.msk.f32.mxu0 %vm203_vm1, %v12342_v18 }
 0x24e   : > { %9039 = vmatmul.mubr.msk.f32.gmra.mrb[16].mxu0 %vm203_vm1, %v12318_v30 }
 0x24f   : > { %9041 = vmatprep.mubr.msk.f32.mxu0 %vm203_vm1, %v12319_v34 }
 0x252   : > { %9042 = vmatmul.mubr.msk.f32.gmra.mrb[18].mxu0 %vm203_vm1, %v12343_v19 }
 0x253   : > { %9044 = vmatprep.mubr.msk.f32.mxu0 %vm203_vm1, %v12321_v33 }
 0x256   : > { %9045 = vmatmul.mubr.msk.f32.gmra.mrb[20].mxu0 %vm203_vm1, %v10635_v5  ;;  %v3369_v5 = vld [vmem:[#allocation2 + $0x19a] sm:$0xff] }
 0x257   : > { %9047 = vmatprep.mubr.msk.f32.mxu0 %vm203_vm1, %v12344_v20 }
 0x25a   : > { %9048 = vmatmul.mubr.msk.f32.gmra.mrb[22].mxu0 %vm203_vm1, %v10643_v63  ;;  %v3370_v63 = vld [vmem:[#allocation2 + $0x1a2] sm:$0xff] }
 0x25b   : > { %9050 = vmatprep.mubr.msk.f32.mxu0 %vm203_vm1, %v12323_v29 }
 0x25e   : > { %9051 = vmatmul.mubr.msk.f32.gmra.mrb[24].mxu0 %vm203_vm1, %v10651_v42 }
 0x25f   : > { %9053 = vmatprep.mubr.msk.f32.mxu0 %vm203_vm1, %v12345_v21 }
 0x262   : > { %9054 = vmatmul.mubr.msk.f32.gmra.mrb[26].mxu0 %vm203_vm1, %v10659_v0 }
 0x263   : > { %9056 = vmatprep.mubr.msk.f32.mxu0 %vm203_vm1, %v10873_v35 }
 0x266   : > { %9057 = vmatmul.mubr.msk.f32.gmra.mrb[28].mxu0 %vm203_vm1, %v10879_v7 }
 0x267   : > { %9059 = vmatprep.mubr.msk.f32.mxu0 %vm203_vm1, %v3369_v5 }
 0x26a   : > { %9060 = vmatmul.mubr.msk.f32.gmra.mrb[30].mxu0 %vm203_vm1, %v3370_v63 }
 0x301   : > { %v9016_v39 = vpop.f32.mrb[0].mxu0 }
 0x302   : > { %v3732_v40 = vadd.f32 %v9016_v39, %v11196_v38  ;;  %v3536_v3 = vpop.f32.mrb[1].mxu0 }
 0x303   : > { %v3731_v4 = vadd.f32 %v11196_v38, %v3536_v3 }
 0x304   : > { %v3764_v41 = vmax.f32 %v3732_v40, 0.0 }
 0x305   : > { %v3763_v42 = vmax.f32 %v3731_v4, 0.0  ;;  %v9019_v0 = vpop.f32.mrb[2].mxu0 }
 0x306   : > { %3853 = vst.msk [vmem:[#allocation3 + $0x21] sm:$0xff] %vm3795_vm3, %v3764_v41  ;;  %v3734_v1 = vadd.f32 %v9019_v0, %v11196_v38  ;;  %v3546_v6 = vpop.f32.mrb[3].mxu0 }
 0x307   : > { %3852 = vst.msk [vmem:[#allocation3 + $0x19] sm:$0xff] %vm3795_vm3, %v3763_v42  ;;  %v3733_v28 = vadd.f32 %v11196_v38, %v3546_v6 }
 0x308   : > { %v3766_v9 = vmax.f32 %v3734_v1, 0.0 }
 0x309   : > { %v3765_v29 = vmax.f32 %v3733_v28, 0.0  ;;  %v9022_v30 = vpop.f32.mrb[4].mxu0 }
 0x30a   : > { %3855 = vst.msk [vmem:[#allocation3 + $0x39] sm:$0xff] %vm3795_vm3, %v3766_v9  ;;  %v3736_v33 = vadd.f32 %v9022_v30, %v11196_v38  ;;  %v3556_v34 = vpop.f32.mrb[5].mxu0 }
 0x30b   : > { %3854 = vst.msk [vmem:[#allocation3 + $0x31] sm:$0xff] %vm3795_vm3, %v3765_v29  ;;  %v3735_v36 = vadd.f32 %v11196_v38, %v3556_v34 }
 0x30c   : > { %v3768_v2 = vmax.f32 %v3736_v33, 0.0 }
 0x30d   : > { %v3767_v35 = vmax.f32 %v3735_v36, 0.0  ;;  %v9025_v43 = vpop.f32.mrb[6].mxu0  ;;  %v11216_v12 = vld [vmem:[#allocation3 + $0x21] sm:$0xff] }
 0x30e   : > { %3857 = vst.msk [vmem:[#allocation3 + $0x51] sm:$0xff] %vm3795_vm3, %v3768_v2  ;;  %v3738_v7 = vadd.f32 %v9025_v43, %v11196_v38  ;;  %v3566_v8 = vpop.f32.mrb[7].mxu0  ;;  %v11210_v10 = vld [vmem:[#allocation3 + $0x19] sm:$0xff] }
 0x30f   : > { %3856 = vst.msk [vmem:[#allocation3 + $0x49] sm:$0xff] %vm3795_vm3, %v3767_v35  ;;  %v3737_v11 = vadd.f32 %v11196_v38, %v3566_v8  ;;  %9067 = vmatprep.mubr.msk.f32.mxu1 %vm3795_vm3, %v11210_v10 }
 0x310   : > { %v3770_v13 = vmax.f32 %v3738_v7, 0.0  ;;  %9068 = vmatmul.mubr.msk.f32.gmra.mrb[2].mxu1 %vm3795_vm3, %v11216_v12 }
 0x311   : > { %v3769_v14 = vmax.f32 %v3737_v11, 0.0  ;;  %v9028_v15 = vpop.f32.mrb[8].mxu0  ;;  %v11228_v47 = vld [vmem:[#allocation3 + $0x39] sm:$0xff] }
 0x312   : > { %3859 = vst.msk [vmem:[#allocation3 + $0x69] sm:$0xff] %vm3795_vm3, %v3770_v13  ;;  %v3740_v16 = vadd.f32 %v9028_v15, %v11196_v38  ;;  %v3576_v44 = vpop.f32.mrb[9].mxu0  ;;  %v11222_v45 = vld [vmem:[#allocation3 + $0x31] sm:$0xff] }
 0x313   : > { %3858 = vst.msk [vmem:[#allocation3 + $0x61] sm:$0xff] %vm3795_vm3, %v3769_v14  ;;  %v3739_v46 = vadd.f32 %v11196_v38, %v3576_v44  ;;  %9070 = vmatprep.mubr.msk.f32.mxu1 %vm3795_vm3, %v11222_v45 }
 0x314   : > { %v3772_v48 = vmax.f32 %v3740_v16, 0.0  ;;  %9071 = vmatmul.mubr.msk.f32.gmra.mrb[4].mxu1 %vm3795_vm3, %v11228_v47 }
 0x315   : > { %v3771_v49 = vmax.f32 %v3739_v46, 0.0  ;;  %v9031_v50 = vpop.f32.mrb[10].mxu0  ;;  %v11240_v55 = vld [vmem:[#allocation3 + $0x51] sm:$0xff] }
 0x316   : > { %3861 = vst.msk [vmem:[#allocation3 + $0x81] sm:$0xff] %vm3795_vm3, %v3772_v48  ;;  %v3742_v51 = vadd.f32 %v9031_v50, %v11196_v38  ;;  %v3586_v52 = vpop.f32.mrb[11].mxu0  ;;  %v11234_v53 = vld [vmem:[#allocation3 + $0x49] sm:$0xff] }
 0x317   : > { %3860 = vst.msk [vmem:[#allocation3 + $0x79] sm:$0xff] %vm3795_vm3, %v3771_v49  ;;  %v3741_v54 = vadd.f32 %v11196_v38, %v3586_v52  ;;  %9073 = vmatprep.mubr.msk.f32.mxu1 %vm3795_vm3, %v11234_v53 }
 0x318   : > { %v3774_v56 = vmax.f32 %v3742_v51, 0.0  ;;  %9074 = vmatmul.mubr.msk.f32.gmra.mrb[6].mxu1 %vm3795_vm3, %v11240_v55 }
 0x319   : > { %v3773_v57 = vmax.f32 %v3741_v54, 0.0  ;;  %v9034_v58 = vpop.f32.mrb[12].mxu0  ;;  %v11252_v17 = vld [vmem:[#allocation3 + $0x69] sm:$0xff] }
 0x31a   : > { %3863 = vst.msk [vmem:[#allocation3 + $0x99] sm:$0xff] %vm3795_vm3, %v3774_v56  ;;  %v3744_v59 = vadd.f32 %v9034_v58, %v11196_v38  ;;  %v3596_v60 = vpop.f32.mrb[13].mxu0  ;;  %v11246_v61 = vld [vmem:[#allocation3 + $0x61] sm:$0xff] }
 0x31b   : > { %3862 = vst.msk [vmem:[#allocation3 + $0x91] sm:$0xff] %vm3795_vm3, %v3773_v57  ;;  %v3743_v62 = vadd.f32 %v11196_v38, %v3596_v60  ;;  %9076 = vmatprep.mubr.msk.f32.mxu1 %vm3795_vm3, %v11246_v61 }
 0x31c   : > { %v3776_v18 = vmax.f32 %v3744_v59, 0.0  ;;  %9077 = vmatmul.mubr.msk.f32.gmra.mrb[8].mxu1 %vm3795_vm3, %v11252_v17 }
 0x31d   : > { %v3775_v19 = vmax.f32 %v3743_v62, 0.0  ;;  %v9037_v20 = vpop.f32.mrb[14].mxu0  ;;  %v11264_v23 = vld [vmem:[#allocation3 + $0x81] sm:$0xff] }
 0x31e   : > { %3865 = vst.msk [vmem:[#allocation3 + $0xb1] sm:$0xff] %vm3795_vm3, %v3776_v18  ;;  %v3746_v21 = vadd.f32 %v9037_v20, %v11196_v38  ;;  %v3606_v5 = vpop.f32.mrb[15].mxu0  ;;  %v11258_v63 = vld [vmem:[#allocation3 + $0x79] sm:$0xff] }
 0x31f   : > { %3864 = vst.msk [vmem:[#allocation3 + $0xa9] sm:$0xff] %vm3795_vm3, %v3775_v19  ;;  %v3745_v22 = vadd.f32 %v11196_v38, %v3606_v5  ;;  %9079 = vmatprep.mubr.msk.f32.mxu1 %vm3795_vm3, %v11258_v63 }
 0x320   : > { %v3778_v24 = vmax.f32 %v3746_v21, 0.0  ;;  %9080 = vmatmul.mubr.msk.f32.gmra.mrb[10].mxu1 %vm3795_vm3, %v11264_v23 }
 0x321   : > { %v3777_v25 = vmax.f32 %v3745_v22, 0.0  ;;  %v9040_v26 = vpop.f32.mrb[16].mxu0  ;;  %v11276_v40 = vld [vmem:[#allocation3 + $0x99] sm:$0xff] }
 0x322   : > { %3867 = vst.msk [vmem:[#allocation3 + $0xc9] sm:$0xff] %vm3795_vm3, %v3778_v24  ;;  %v3748_v31 = vadd.f32 %v9040_v26, %v11196_v38  ;;  %v3616_v32 = vpop.f32.mrb[17].mxu0  ;;  %v11270_v37 = vld [vmem:[#allocation3 + $0x91] sm:$0xff] }
 0x323   : > { %3866 = vst.msk [vmem:[#allocation3 + $0xc1] sm:$0xff] %vm3795_vm3, %v3777_v25  ;;  %v3747_v39 = vadd.f32 %v11196_v38, %v3616_v32  ;;  %9082 = vmatprep.mubr.msk.f32.mxu1 %vm3795_vm3, %v11270_v37 }
 0x324   : > { %v3780_v3 = vmax.f32 %v3748_v31, 0.0  ;;  %9083 = vmatmul.mubr.msk.f32.gmra.mrb[12].mxu1 %vm3795_vm3, %v11276_v40 }
 0x325   : > { %v3779_v4 = vmax.f32 %v3747_v39, 0.0  ;;  %v9043_v41 = vpop.f32.mrb[18].mxu0  ;;  %v11288_v28 = vld [vmem:[#allocation3 + $0xb1] sm:$0xff] }
 0x326   : > { %3869 = vst.msk [vmem:[#allocation3 + $0xe1] sm:$0xff] %vm3795_vm3, %v3780_v3  ;;  %v3750_v42 = vadd.f32 %v9043_v41, %v11196_v38  ;;  %v3626_v0 = vpop.f32.mrb[19].mxu0  ;;  %v11282_v1 = vld [vmem:[#allocation3 + $0xa9] sm:$0xff] }
 0x327   : > { %3868 = vst.msk [vmem:[#allocation3 + $0xd9] sm:$0xff] %vm3795_vm3, %v3779_v4  ;;  %v3749_v6 = vadd.f32 %v11196_v38, %v3626_v0  ;;  %9085 = vmatprep.mubr.msk.f32.mxu1 %vm3795_vm3, %v11282_v1 }
 0x328   : > { %v3782_v9 = vmax.f32 %v3750_v42, 0.0  ;;  %9086 = vmatmul.mubr.msk.f32.gmra.mrb[14].mxu1 %vm3795_vm3, %v11288_v28 }
 0x329   : > { %v3781_v29 = vmax.f32 %v3749_v6, 0.0  ;;  %v9046_v30 = vpop.f32.mrb[20].mxu0  ;;  %v11300_v35 = vld [vmem:[#allocation3 + $0xc9] sm:$0xff] }
 0x32a   : > { %3871 = vst.msk [vmem:[#allocation3 + $0xf9] sm:$0xff] %vm3795_vm3, %v3782_v9  ;;  %v3752_v33 = vadd.f32 %v9046_v30, %v11196_v38  ;;  %v3636_v34 = vpop.f32.mrb[21].mxu0  ;;  %v11294_v36 = vld [vmem:[#allocation3 + $0xc1] sm:$0xff] }
 0x32b   : > { %3870 = vst.msk [vmem:[#allocation3 + $0xf1] sm:$0xff] %vm3795_vm3, %v3781_v29  ;;  %v3751_v2 = vadd.f32 %v11196_v38, %v3636_v34  ;;  %9088 = vmatprep.mubr.msk.f32.mxu1 %vm3795_vm3, %v11294_v36  ;;  %v3894_v34 = vld [vmem:[#allocation3] sm:$0xff] }
 0x32c   : > { %v3784_v43 = vmax.f32 %v3752_v33, 0.0  ;;  %9089 = vmatmul.mubr.msk.f32.gmra.mrb[16].mxu1 %vm3795_vm3, %v11300_v35 }
 0x32d   : > { %v3783_v7 = vmax.f32 %v3751_v2, 0.0  ;;  %v9049_v8 = vpop.f32.mrb[22].mxu0  ;;  %v11312_v16 = vld [vmem:[#allocation3 + $0xe1] sm:$0xff] }
 0x32e   : > { %3873 = vst.msk [vmem:[#allocation3 + $0x111] sm:$0xff] %vm3795_vm3, %v3784_v43  ;;  %v3754_v11 = vadd.f32 %v9049_v8, %v11196_v38  ;;  %v3646_v13 = vpop.f32.mrb[23].mxu0  ;;  %v11306_v14 = vld [vmem:[#allocation3 + $0xd9] sm:$0xff]  ;;  %v3895_v43 = vld [vmem:[#allocation3 + $0x8] sm:$0xff] }
 0x32f   : > { %3872 = vst.msk [vmem:[#allocation3 + $0x109] sm:$0xff] %vm3795_vm3, %v3783_v7  ;;  %v3753_v15 = vadd.f32 %v11196_v38, %v3646_v13  ;;  %9091 = vmatprep.mubr.msk.f32.mxu1 %vm3795_vm3, %v11306_v14  ;;  %v11386_v7 = vld [vmem:[%s12146_s2 + $0x18] sm:$0xff]  ;;  %v11389_v8 = vld [vmem:[#allocation3 + $0x18] sm:$0xff]  ;;  %v11399_v13 = vld [vmem:[#allocation3 + $0x30] sm:$0xff] }
 0x330   : > { %v3786_v44 = vmax.f32 %v3754_v11, 0.0  ;;  %9092 = vmatmul.mubr.msk.f32.gmra.mrb[18].mxu1 %vm3795_vm3, %v11312_v16  ;;  %v11395_v11 = vld [vmem:[#allocation3 + $0x20] sm:$0xff] }
 0x331   : > { %v3785_v46 = vmax.f32 %v3753_v15, 0.0  ;;  %v9052_v48 = vpop.f32.mrb[24].mxu0  ;;  %v11324_v54 = vld [vmem:[#allocation3 + $0xf9] sm:$0xff] }
 0x332   : > { %3875 = vst.msk [vmem:[#allocation3 + $0x129] sm:$0xff] %vm3795_vm3, %v3786_v44  ;;  %v3756_v49 = vadd.f32 %v9052_v48, %v11196_v38  ;;  %v3656_v50 = vpop.f32.mrb[25].mxu0  ;;  %v11318_v51 = vld [vmem:[#allocation3 + $0xf1] sm:$0xff]  ;;  %v11419_v48 = vld [vmem:[#allocation3 + $0x68] sm:$0xff] }
 0x333   : > { %3874 = vst.msk [vmem:[#allocation3 + $0x121] sm:$0xff] %vm3795_vm3, %v3785_v46  ;;  %v3755_v52 = vadd.f32 %v11196_v38, %v3656_v50  ;;  %9094 = vmatprep.mubr.msk.f32.mxu1 %vm3795_vm3, %v11318_v51  ;;  %v11403_v15 = vld [vmem:[#allocation3 + $0x38] sm:$0xff]  ;;  %v11411_v44 = vld [vmem:[#allocation3 + $0x50] sm:$0xff]  ;;  %v11415_v46 = vld [vmem:[#allocation3 + $0x60] sm:$0xff] }
 0x334   : > { %v3788_v56 = vmax.f32 %v3756_v49, 0.0  ;;  %9095 = vmatmul.mubr.msk.f32.gmra.mrb[20].mxu1 %vm3795_vm3, %v11324_v54  ;;  %v11423_v49 = vld [vmem:[#allocation3 + $0x78] sm:$0xff]  ;;  %v11427_v50 = vld [vmem:[#allocation3 + $0x80] sm:$0xff] }
 0x335   : > { %v3787_v57 = vmax.f32 %v3755_v52, 0.0  ;;  %v9055_v58 = vpop.f32.mrb[26].mxu0  ;;  %v11336_v19 = vld [vmem:[#allocation3 + $0x111] sm:$0xff] }
 0x336   : > { %3877 = vst.msk [vmem:[#allocation3 + $0x141] sm:$0xff] %vm3795_vm3, %v3788_v56  ;;  %v3758_v59 = vadd.f32 %v9055_v58, %v11196_v38  ;;  %v3666_v60 = vpop.f32.mrb[27].mxu0  ;;  %v11330_v62 = vld [vmem:[#allocation3 + $0x109] sm:$0xff]  ;;  %v11435_v56 = vld [vmem:[#allocation3 + $0x98] sm:$0xff] }
 0x337   : > { %3876 = vst.msk [vmem:[#allocation3 + $0x139] sm:$0xff] %vm3795_vm3, %v3787_v57  ;;  %v3757_v18 = vadd.f32 %v11196_v38, %v3666_v60  ;;  %9097 = vmatprep.mubr.msk.f32.mxu1 %vm3795_vm3, %v11330_v62  ;;  %v11431_v52 = vld [vmem:[#allocation3 + $0x90] sm:$0xff]  ;;  %v11439_v57 = vld [vmem:[#allocation3 + $0xa8] sm:$0xff] }
 0x338   : > { %v3790_v20 = vmax.f32 %v3758_v59, 0.0  ;;  %9098 = vmatmul.mubr.msk.f32.gmra.mrb[22].mxu1 %vm3795_vm3, %v11336_v19  ;;  %v11443_v58 = vld [vmem:[#allocation3 + $0xb0] sm:$0xff]  ;;  %v11447_v59 = vld [vmem:[#allocation3 + $0xc0] sm:$0xff]  ;;  %v11451_v60 = vld [vmem:[#allocation3 + $0xc8] sm:$0xff] }
 0x339   : > { %v3789_v21 = vmax.f32 %v3757_v18, 0.0  ;;  %v9058_v5 = vpop.f32.mrb[28].mxu0  ;;  %v11348_v31 = vld [vmem:[#allocation3 + $0x129] sm:$0xff]  ;;  %v11455_v18 = vld [vmem:[#allocation3 + $0xd8] sm:$0xff] }
 0x33a   : > { %3879 = vst.msk [vmem:[#allocation3 + $0x159] sm:$0xff] %vm3795_vm3, %v3790_v20  ;;  %v3760_v22 = vadd.f32 %v9058_v5, %v11196_v38  ;;  %v3676_v24 = vpop.f32.mrb[29].mxu0  ;;  %v11342_v25 = vld [vmem:[#allocation3 + $0x121] sm:$0xff]  ;;  %v11467_v5 = vld [vmem:[#allocation3 + $0xf8] sm:$0xff] }
 0x33b   : > { %3878 = vst.msk [vmem:[#allocation3 + $0x151] sm:$0xff] %vm3795_vm3, %v3789_v21  ;;  %v3759_v26 = vadd.f32 %v11196_v38, %v3676_v24  ;;  %9100 = vmatprep.mubr.msk.f32.mxu1 %vm3795_vm3, %v11342_v25  ;;  %v11459_v20 = vld [vmem:[#allocation3 + $0xe0] sm:$0xff]  ;;  %v11463_v21 = vld [vmem:[#allocation3 + $0xf0] sm:$0xff] }
 0x33c   : > { %v3792_v32 = vmax.f32 %v3760_v22, 0.0  ;;  %9101 = vmatmul.mubr.msk.f32.gmra.mrb[24].mxu1 %vm3795_vm3, %v11348_v31  ;;  %v11471_v22 = vld [vmem:[#allocation3 + $0x108] sm:$0xff]  ;;  %v11475_v24 = vld [vmem:[#allocation3 + $0x110] sm:$0xff] }
 0x33d   : > { %v3791_v39 = vmax.f32 %v3759_v26, 0.0  ;;  %v9061_v3 = vpop.f32.mrb[30].mxu0  ;;  %v11360_v6 = vld [vmem:[#allocation3 + $0x141] sm:$0xff] }
 0x33e   : > { %3881 = vst.msk [vmem:[#allocation3 + $0x171] sm:$0xff] %vm3795_vm3, %v3792_v32  ;;  %v3762_v4 = vadd.f32 %v9061_v3, %v11196_v38  ;;  %v3686_v41 = vpop.f32.mrb[31].mxu0  ;;  %v11354_v42 = vld [vmem:[#allocation3 + $0x139] sm:$0xff]  ;;  %v11483_v32 = vld [vmem:[#allocation3 + $0x128] sm:$0xff] }
 0x33f   : > { %3880 = vst.msk [vmem:[#allocation3 + $0x169] sm:$0xff] %vm3795_vm3, %v3791_v39  ;;  %v3761_v0 = vadd.f32 %v11196_v38, %v3686_v41  ;;  %9103 = vmatprep.mubr.msk.f32.mxu1 %vm3795_vm3, %v11354_v42  ;;  %v11479_v26 = vld [vmem:[#allocation3 + $0x120] sm:$0xff]  ;;  %v11487_v39 = vld [vmem:[#allocation3 + $0x138] sm:$0xff] }
 0x340   : > { %v3794_v9 = vmax.f32 %v3762_v4, 0.0  ;;  %9104 = vmatmul.mubr.msk.f32.gmra.mrb[26].mxu1 %vm3795_vm3, %v11360_v6  ;;  %v11491_v3 = vld [vmem:[#allocation3 + $0x140] sm:$0xff] }
 0x341   : > { %v3793_v29 = vmax.f32 %v3761_v0, 0.0  ;;  %v11370_v38 = vld [vmem:[#allocation3 + $0x159] sm:$0xff] }
 0x342   : > { %3883 = vst.msk [vmem:[#allocation3 + $0x189] sm:$0xff] %vm3795_vm3, %v3794_v9  ;;  %v11365_v30 = vld [vmem:[#allocation3 + $0x151] sm:$0xff]  ;;  %v4600_v9 = vld [vmem:[#allocation3 + $0x2] sm:$0xff] }
 0x343   : > { %3882 = vst.msk [vmem:[#allocation3 + $0x181] sm:$0xff] %vm3795_vm3, %v3793_v29  ;;  %9106 = vmatprep.mubr.msk.f32.mxu1 %vm3795_vm3, %v11365_v30  ;;  %v11495_v4 = vld [vmem:[#allocation3 + $0x150] sm:$0xff]  ;;  %v11499_v41 = vld [vmem:[#allocation3 + $0x158] sm:$0xff] }
 0x344   : > { %9107 = vmatmul.mubr.msk.f32.gmra.mrb[28].mxu1 %vm3795_vm3, %v11370_v38 }
 0x345   : > { %v11378_v2 = vld [vmem:[#allocation3 + $0x171] sm:$0xff] }
 0x346   : > { %v11374_v33 = vld [vmem:[#allocation3 + $0x169] sm:$0xff]  ;;  %12348 = vst [vmem:[#allocation8_spill] sm:$0xff] %v11378_v2 }
 0x347   : > { %12347 = vst [vmem:[#allocation7_spill] sm:$0xff] %v11374_v33  ;;  %9109 = vmatprep.mubr.msk.f32.mxu1 %vm3795_vm3, %v11374_v33  ;;  %v11503_v0 = vld [vmem:[#allocation3 + $0x168] sm:$0xff]  ;;  %v11507_v29 = vld [vmem:[#allocation3 + $0x170] sm:$0xff] }
 0x348   : > { %9110 = vmatmul.mubr.msk.f32.gmra.mrb[30].mxu1 %vm3795_vm3, %v11378_v2  ;;  %v11518_v2 = vld [vmem:[#allocation3 + $0x1a] sm:$0xff]  ;;  %v11524_v33 = vld [vmem:[#allocation3 + $0x22] sm:$0xff] }
 0x349   : > { %9114 = vmatprep.mubr.msk.f32.mxu1 %vm3795_vm3, %v3894_v34  ;;  %v4601_v34 = vld [vmem:[#allocation3 + $0xa] sm:$0xff]  ;;  %12349 = vst [vmem:[#allocation22_spill] sm:$0xff] %v11518_v2  ;;  %12350 = vst [vmem:[#allocation24_spill] sm:$0xff] %v11524_v33 }
 0x34c   : > { %9115 = vmatmul.mubr.msk.f32.vlgmr.msra.gmra.mrb[0].mxu1 %vm3795_vm3, %v3895_v43  ;;  %v11515_v43 = vld [vmem:[%s12146_s2 + $0x20] sm:$0xff] }
 0x34d   : > { %9163 = vmatpush3.msra.mxu1 %v11192_v27  ;;  %9117 = vmatprep.mubr.msk.f32.mxu1 %vm3795_vm3, %v11389_v8  ;;  %v11407_v27 = vld [vmem:[#allocation3 + $0x48] sm:$0xff] }
 0x34e   : > { %9212 = vmatprep.subr.mxu1 %v11386_v7 }
 0x350   : > { %9118 = vmatmul.mubr.msk.f32.gmra.mrb[2].mxu1 %vm3795_vm3, %v11395_v11 }
 0x351   : > { %9120 = vmatprep.mubr.msk.f32.mxu1 %vm3795_vm3, %v11399_v13 }
 0x354   : > { %9121 = vmatmul.mubr.msk.f32.gmra.mrb[4].mxu1 %vm3795_vm3, %v11403_v15 }
 0x355   : > { %9123 = vmatprep.mubr.msk.f32.mxu1 %vm3795_vm3, %v11407_v27 }
 0x358   : > { %9124 = vmatmul.mubr.msk.f32.gmra.mrb[6].mxu1 %vm3795_vm3, %v11411_v44 }
 0x359   : > { %9126 = vmatprep.mubr.msk.f32.mxu1 %vm3795_vm3, %v11415_v46 }
 0x35c   : > { %9127 = vmatmul.mubr.msk.f32.gmra.mrb[8].mxu1 %vm3795_vm3, %v11419_v48 }
 0x35d   : > { %9129 = vmatprep.mubr.msk.f32.mxu1 %vm3795_vm3, %v11423_v49 }
 0x360   : > { %9130 = vmatmul.mubr.msk.f32.gmra.mrb[10].mxu1 %vm3795_vm3, %v11427_v50 }
 0x361   : > { %9132 = vmatprep.mubr.msk.f32.mxu1 %vm3795_vm3, %v11431_v52 }
 0x364   : > { %9133 = vmatmul.mubr.msk.f32.gmra.mrb[12].mxu1 %vm3795_vm3, %v11435_v56 }
 0x365   : > { %9135 = vmatprep.mubr.msk.f32.mxu1 %vm3795_vm3, %v11439_v57 }
 0x368   : > { %9136 = vmatmul.mubr.msk.f32.gmra.mrb[14].mxu1 %vm3795_vm3, %v11443_v58 }
 0x369   : > { %9138 = vmatprep.mubr.msk.f32.mxu1 %vm3795_vm3, %v11447_v59 }
 0x36c   : > { %9139 = vmatmul.mubr.msk.f32.gmra.mrb[16].mxu1 %vm3795_vm3, %v11451_v60 }
 0x36d   : > { %9141 = vmatprep.mubr.msk.f32.mxu1 %vm3795_vm3, %v11455_v18 }
 0x370   : > { %9142 = vmatmul.mubr.msk.f32.gmra.mrb[18].mxu1 %vm3795_vm3, %v11459_v20 }
 0x371   : > { %9144 = vmatprep.mubr.msk.f32.mxu1 %vm3795_vm3, %v11463_v21 }
 0x374   : > { %9145 = vmatmul.mubr.msk.f32.gmra.mrb[20].mxu1 %vm3795_vm3, %v11467_v5 }
 0x375   : > { %9147 = vmatprep.mubr.msk.f32.mxu1 %vm3795_vm3, %v11471_v22 }
 0x378   : > { %9148 = vmatmul.mubr.msk.f32.gmra.mrb[22].mxu1 %vm3795_vm3, %v11475_v24 }
 0x379   : > { %9150 = vmatprep.mubr.msk.f32.mxu1 %vm3795_vm3, %v11479_v26 }
 0x37c   : > { %9151 = vmatmul.mubr.msk.f32.gmra.mrb[24].mxu1 %vm3795_vm3, %v11483_v32 }
 0x37d   : > { %9153 = vmatprep.mubr.msk.f32.mxu1 %vm3795_vm3, %v11487_v39 }
 0x380   : > { %9154 = vmatmul.mubr.msk.f32.gmra.mrb[26].mxu1 %vm3795_vm3, %v11491_v3 }
 0x381   : > { %9156 = vmatprep.mubr.msk.f32.mxu1 %vm3795_vm3, %v11495_v4 }
 0x384   : > { %9157 = vmatmul.mubr.msk.f32.gmra.mrb[28].mxu1 %vm3795_vm3, %v11499_v41 }
 0x385   : > { %9159 = vmatprep.mubr.msk.f32.mxu1 %vm3795_vm3, %v11503_v0 }
 0x388   : > { %9160 = vmatmul.mubr.msk.f32.gmra.mrb[30].mxu1 %vm3795_vm3, %v11507_v29 }
 0x389   : > { %9164 = vmatprep.mubr.msk.f32.mxu1 %vm3795_vm3, %v4600_v9  ;;  %v11528_v9 = vld [vmem:[#allocation3 + $0x32] sm:$0xff] }
 0x38a   : > { %12351 = vst [vmem:[#allocation26_spill] sm:$0xff] %v11528_v9 }
 0x38c   : > { %9165 = vmatmul.mubr.msk.f32.vlgmr.msra.gmra.mrb[0].mxu1 %vm3795_vm3, %v4601_v34  ;;  %v11532_v34 = vld [vmem:[#allocation3 + $0x3a] sm:$0xff] }
 0x38d   : > { %9213 = vmatpush3.msra.mxu1 %v11386_v7  ;;  %9167 = vmatprep.mubr.msk.f32.mxu1 %vm3795_vm3, %v11518_v2  ;;  %12352 = vst [vmem:[#allocation27_spill] sm:$0xff] %v11532_v34  ;;  %v11536_v7 = vld [vmem:[#allocation3 + $0x4a] sm:$0xff]  ;;  %v11540_v2 = vld [vmem:[#allocation3 + $0x52] sm:$0xff] }
 0x38e   : > { %9262 = vmatprep.subr.mxu1 %v11515_v43  ;;  %12353 = vst [vmem:[#allocation29_spill] sm:$0xff] %v11536_v7  ;;  %12354 = vst [vmem:[#allocation31_spill] sm:$0xff] %v11540_v2 }
 0x390   : > { %9168 = vmatmul.mubr.msk.f32.gmra.mrb[2].mxu1 %vm3795_vm3, %v11524_v33  ;;  %v11544_v33 = vld [vmem:[#allocation3 + $0x62] sm:$0xff] }
 0x391   : > { %9170 = vmatprep.mubr.msk.f32.mxu1 %vm3795_vm3, %v11528_v9  ;;  %12355 = vst [vmem:[#allocation5_spill] sm:$0xff] %v11544_v33  ;;  %v11548_v9 = vld [vmem:[#allocation3 + $0x6a] sm:$0xff] }
 0x392   : > { %12356 = vst [vmem:[#allocation6_spill] sm:$0xff] %v11548_v9 }
 0x394   : > { %9171 = vmatmul.mubr.msk.f32.gmra.mrb[4].mxu1 %vm3795_vm3, %v11532_v34  ;;  %v11552_v34 = vld [vmem:[#allocation3 + $0x7a] sm:$0xff] }
 0x395   : > { %9173 = vmatprep.mubr.msk.f32.mxu1 %vm3795_vm3, %v11536_v7  ;;  %12357 = vst [vmem:[#allocation4_spill] sm:$0xff] %v11552_v34  ;;  %v11556_v7 = vld [vmem:[#allocation3 + $0x82] sm:$0xff] }
 0x396   : > { %12358 = vst [vmem:[#allocation33_spill] sm:$0xff] %v11556_v7 }
 0x398   : > { %9174 = vmatmul.mubr.msk.f32.gmra.mrb[6].mxu1 %vm3795_vm3, %v11540_v2  ;;  %v11560_v2 = vld [vmem:[#allocation3 + $0x92] sm:$0xff] }
 0x399   : > { %9176 = vmatprep.mubr.msk.f32.mxu1 %vm3795_vm3, %v11544_v33  ;;  %12359 = vst [vmem:[#allocation9_spill] sm:$0xff] %v11560_v2  ;;  %v11564_v33 = vld [vmem:[#allocation3 + $0x9a] sm:$0xff] }
 0x39a   : > { %12360 = vst [vmem:[#allocation10_spill] sm:$0xff] %v11564_v33 }
 0x39c   : > { %9177 = vmatmul.mubr.msk.f32.gmra.mrb[8].mxu1 %vm3795_vm3, %v11548_v9  ;;  %v11568_v9 = vld [vmem:[#allocation3 + $0xaa] sm:$0xff] }
 0x39d   : > { %9179 = vmatprep.mubr.msk.f32.mxu1 %vm3795_vm3, %v11552_v34  ;;  %12361 = vst [vmem:[#allocation11_spill] sm:$0xff] %v11568_v9  ;;  %v11572_v34 = vld [vmem:[#allocation3 + $0xb2] sm:$0xff] }
 0x39e   : > { %12362 = vst [vmem:[#allocation12_spill] sm:$0xff] %v11572_v34 }
 0x3a0   : > { %9180 = vmatmul.mubr.msk.f32.gmra.mrb[10].mxu1 %vm3795_vm3, %v11556_v7  ;;  %v11576_v7 = vld [vmem:[#allocation3 + $0xc2] sm:$0xff] }
 0x3a1   : > { %9182 = vmatprep.mubr.msk.f32.mxu1 %vm3795_vm3, %v11560_v2  ;;  %12363 = vst [vmem:[#allocation13_spill] sm:$0xff] %v11576_v7  ;;  %v11580_v2 = vld [vmem:[#allocation3 + $0xca] sm:$0xff] }
 0x3a2   : > { %12364 = vst [vmem:[#allocation14_spill] sm:$0xff] %v11580_v2 }
 0x3a4   : > { %9183 = vmatmul.mubr.msk.f32.gmra.mrb[12].mxu1 %vm3795_vm3, %v11564_v33  ;;  %v11584_v33 = vld [vmem:[#allocation3 + $0xda] sm:$0xff] }
 0x3a5   : > { %9185 = vmatprep.mubr.msk.f32.mxu1 %vm3795_vm3, %v11568_v9  ;;  %12365 = vst [vmem:[#allocation15_spill] sm:$0xff] %v11584_v33  ;;  %v11588_v9 = vld [vmem:[#allocation3 + $0xe2] sm:$0xff] }
 0x3a6   : > { %12366 = vst [vmem:[#allocation16_spill] sm:$0xff] %v11588_v9 }
 0x3a8   : > { %9186 = vmatmul.mubr.msk.f32.gmra.mrb[14].mxu1 %vm3795_vm3, %v11572_v34  ;;  %v11592_v34 = vld [vmem:[#allocation3 + $0xf2] sm:$0xff] }
 0x3a9   : > { %9188 = vmatprep.mubr.msk.f32.mxu1 %vm3795_vm3, %v11576_v7  ;;  %12367 = vst [vmem:[#allocation17_spill] sm:$0xff] %v11592_v34  ;;  %v11596_v7 = vld [vmem:[#allocation3 + $0xfa] sm:$0xff] }
 0x3aa   : > { %12368 = vst [vmem:[#allocation18_spill] sm:$0xff] %v11596_v7 }
 0x3ac   : > { %9189 = vmatmul.mubr.msk.f32.gmra.mrb[16].mxu1 %vm3795_vm3, %v11580_v2  ;;  %v11600_v2 = vld [vmem:[#allocation3 + $0x10a] sm:$0xff] }
 0x3ad   : > { %9191 = vmatprep.mubr.msk.f32.mxu1 %vm3795_vm3, %v11584_v33  ;;  %12369 = vst [vmem:[#allocation19_spill] sm:$0xff] %v11600_v2  ;;  %v11604_v33 = vld [vmem:[#allocation3 + $0x112] sm:$0xff] }
 0x3ae   : > { %12370 = vst [vmem:[#allocation20_spill] sm:$0xff] %v11604_v33 }
 0x3b0   : > { %9192 = vmatmul.mubr.msk.f32.gmra.mrb[18].mxu1 %vm3795_vm3, %v11588_v9  ;;  %v11608_v9 = vld [vmem:[#allocation3 + $0x122] sm:$0xff] }
 0x3b1   : > { %9194 = vmatprep.mubr.msk.f32.mxu1 %vm3795_vm3, %v11592_v34  ;;  %12371 = vst [vmem:[#allocation21_spill] sm:$0xff] %v11608_v9  ;;  %v11612_v34 = vld [vmem:[#allocation3 + $0x12a] sm:$0xff] }
 0x3b2   : > { %12372 = vst [vmem:[#allocation23_spill] sm:$0xff] %v11612_v34 }
 0x3b4   : > { %9195 = vmatmul.mubr.msk.f32.gmra.mrb[20].mxu1 %vm3795_vm3, %v11596_v7  ;;  %v11616_v7 = vld [vmem:[#allocation3 + $0x13a] sm:$0xff] }
 0x3b5   : > { %9197 = vmatprep.mubr.msk.f32.mxu1 %vm3795_vm3, %v11600_v2  ;;  %12373 = vst [vmem:[#allocation25_spill] sm:$0xff] %v11616_v7  ;;  %v11620_v2 = vld [vmem:[#allocation3 + $0x142] sm:$0xff] }
 0x3b8   : > { %9198 = vmatmul.mubr.msk.f32.gmra.mrb[22].mxu1 %vm3795_vm3, %v11604_v33  ;;  %v11624_v33 = vld [vmem:[#allocation3 + $0x152] sm:$0xff] }
 0x3b9   : > { %9200 = vmatprep.mubr.msk.f32.mxu1 %vm3795_vm3, %v11608_v9  ;;  %12374 = vst [vmem:[#allocation28_spill] sm:$0xff] %v11624_v33  ;;  %v11628_v9 = vld [vmem:[#allocation3 + $0x15a] sm:$0xff] }
 0x3bc   : > { %9201 = vmatmul.mubr.msk.f32.gmra.mrb[24].mxu1 %vm3795_vm3, %v11612_v34  ;;  %v11632_v34 = vld [vmem:[#allocation3 + $0x16a] sm:$0xff] }
 0x3bd   : > { %9203 = vmatprep.mubr.msk.f32.mxu1 %vm3795_vm3, %v11616_v7  ;;  %12375 = vst [vmem:[#allocation30_spill] sm:$0xff] %v11632_v34  ;;  %v11636_v7 = vld [vmem:[#allocation3 + $0x172] sm:$0xff] }
 0x3c0   : > { %9204 = vmatmul.mubr.msk.f32.gmra.mrb[26].mxu1 %vm3795_vm3, %v11620_v2 }
 0x3c1   : > { %9206 = vmatprep.mubr.msk.f32.mxu1 %vm3795_vm3, %v11624_v33  ;;  %v3889_v33 = vld [vmem:[%s12146_s2 + $0x28] sm:$0xff] }
 0x3c4   : > { %9207 = vmatmul.mubr.msk.f32.gmra.mrb[28].mxu1 %vm3795_vm3, %v11628_v9 }
 0x3c5   : > { %9209 = vmatprep.mubr.msk.f32.mxu1 %vm3795_vm3, %v11632_v34 }
 0x3c8   : > { %9210 = vmatmul.mubr.msk.f32.gmra.mrb[30].mxu1 %vm3795_vm3, %v11636_v7 }
 0x3c9   : > { %9214 = vmatprep.mubr.msk.f32.mxu1 %vm3795_vm3, %v11389_v8  ;;  %v11704_v8 = vld [vmem:[#allocation3 + $0x180] sm:$0xff] }
 0x3cc   : > { %9215 = vmatmul.mubr.msk.f32.vlgmr.msra.gmra.mrb[0].mxu1 %vm3795_vm3, %v11395_v11  ;;  %v11708_v11 = vld [vmem:[#allocation3 + $0x188] sm:$0xff] }
 0x3cd   : > { %9263 = vmatpush3.msra.mxu1 %v11515_v43  ;;  %9217 = vmatprep.mubr.msk.f32.mxu1 %vm3795_vm3, %v11399_v13  ;;  %v3890_v43 = vld [vmem:[%s12146_s2 + $0x30] sm:$0xff] }
 0x3ce   : > { %9312 = vmatprep.subr.mxu1 %v3889_v33 }
 0x3d0   : > { %9218 = vmatmul.mubr.msk.f32.gmra.mrb[2].mxu1 %vm3795_vm3, %v11403_v15 }
 0x3d1   : > { %9220 = vmatprep.mubr.msk.f32.mxu1 %vm3795_vm3, %v11407_v27 }
 0x3d4   : > { %9221 = vmatmul.mubr.msk.f32.gmra.mrb[4].mxu1 %vm3795_vm3, %v11411_v44 }
 0x3d5   : > { %9223 = vmatprep.mubr.msk.f32.mxu1 %vm3795_vm3, %v11415_v46 }
 0x3d8   : > { %9224 = vmatmul.mubr.msk.f32.gmra.mrb[6].mxu1 %vm3795_vm3, %v11419_v48 }
 0x3d9   : > { %9226 = vmatprep.mubr.msk.f32.mxu1 %vm3795_vm3, %v11423_v49 }
 0x3dc   : > { %9227 = vmatmul.mubr.msk.f32.gmra.mrb[8].mxu1 %vm3795_vm3, %v11427_v50 }
 0x3dd   : > { %9229 = vmatprep.mubr.msk.f32.mxu1 %vm3795_vm3, %v11431_v52 }
 0x3e0   : > { %9230 = vmatmul.mubr.msk.f32.gmra.mrb[10].mxu1 %vm3795_vm3, %v11435_v56 }
 0x3e1   : > { %9232 = vmatprep.mubr.msk.f32.mxu1 %vm3795_vm3, %v11439_v57 }
 0x3e4   : > { %9233 = vmatmul.mubr.msk.f32.gmra.mrb[12].mxu1 %vm3795_vm3, %v11443_v58 }
 0x3e5   : > { %9235 = vmatprep.mubr.msk.f32.mxu1 %vm3795_vm3, %v11447_v59 }
 0x3e8   : > { %9236 = vmatmul.mubr.msk.f32.gmra.mrb[14].mxu1 %vm3795_vm3, %v11451_v60 }
 0x3e9   : > { %9238 = vmatprep.mubr.msk.f32.mxu1 %vm3795_vm3, %v11455_v18 }
 0x3ec   : > { %9239 = vmatmul.mubr.msk.f32.gmra.mrb[16].mxu1 %vm3795_vm3, %v11459_v20 }
 0x3ed   : > { %9241 = vmatprep.mubr.msk.f32.mxu1 %vm3795_vm3, %v11463_v21 }
 0x3f0   : > { %9242 = vmatmul.mubr.msk.f32.gmra.mrb[18].mxu1 %vm3795_vm3, %v11467_v5 }
 0x3f1   : > { %9244 = vmatprep.mubr.msk.f32.mxu1 %vm3795_vm3, %v11471_v22 }
 0x3f4   : > { %9245 = vmatmul.mubr.msk.f32.gmra.mrb[20].mxu1 %vm3795_vm3, %v11475_v24 }
 0x3f5   : > { %9247 = vmatprep.mubr.msk.f32.mxu1 %vm3795_vm3, %v11479_v26 }
 0x3f8   : > { %9248 = vmatmul.mubr.msk.f32.gmra.mrb[22].mxu1 %vm3795_vm3, %v11483_v32 }
 0x3f9   : > { %9250 = vmatprep.mubr.msk.f32.mxu1 %vm3795_vm3, %v11487_v39 }
 0x3fc   : > { %9251 = vmatmul.mubr.msk.f32.gmra.mrb[24].mxu1 %vm3795_vm3, %v11491_v3 }
 0x3fd   : > { %9253 = vmatprep.mubr.msk.f32.mxu1 %vm3795_vm3, %v11495_v4 }
 0x400   : > { %9254 = vmatmul.mubr.msk.f32.gmra.mrb[26].mxu1 %vm3795_vm3, %v11499_v41 }
 0x401   : > { %9256 = vmatprep.mubr.msk.f32.mxu1 %vm3795_vm3, %v11503_v0 }
 0x404   : > { %9257 = vmatmul.mubr.msk.f32.gmra.mrb[28].mxu1 %vm3795_vm3, %v11507_v29 }
 0x405   : > { %9259 = vmatprep.mubr.msk.f32.mxu1 %vm3795_vm3, %v11704_v8 }
 0x408   : > { %9260 = vmatmul.mubr.msk.f32.gmra.mrb[30].mxu1 %vm3795_vm3, %v11708_v11 }
 0x409   : > { %9264 = vmatprep.mubr.msk.f32.mxu1 %vm3795_vm3, %v11210_v10  ;;  %v12376_v10 = vld [vmem:[#allocation7_spill] sm:$0xff] }
 0x40c   : > { %9265 = vmatmul.mubr.msk.f32.vlgmr.msra.gmra.mrb[0].mxu1 %vm3795_vm3, %v11216_v12  ;;  %v12377_v12 = vld [vmem:[#allocation8_spill] sm:$0xff] }
 0x40d   : > { %9313 = vmatpush3.msra.mxu1 %v3889_v33  ;;  %9267 = vmatprep.mubr.msk.f32.mxu1 %vm3795_vm3, %v11222_v45  ;;  %v11775_v45 = vld [vmem:[#allocation3 + $0x181] sm:$0xff] }
 0x40e   : > { %9362 = vmatprep.subr.mxu1 %v3890_v43  ;;  %v12385_v33 = vld [vmem:[#allocation6_spill] sm:$0xff] }
 0x410   : > { %9268 = vmatmul.mubr.msk.f32.gmra.mrb[2].mxu1 %vm3795_vm3, %v11228_v47  ;;  %v11779_v47 = vld [vmem:[#allocation3 + $0x189] sm:$0xff] }
 0x411   : > { %9270 = vmatprep.mubr.msk.f32.mxu1 %vm3795_vm3, %v11234_v53  ;;  %v12378_v53 = vld [vmem:[#allocation22_spill] sm:$0xff] }
 0x414   : > { %9271 = vmatmul.mubr.msk.f32.gmra.mrb[4].mxu1 %vm3795_vm3, %v11240_v55  ;;  %v3891_v55 = vld [vmem:[%s12146_s2 + $0x38] sm:$0xff] }
 0x415   : > { %9273 = vmatprep.mubr.msk.f32.mxu1 %vm3795_vm3, %v11246_v61  ;;  %v12379_v61 = vld [vmem:[#allocation24_spill] sm:$0xff] }
 0x418   : > { %9274 = vmatmul.mubr.msk.f32.gmra.mrb[6].mxu1 %vm3795_vm3, %v11252_v17  ;;  %v12380_v17 = vld [vmem:[#allocation26_spill] sm:$0xff] }
 0x419   : > { %9276 = vmatprep.mubr.msk.f32.mxu1 %vm3795_vm3, %v11258_v63  ;;  %v12381_v63 = vld [vmem:[#allocation27_spill] sm:$0xff] }
 0x41c   : > { %9277 = vmatmul.mubr.msk.f32.gmra.mrb[8].mxu1 %vm3795_vm3, %v11264_v23  ;;  %v12382_v23 = vld [vmem:[#allocation29_spill] sm:$0xff] }
 0x41d   : > { %9279 = vmatprep.mubr.msk.f32.mxu1 %vm3795_vm3, %v11270_v37  ;;  %v12383_v37 = vld [vmem:[#allocation31_spill] sm:$0xff] }
 0x420   : > { %9280 = vmatmul.mubr.msk.f32.gmra.mrb[10].mxu1 %vm3795_vm3, %v11276_v40  ;;  %v12384_v40 = vld [vmem:[#allocation5_spill] sm:$0xff] }
 0x421   : > { %9282 = vmatprep.mubr.msk.f32.mxu1 %vm3795_vm3, %v11282_v1 }
 0x424   : > { %9283 = vmatmul.mubr.msk.f32.gmra.mrb[12].mxu1 %vm3795_vm3, %v11288_v28 }
 0x425   : > { %9285 = vmatprep.mubr.msk.f32.mxu1 %vm3795_vm3, %v11294_v36 }
 0x428   : > { %9286 = vmatmul.mubr.msk.f32.gmra.mrb[14].mxu1 %vm3795_vm3, %v11300_v35 }
 0x429   : > { %9288 = vmatprep.mubr.msk.f32.mxu1 %vm3795_vm3, %v11306_v14 }
 0x42c   : > { %9289 = vmatmul.mubr.msk.f32.gmra.mrb[16].mxu1 %vm3795_vm3, %v11312_v16 }
 0x42d   : > { %9291 = vmatprep.mubr.msk.f32.mxu1 %vm3795_vm3, %v11318_v51 }
 0x430   : > { %9292 = vmatmul.mubr.msk.f32.gmra.mrb[18].mxu1 %vm3795_vm3, %v11324_v54 }
 0x431   : > { %9294 = vmatprep.mubr.msk.f32.mxu1 %vm3795_vm3, %v11330_v62 }
 0x434   : > { %9295 = vmatmul.mubr.msk.f32.gmra.mrb[20].mxu1 %vm3795_vm3, %v11336_v19 }
 0x435   : > { %9297 = vmatprep.mubr.msk.f32.mxu1 %vm3795_vm3, %v11342_v25 }
 0x438   : > { %9298 = vmatmul.mubr.msk.f32.gmra.mrb[22].mxu1 %vm3795_vm3, %v11348_v31 }
 0x439   : > { %9300 = vmatprep.mubr.msk.f32.mxu1 %vm3795_vm3, %v11354_v42 }
 0x43c   : > { %9301 = vmatmul.mubr.msk.f32.gmra.mrb[24].mxu1 %vm3795_vm3, %v11360_v6 }
 0x43d   : > { %9303 = vmatprep.mubr.msk.f32.mxu1 %vm3795_vm3, %v11365_v30 }
 0x440   : > { %9304 = vmatmul.mubr.msk.f32.gmra.mrb[26].mxu1 %vm3795_vm3, %v11370_v38 }
 0x441   : > { %9306 = vmatprep.mubr.msk.f32.mxu1 %vm3795_vm3, %v12376_v10 }
 0x444   : > { %9307 = vmatmul.mubr.msk.f32.gmra.mrb[28].mxu1 %vm3795_vm3, %v12377_v12 }
 0x445   : > { %9309 = vmatprep.mubr.msk.f32.mxu1 %vm3795_vm3, %v11775_v45 }
 0x448   : > { %9310 = vmatmul.mubr.msk.f32.gmra.mrb[30].mxu1 %vm3795_vm3, %v11779_v47 }
 0x449   : > { %9314 = vmatprep.mubr.msk.f32.mxu1 %vm3795_vm3, %v12378_v53  ;;  %v12387_v53 = vld [vmem:[#allocation33_spill] sm:$0xff] }
 0x44c   : > { %9315 = vmatmul.mubr.msk.f32.vlgmr.msra.gmra.mrb[0].mxu1 %vm3795_vm3, %v12379_v61  ;;  %v12388_v61 = vld [vmem:[#allocation9_spill] sm:$0xff] }
 0x44d   : > { %9363 = vmatpush3.msra.mxu1 %v3890_v43  ;;  %9317 = vmatprep.mubr.msk.f32.mxu1 %vm3795_vm3, %v12380_v17  ;;  %v12386_v43 = vld [vmem:[#allocation4_spill] sm:$0xff] }
 0x44e   : > { %9412 = vmatprep.subr.mxu1 %v3891_v55 }
 0x450   : > { %9318 = vmatmul.mubr.msk.f32.gmra.mrb[2].mxu1 %vm3795_vm3, %v12381_v63  ;;  %v12389_v63 = vld [vmem:[#allocation10_spill] sm:$0xff] }
 0x451   : > { %9320 = vmatprep.mubr.msk.f32.mxu1 %vm3795_vm3, %v12382_v23  ;;  %v12390_v23 = vld [vmem:[#allocation11_spill] sm:$0xff] }
 0x454   : > { %9321 = vmatmul.mubr.msk.f32.gmra.mrb[4].mxu1 %vm3795_vm3, %v12383_v37  ;;  %v12391_v37 = vld [vmem:[#allocation12_spill] sm:$0xff] }
 0x455   : > { %9323 = vmatprep.mubr.msk.f32.mxu1 %vm3795_vm3, %v12384_v40  ;;  %v12392_v40 = vld [vmem:[#allocation13_spill] sm:$0xff] }
 0x458   : > { %9324 = vmatmul.mubr.msk.f32.gmra.mrb[6].mxu1 %vm3795_vm3, %v12385_v33  ;;  %v12393_v33 = vld [vmem:[#allocation14_spill] sm:$0xff] }
 0x459   : > { %9326 = vmatprep.mubr.msk.f32.mxu1 %vm3795_vm3, %v12386_v43  ;;  %v12394_v43 = vld [vmem:[#allocation15_spill] sm:$0xff] }
 0x45c   : > { %9327 = vmatmul.mubr.msk.f32.gmra.mrb[8].mxu1 %vm3795_vm3, %v12387_v53  ;;  %v12395_v53 = vld [vmem:[#allocation16_spill] sm:$0xff] }
 0x45d   : > { %9329 = vmatprep.mubr.msk.f32.mxu1 %vm3795_vm3, %v12388_v61  ;;  %v12396_v61 = vld [vmem:[#allocation17_spill] sm:$0xff] }
 0x460   : > { %9330 = vmatmul.mubr.msk.f32.gmra.mrb[10].mxu1 %vm3795_vm3, %v12389_v63  ;;  %v12397_v63 = vld [vmem:[#allocation18_spill] sm:$0xff] }
 0x461   : > { %9332 = vmatprep.mubr.msk.f32.mxu1 %vm3795_vm3, %v12390_v23  ;;  %v12398_v23 = vld [vmem:[#allocation19_spill] sm:$0xff] }
 0x464   : > { %9333 = vmatmul.mubr.msk.f32.gmra.mrb[12].mxu1 %vm3795_vm3, %v12391_v37  ;;  %v12399_v37 = vld [vmem:[#allocation20_spill] sm:$0xff] }
 0x465   : > { %9335 = vmatprep.mubr.msk.f32.mxu1 %vm3795_vm3, %v12392_v40  ;;  %v12400_v40 = vld [vmem:[#allocation21_spill] sm:$0xff] }
 0x468   : > { %9336 = vmatmul.mubr.msk.f32.gmra.mrb[14].mxu1 %vm3795_vm3, %v12393_v33  ;;  %v12401_v33 = vld [vmem:[#allocation23_spill] sm:$0xff] }
 0x469   : > { %9338 = vmatprep.mubr.msk.f32.mxu1 %vm3795_vm3, %v12394_v43  ;;  %v12402_v43 = vld [vmem:[#allocation25_spill] sm:$0xff] }
 0x46c   : > { %9339 = vmatmul.mubr.msk.f32.gmra.mrb[16].mxu1 %vm3795_vm3, %v12395_v53 }
 0x46d   : > { %9341 = vmatprep.mubr.msk.f32.mxu1 %vm3795_vm3, %v12396_v61  ;;  %v12403_v61 = vld [vmem:[#allocation28_spill] sm:$0xff] }
 0x470   : > { %9342 = vmatmul.mubr.msk.f32.gmra.mrb[18].mxu1 %vm3795_vm3, %v12397_v63 }
 0x471   : > { %9344 = vmatprep.mubr.msk.f32.mxu1 %vm3795_vm3, %v12398_v23 }
 0x474   : > { %9345 = vmatmul.mubr.msk.f32.gmra.mrb[20].mxu1 %vm3795_vm3, %v12399_v37 }
 0x475   : > { %9347 = vmatprep.mubr.msk.f32.mxu1 %vm3795_vm3, %v12400_v40  ;;  %v11846_v40 = vld [vmem:[#allocation3 + $0x182] sm:$0xff] }
 0x478   : > { %9348 = vmatmul.mubr.msk.f32.gmra.mrb[22].mxu1 %vm3795_vm3, %v12401_v33 }
 0x479   : > { %9350 = vmatprep.mubr.msk.f32.mxu1 %vm3795_vm3, %v12402_v43  ;;  %v11850_v43 = vld [vmem:[#allocation3 + $0x18a] sm:$0xff] }
 0x47c   : > { %9351 = vmatmul.mubr.msk.f32.gmra.mrb[24].mxu1 %vm3795_vm3, %v11620_v2 }
 0x47d   : > { %9353 = vmatprep.mubr.msk.f32.mxu1 %vm3795_vm3, %v12403_v61 }
 0x480   : > { %9354 = vmatmul.mubr.msk.f32.gmra.mrb[26].mxu1 %vm3795_vm3, %v11628_v9 }
 0x481   : > { %9356 = vmatprep.mubr.msk.f32.mxu1 %vm3795_vm3, %v11632_v34  ;;  %v3892_v34 = vld [vmem:[%s12146_s2 + $0x40] sm:$0xff] }
 0x484   : > { %9357 = vmatmul.mubr.msk.f32.gmra.mrb[28].mxu1 %vm3795_vm3, %v11636_v7 }
 0x485   : > { %9359 = vmatprep.mubr.msk.f32.mxu1 %vm3795_vm3, %v11846_v40 }
 0x488   : > { %9360 = vmatmul.mubr.msk.f32.gmra.mrb[30].mxu1 %vm3795_vm3, %v11850_v43 }
 0x489   : > { %9364 = vmatprep.mubr.msk.f32.mxu1 %vm3795_vm3, %v11399_v13  ;;  %v6171_v13 = vld [vmem:[#allocation3 + $0x198] sm:$0xff] }
 0x48c   : > { %9365 = vmatmul.mubr.msk.f32.vlgmr.msra.gmra.mrb[0].mxu1 %vm3795_vm3, %v11403_v15  ;;  %v6172_v15 = vld [vmem:[#allocation3 + $0x1a0] sm:$0xff] }
 0x48d   : > { %9413 = vmatpush3.msra.mxu1 %v3891_v55  ;;  %9367 = vmatprep.mubr.msk.f32.mxu1 %vm3795_vm3, %v11407_v27  ;;  %v6526_v27 = vld [vmem:[#allocation3 + $0x31] sm:$0xff] }
 0x48e   : > { %9462 = vmatprep.subr.mxu1 %v3892_v34 }
 0x490   : > { %9368 = vmatmul.mubr.msk.f32.gmra.mrb[2].mxu1 %vm3795_vm3, %v11411_v44  ;;  %v6527_v44 = vld [vmem:[#allocation3 + $0x39] sm:$0xff] }
 0x491   : > { %9370 = vmatprep.mubr.msk.f32.mxu1 %vm3795_vm3, %v11415_v46  ;;  %v6528_v46 = vld [vmem:[#allocation3 + $0x49] sm:$0xff] }
 0x494   : > { %9371 = vmatmul.mubr.msk.f32.gmra.mrb[4].mxu1 %vm3795_vm3, %v11419_v48  ;;  %v6529_v48 = vld [vmem:[#allocation3 + $0x51] sm:$0xff] }
 0x495   : > { %9373 = vmatprep.mubr.msk.f32.mxu1 %vm3795_vm3, %v11423_v49  ;;  %v6530_v49 = vld [vmem:[#allocation3 + $0x61] sm:$0xff] }
 0x498   : > { %9374 = vmatmul.mubr.msk.f32.gmra.mrb[6].mxu1 %vm3795_vm3, %v11427_v50  ;;  %v6531_v50 = vld [vmem:[#allocation3 + $0x69] sm:$0xff] }
 0x499   : > { %9376 = vmatprep.mubr.msk.f32.mxu1 %vm3795_vm3, %v11431_v52  ;;  %v6532_v52 = vld [vmem:[#allocation3 + $0x79] sm:$0xff] }
 0x49c   : > { %9377 = vmatmul.mubr.msk.f32.gmra.mrb[8].mxu1 %vm3795_vm3, %v11435_v56  ;;  %v6533_v56 = vld [vmem:[#allocation3 + $0x81] sm:$0xff] }
 0x49d   : > { %9379 = vmatprep.mubr.msk.f32.mxu1 %vm3795_vm3, %v11439_v57  ;;  %v6534_v57 = vld [vmem:[#allocation3 + $0x91] sm:$0xff] }
 0x4a0   : > { %9380 = vmatmul.mubr.msk.f32.gmra.mrb[10].mxu1 %vm3795_vm3, %v11443_v58  ;;  %v6535_v58 = vld [vmem:[#allocation3 + $0x99] sm:$0xff] }
 0x4a1   : > { %9382 = vmatprep.mubr.msk.f32.mxu1 %vm3795_vm3, %v11447_v59  ;;  %v12418_v59 = vld [vmem:[#allocation17_spill] sm:$0xff] }
 0x4a4   : > { %9383 = vmatmul.mubr.msk.f32.gmra.mrb[12].mxu1 %vm3795_vm3, %v11451_v60  ;;  %v12419_v60 = vld [vmem:[#allocation21_spill] sm:$0xff] }
 0x4a5   : > { %9385 = vmatprep.mubr.msk.f32.mxu1 %vm3795_vm3, %v11455_v18  ;;  %v12420_v18 = vld [vmem:[#allocation25_spill] sm:$0xff] }
 0x4a8   : > { %9386 = vmatmul.mubr.msk.f32.gmra.mrb[14].mxu1 %vm3795_vm3, %v11459_v20  ;;  %v12421_v20 = vld [vmem:[#allocation30_spill] sm:$0xff] }
 0x4a9   : > { %9388 = vmatprep.mubr.msk.f32.mxu1 %vm3795_vm3, %v11463_v21  ;;  %v6941_v21 = vld [vmem:[#allocation3 + $0x19a] sm:$0xff] }
 0x4ac   : > { %9389 = vmatmul.mubr.msk.f32.gmra.mrb[16].mxu1 %vm3795_vm3, %v11467_v5  ;;  %v12036_v5 = vld [vmem:[%s12146_s2 + $0x48] ss:$0 sm:$0xff] }
 0x4ad   : > { %9391 = vmatprep.mubr.msk.f32.mxu1 %vm3795_vm3, %v11471_v22 }
 0x4b0   : > { %9392 = vmatmul.mubr.msk.f32.gmra.mrb[18].mxu1 %vm3795_vm3, %v11475_v24 }
 0x4b1   : > { %9394 = vmatprep.mubr.msk.f32.mxu1 %vm3795_vm3, %v11479_v26 }
 0x4b4   : > { %9395 = vmatmul.mubr.msk.f32.gmra.mrb[20].mxu1 %vm3795_vm3, %v11483_v32 }
 0x4b5   : > { %9397 = vmatprep.mubr.msk.f32.mxu1 %vm3795_vm3, %v11487_v39 }
 0x4b8   : > { %9398 = vmatmul.mubr.msk.f32.gmra.mrb[22].mxu1 %vm3795_vm3, %v11491_v3 }
 0x4b9   : > { %9400 = vmatprep.mubr.msk.f32.mxu1 %vm3795_vm3, %v11495_v4 }
 0x4bc   : > { %9401 = vmatmul.mubr.msk.f32.gmra.mrb[24].mxu1 %vm3795_vm3, %v11499_v41 }
 0x4bd   : > { %9403 = vmatprep.mubr.msk.f32.mxu1 %vm3795_vm3, %v11503_v0 }
 0x4c0   : > { %9404 = vmatmul.mubr.msk.f32.gmra.mrb[26].mxu1 %vm3795_vm3, %v11507_v29 }
 0x4c1   : > { %9406 = vmatprep.mubr.msk.f32.mxu1 %vm3795_vm3, %v11704_v8 }
 0x4c4   : > { %9407 = vmatmul.mubr.msk.f32.gmra.mrb[28].mxu1 %vm3795_vm3, %v11708_v11 }
 0x4c5   : > { %9409 = vmatprep.mubr.msk.f32.mxu1 %vm3795_vm3, %v6171_v13 }
 0x4c8   : > { %9410 = vmatmul.mubr.msk.f32.gmra.mrb[30].mxu1 %vm3795_vm3, %v6172_v15 }
 0x4c9   : > { %9414 = vmatprep.mubr.msk.f32.mxu1 %vm3795_vm3, %v6526_v27 }
 0x4cc   : > { %9415 = vmatmul.mubr.msk.f32.vlgmr.msra.gmra.mrb[0].mxu1 %vm3795_vm3, %v6527_v44 }
 0x4cd   : > { %9463 = vmatpush3.msra.mxu1 %v3892_v34  ;;  %9417 = vmatprep.mubr.msk.f32.mxu1 %vm3795_vm3, %v6528_v46 }
 0x4d0   : > { %9418 = vmatmul.mubr.msk.f32.gmra.mrb[2].mxu1 %vm3795_vm3, %v6529_v48 }
 0x4d1   : > { %9420 = vmatprep.mubr.msk.f32.mxu1 %vm3795_vm3, %v6530_v49 }
 0x4d4   : > { %9421 = vmatmul.mubr.msk.f32.gmra.mrb[4].mxu1 %vm3795_vm3, %v6531_v50 }
 0x4d5   : > { %9423 = vmatprep.mubr.msk.f32.mxu1 %vm3795_vm3, %v6532_v52 }
 0x4d8   : > { %9424 = vmatmul.mubr.msk.f32.gmra.mrb[6].mxu1 %vm3795_vm3, %v6533_v56 }
 0x4d9   : > { %9426 = vmatprep.mubr.msk.f32.mxu1 %vm3795_vm3, %v6534_v57 }
 0x4dc   : > { %9427 = vmatmul.mubr.msk.f32.gmra.mrb[8].mxu1 %vm3795_vm3, %v6535_v58 }
 0x4dd   : > { %9429 = vmatprep.mubr.msk.f32.mxu1 %vm3795_vm3, %v11282_v1  ;;  %v6556_v1 = vld [vmem:[#allocation3 + $0x199] sm:$0xff] }
 0x4e0   : > { %9430 = vmatmul.mubr.msk.f32.gmra.mrb[10].mxu1 %vm3795_vm3, %v11288_v28  ;;  %v6557_v28 = vld [vmem:[#allocation3 + $0x1a1] sm:$0xff] }
 0x4e1   : > { %9432 = vmatprep.mubr.msk.f32.mxu1 %vm3795_vm3, %v11294_v36  ;;  %v12404_v36 = vld [vmem:[#allocation27_spill] sm:$0xff] }
 0x4e4   : > { %9433 = vmatmul.mubr.msk.f32.gmra.mrb[12].mxu1 %vm3795_vm3, %v11300_v35  ;;  %v12405_v35 = vld [vmem:[#allocation29_spill] sm:$0xff] }
 0x4e5   : > { %9435 = vmatprep.mubr.msk.f32.mxu1 %vm3795_vm3, %v11306_v14  ;;  %v12406_v14 = vld [vmem:[#allocation31_spill] sm:$0xff] }
 0x4e8   : > { %9436 = vmatmul.mubr.msk.f32.gmra.mrb[14].mxu1 %vm3795_vm3, %v11312_v16  ;;  %v12407_v16 = vld [vmem:[#allocation5_spill] sm:$0xff] }
 0x4e9   : > { %9438 = vmatprep.mubr.msk.f32.mxu1 %vm3795_vm3, %v11318_v51  ;;  %v12408_v51 = vld [vmem:[#allocation6_spill] sm:$0xff] }
 0x4ec   : > { %9439 = vmatmul.mubr.msk.f32.gmra.mrb[16].mxu1 %vm3795_vm3, %v11324_v54  ;;  %v12409_v54 = vld [vmem:[#allocation4_spill] sm:$0xff] }
 0x4ed   : > { %9441 = vmatprep.mubr.msk.f32.mxu1 %vm3795_vm3, %v11330_v62  ;;  %v12410_v62 = vld [vmem:[#allocation33_spill] sm:$0xff] }
 0x4f0   : > { %9442 = vmatmul.mubr.msk.f32.gmra.mrb[18].mxu1 %vm3795_vm3, %v11336_v19  ;;  %v12411_v19 = vld [vmem:[#allocation9_spill] sm:$0xff] }
 0x4f1   : > { %9444 = vmatprep.mubr.msk.f32.mxu1 %vm3795_vm3, %v11342_v25  ;;  %v12412_v25 = vld [vmem:[#allocation10_spill] sm:$0xff] }
 0x4f4   : > { %9445 = vmatmul.mubr.msk.f32.gmra.mrb[20].mxu1 %vm3795_vm3, %v11348_v31  ;;  %v12413_v31 = vld [vmem:[#allocation11_spill] sm:$0xff] }
 0x4f5   : > { %9447 = vmatprep.mubr.msk.f32.mxu1 %vm3795_vm3, %v11354_v42  ;;  %v12414_v42 = vld [vmem:[#allocation12_spill] sm:$0xff] }
 0x4f8   : > { %9448 = vmatmul.mubr.msk.f32.gmra.mrb[22].mxu1 %vm3795_vm3, %v11360_v6  ;;  %v12415_v6 = vld [vmem:[#allocation13_spill] sm:$0xff] }
 0x4f9   : > { %9450 = vmatprep.mubr.msk.f32.mxu1 %vm3795_vm3, %v11365_v30  ;;  %v12416_v30 = vld [vmem:[#allocation14_spill] sm:$0xff] }
 0x4fc   : > { %9451 = vmatmul.mubr.msk.f32.gmra.mrb[24].mxu1 %vm3795_vm3, %v11370_v38  ;;  %v12417_v38 = vld [vmem:[#allocation15_spill] sm:$0xff] }
 0x4fd   : > { %9453 = vmatprep.mubr.msk.f32.mxu1 %vm3795_vm3, %v12376_v10 }
 0x500   : > { %9454 = vmatmul.mubr.msk.f32.gmra.mrb[26].mxu1 %vm3795_vm3, %v12377_v12 }
 0x501   : > { %9456 = vmatprep.mubr.msk.f32.mxu1 %vm3795_vm3, %v11775_v45 }
 0x504   : > { %9457 = vmatmul.mubr.msk.f32.gmra.mrb[28].mxu1 %vm3795_vm3, %v11779_v47 }
 0x505   : > { %9459 = vmatprep.mubr.msk.f32.mxu1 %vm3795_vm3, %v6556_v1 }
 0x508   : > { %9460 = vmatmul.mubr.msk.f32.gmra.mrb[30].mxu1 %vm3795_vm3, %v6557_v28 }
 0x509   : > { %9464 = vmatprep.mubr.msk.f32.mxu1 %vm3795_vm3, %v12380_v17 }
 0x50c   : > { %9465 = vmatmul.mubr.msk.f32.vlgmr.msra.gmra.mrb[0].mxu1 %vm3795_vm3, %v12404_v36 }
 0x50d   : > { %9467 = vmatprep.mubr.msk.f32.mxu1 %vm3795_vm3, %v12405_v35 }
 0x510   : > { %9468 = vmatmul.mubr.msk.f32.gmra.mrb[2].mxu1 %vm3795_vm3, %v12406_v14 }
 0x511   : > { %9470 = vmatprep.mubr.msk.f32.mxu1 %vm3795_vm3, %v12407_v16 }
 0x514   : > { %9471 = vmatmul.mubr.msk.f32.gmra.mrb[4].mxu1 %vm3795_vm3, %v12408_v51 }
 0x515   : > { %9473 = vmatprep.mubr.msk.f32.mxu1 %vm3795_vm3, %v12409_v54 }
 0x518   : > { %9474 = vmatmul.mubr.msk.f32.gmra.mrb[6].mxu1 %vm3795_vm3, %v12410_v62 }
 0x519   : > { %9476 = vmatprep.mubr.msk.f32.mxu1 %vm3795_vm3, %v12411_v19 }
 0x51c   : > { %9477 = vmatmul.mubr.msk.f32.gmra.mrb[8].mxu1 %vm3795_vm3, %v12412_v25 }
 0x51d   : > { %9479 = vmatprep.mubr.msk.f32.mxu1 %vm3795_vm3, %v12413_v31 }
 0x520   : > { %9480 = vmatmul.mubr.msk.f32.gmra.mrb[10].mxu1 %vm3795_vm3, %v12414_v42 }
 0x521   : > { %9482 = vmatprep.mubr.msk.f32.mxu1 %vm3795_vm3, %v12415_v6 }
 0x524   : > { %9483 = vmatmul.mubr.msk.f32.gmra.mrb[12].mxu1 %vm3795_vm3, %v12416_v30 }
 0x525   : > { %9485 = vmatprep.mubr.msk.f32.mxu1 %vm3795_vm3, %v12417_v38 }
 0x528   : > { %9486 = vmatmul.mubr.msk.f32.gmra.mrb[14].mxu1 %vm3795_vm3, %v12395_v53 }
 0x529   : > { %9488 = vmatprep.mubr.msk.f32.mxu1 %vm3795_vm3, %v12418_v59 }
 0x52c   : > { %9489 = vmatmul.mubr.msk.f32.gmra.mrb[16].mxu1 %vm3795_vm3, %v12397_v63 }
 0x52d   : > { %9491 = vmatprep.mubr.msk.f32.mxu1 %vm3795_vm3, %v12398_v23 }
 0x530   : > { %9492 = vmatmul.mubr.msk.f32.gmra.mrb[18].mxu1 %vm3795_vm3, %v12399_v37 }
 0x531   : > { %9494 = vmatprep.mubr.msk.f32.mxu1 %vm3795_vm3, %v12419_v60 }
 0x534   : > { %9495 = vmatmul.mubr.msk.f32.gmra.mrb[20].mxu1 %vm3795_vm3, %v12401_v33 }
 0x535   : > { %9497 = vmatprep.mubr.msk.f32.mxu1 %vm3795_vm3, %v12420_v18 }
 0x538   : > { %9498 = vmatmul.mubr.msk.f32.gmra.mrb[22].mxu1 %vm3795_vm3, %v11620_v2  ;;  %v6942_v2 = vld [vmem:[#allocation3 + $0x1a2] sm:$0xff] }
 0x539   : > { %9500 = vmatprep.mubr.msk.f32.mxu1 %vm3795_vm3, %v12403_v61 }
 0x53c   : > { %9501 = vmatmul.mubr.msk.f32.gmra.mrb[24].mxu1 %vm3795_vm3, %v11628_v9 }
 0x53d   : > { %9503 = vmatprep.mubr.msk.f32.mxu1 %vm3795_vm3, %v12421_v20 }
 0x540   : > { %9504 = vmatmul.mubr.msk.f32.gmra.mrb[26].mxu1 %vm3795_vm3, %v11636_v7 }
 0x541   : > { %9506 = vmatprep.mubr.msk.f32.mxu1 %vm3795_vm3, %v11846_v40 }
 0x544   : > { %9507 = vmatmul.mubr.msk.f32.gmra.mrb[28].mxu1 %vm3795_vm3, %v11850_v43 }
 0x545   : > { %9509 = vmatprep.mubr.msk.f32.mxu1 %vm3795_vm3, %v6941_v21 }
 0x548   : > { %9510 = vmatmul.mubr.msk.f32.gmra.mrb[30].mxu1 %vm3795_vm3, %v6942_v2 }
 0x5df   : > { %v9466_v22 = vpop.f32.mrb[0].mxu1 }
 0x5e0   : > { %v7301_v24 = vadd.f32 %v9466_v22, %v12036_v5  ;;  %v7105_v26 = vpop.f32.mrb[1].mxu1 }
 0x5e1   : > { %v7300_v32 = vadd.f32 %v12036_v5, %v7105_v26 }
 0x5e2   : > { %7333 = vst.msk [vmem:[%s12043_s27 + $0x8] sm:$0xff] %vm3795_vm3, %v7301_v24 }
 0x5e3   : > { %7332 = vst.msk [vmem:[%s12043_s27] sm:$0xff] %vm3795_vm3, %v7300_v32  ;;  %v9469_v39 = vpop.f32.mrb[2].mxu1 }
 0x5e4   : > { %v7303_v3 = vadd.f32 %v9469_v39, %v12036_v5  ;;  %v7115_v4 = vpop.f32.mrb[3].mxu1 }
 0x5e5   : > { %v7302_v41 = vadd.f32 %v12036_v5, %v7115_v4 }
 0x5e6   : > { %7335 = vst.msk [vmem:[%s12043_s27 + $0x18] sm:$0xff] %vm3795_vm3, %v7303_v3 }
 0x5e7   : > { %7334 = vst.msk [vmem:[%s12043_s27 + $0x10] sm:$0xff] %vm3795_vm3, %v7302_v41  ;;  %v9472_v0 = vpop.f32.mrb[4].mxu1 }
 0x5e8   : > { %v7305_v29 = vadd.f32 %v9472_v0, %v12036_v5  ;;  %v7125_v9 = vpop.f32.mrb[5].mxu1 }
 0x5e9   : > { %v7304_v34 = vadd.f32 %v12036_v5, %v7125_v9 }
 0x5ea   : > { %7337 = vst.msk [vmem:[%s12043_s27 + $0x28] sm:$0xff] %vm3795_vm3, %v7305_v29 }
 0x5eb   : > { %7336 = vst.msk [vmem:[%s12043_s27 + $0x20] sm:$0xff] %vm3795_vm3, %v7304_v34  ;;  %v9475_v7 = vpop.f32.mrb[6].mxu1 }
 0x5ec   : > { %v7307_v8 = vadd.f32 %v9475_v7, %v12036_v5  ;;  %v7135_v11 = vpop.f32.mrb[7].mxu1 }
 0x5ed   : > { %v7306_v10 = vadd.f32 %v12036_v5, %v7135_v11 }
 0x5ee   : > { %7339 = vst.msk [vmem:[%s12043_s27 + $0x38] sm:$0xff] %vm3795_vm3, %v7307_v8 }
 0x5ef   : > { %7338 = vst.msk [vmem:[%s12043_s27 + $0x30] sm:$0xff] %vm3795_vm3, %v7306_v10  ;;  %v9478_v12 = vpop.f32.mrb[8].mxu1 }
 0x5f0   : > { %v7309_v45 = vadd.f32 %v9478_v12, %v12036_v5  ;;  %v7145_v47 = vpop.f32.mrb[9].mxu1 }
 0x5f1   : > { %v7308_v55 = vadd.f32 %v12036_v5, %v7145_v47 }
 0x5f2   : > { %7341 = vst.msk [vmem:[%s12043_s27 + $0x48] sm:$0xff] %vm3795_vm3, %v7309_v45 }
 0x5f3   : > { %7340 = vst.msk [vmem:[%s12043_s27 + $0x40] sm:$0xff] %vm3795_vm3, %v7308_v55  ;;  %v9481_v17 = vpop.f32.mrb[10].mxu1 }
 0x5f4   : > { %v7311_v63 = vadd.f32 %v9481_v17, %v12036_v5  ;;  %v7155_v23 = vpop.f32.mrb[11].mxu1 }
 0x5f5   : > { %v7310_v37 = vadd.f32 %v12036_v5, %v7155_v23 }
 0x5f6   : > { %7343 = vst.msk [vmem:[%s12043_s27 + $0x58] sm:$0xff] %vm3795_vm3, %v7311_v63 }
 0x5f7   : > { %7342 = vst.msk [vmem:[%s12043_s27 + $0x50] sm:$0xff] %vm3795_vm3, %v7310_v37  ;;  %v9484_v40 = vpop.f32.mrb[12].mxu1 }
 0x5f8   : > { %v7313_v33 = vadd.f32 %v9484_v40, %v12036_v5  ;;  %v7165_v43 = vpop.f32.mrb[13].mxu1 }
 0x5f9   : > { %v7312_v53 = vadd.f32 %v12036_v5, %v7165_v43 }
 0x5fa   : > { %7345 = vst.msk [vmem:[%s12043_s27 + $0x68] sm:$0xff] %vm3795_vm3, %v7313_v33 }
 0x5fb   : > { %7344 = vst.msk [vmem:[%s12043_s27 + $0x60] sm:$0xff] %vm3795_vm3, %v7312_v53  ;;  %v9487_v61 = vpop.f32.mrb[14].mxu1 }
 0x5fc   : > { %v7315_v13 = vadd.f32 %v9487_v61, %v12036_v5  ;;  %v7175_v15 = vpop.f32.mrb[15].mxu1 }
 0x5fd   : > { %v7314_v27 = vadd.f32 %v12036_v5, %v7175_v15 }
 0x5fe   : > { %7347 = vst.msk [vmem:[%s12043_s27 + $0x78] sm:$0xff] %vm3795_vm3, %v7315_v13 }
 0x5ff   : > { %7346 = vst.msk [vmem:[%s12043_s27 + $0x70] sm:$0xff] %vm3795_vm3, %v7314_v27  ;;  %v9490_v44 = vpop.f32.mrb[16].mxu1 }
 0x600   : > { %v7317_v46 = vadd.f32 %v9490_v44, %v12036_v5  ;;  %v7185_v48 = vpop.f32.mrb[17].mxu1 }
 0x601   : > { %v7316_v49 = vadd.f32 %v12036_v5, %v7185_v48 }
 0x602   : > { %7349 = vst.msk [vmem:[%s12043_s27 + $0x88] sm:$0xff] %vm3795_vm3, %v7317_v46 }
 0x603   : > { %7348 = vst.msk [vmem:[%s12043_s27 + $0x80] sm:$0xff] %vm3795_vm3, %v7316_v49  ;;  %v9493_v50 = vpop.f32.mrb[18].mxu1 }
 0x604   : > { %v7319_v52 = vadd.f32 %v9493_v50, %v12036_v5  ;;  %v7195_v56 = vpop.f32.mrb[19].mxu1 }
 0x605   : > { %v7318_v57 = vadd.f32 %v12036_v5, %v7195_v56 }
 0x606   : > { %7351 = vst.msk [vmem:[%s12043_s27 + $0x98] sm:$0xff] %vm3795_vm3, %v7319_v52 }
 0x607   : > { %7350 = vst.msk [vmem:[%s12043_s27 + $0x90] sm:$0xff] %vm3795_vm3, %v7318_v57  ;;  %v9496_v58 = vpop.f32.mrb[20].mxu1 }
 0x608   : > { %v7321_v1 = vadd.f32 %v9496_v58, %v12036_v5  ;;  %v7205_v28 = vpop.f32.mrb[21].mxu1 }
 0x609   : > { %v7320_v36 = vadd.f32 %v12036_v5, %v7205_v28 }
 0x60a   : > { %7353 = vst.msk [vmem:[%s12043_s27 + $0xa8] sm:$0xff] %vm3795_vm3, %v7321_v1 }
 0x60b   : > { %7352 = vst.msk [vmem:[%s12043_s27 + $0xa0] sm:$0xff] %vm3795_vm3, %v7320_v36  ;;  %v9499_v35 = vpop.f32.mrb[22].mxu1 }
 0x60c   : > { %v7323_v14 = vadd.f32 %v9499_v35, %v12036_v5  ;;  %v7215_v16 = vpop.f32.mrb[23].mxu1 }
 0x60d   : > { %v7322_v51 = vadd.f32 %v12036_v5, %v7215_v16 }
 0x60e   : > { %7355 = vst.msk [vmem:[%s12043_s27 + $0xb8] sm:$0xff] %vm3795_vm3, %v7323_v14 }
 0x60f   : > { %7354 = vst.msk [vmem:[%s12043_s27 + $0xb0] sm:$0xff] %vm3795_vm3, %v7322_v51  ;;  %v9502_v54 = vpop.f32.mrb[24].mxu1 }
 0x610   : > { %v7325_v62 = vadd.f32 %v9502_v54, %v12036_v5  ;;  %v7225_v19 = vpop.f32.mrb[25].mxu1 }
 0x611   : > { %v7324_v25 = vadd.f32 %v12036_v5, %v7225_v19 }
 0x612   : > { %7357 = vst.msk [vmem:[%s12043_s27 + $0xc8] sm:$0xff] %vm3795_vm3, %v7325_v62 }
 0x613   : > { %7356 = vst.msk [vmem:[%s12043_s27 + $0xc0] sm:$0xff] %vm3795_vm3, %v7324_v25  ;;  %v9505_v31 = vpop.f32.mrb[26].mxu1 }
 0x614   : > { %v7327_v42 = vadd.f32 %v9505_v31, %v12036_v5  ;;  %v7235_v6 = vpop.f32.mrb[27].mxu1 }
 0x615   : > { %v7326_v30 = vadd.f32 %v12036_v5, %v7235_v6 }
 0x616   : > { %7359 = vst.msk [vmem:[%s12043_s27 + $0xd8] sm:$0xff] %vm3795_vm3, %v7327_v42 }
 0x617   : > { %7358 = vst.msk [vmem:[%s12043_s27 + $0xd0] sm:$0xff] %vm3795_vm3, %v7326_v30  ;;  %v9508_v38 = vpop.f32.mrb[28].mxu1 }
 0x618   : > { %v7329_v59 = vadd.f32 %v9508_v38, %v12036_v5  ;;  %v7245_v60 = vpop.f32.mrb[29].mxu1 }
 0x619   : > { %v7328_v18 = vadd.f32 %v12036_v5, %v7245_v60 }
 0x61a   : > { %7361 = vst.msk [vmem:[%s12043_s27 + $0xe8] sm:$0xff] %vm3795_vm3, %v7329_v59 }
 0x61b   : > { %7360 = vst.msk [vmem:[%s12043_s27 + $0xe0] sm:$0xff] %vm3795_vm3, %v7328_v18  ;;  %v9511_v20 = vpop.f32.mrb[30].mxu1 }
 0x61c   : > { %v7331_v21 = vadd.f32 %v9511_v20, %v12036_v5  ;;  %v7255_v2 = vpop.f32.mrb[31].mxu1 }
 0x61d   : > { %v7330_v22 = vadd.f32 %v12036_v5, %v7255_v2 }
 0x61e   : > { %7363 = vst.msk [vmem:[%s12043_s27 + $0xf8] sm:$0xff] %vm3795_vm3, %v7331_v21 }
 0x61f   : > { %7362 = vst.msk [vmem:[%s12043_s27 + $0xf0] sm:$0xff] %vm3795_vm3, %v7330_v22 }
 0x620 PF: > { %s13_s12 = sadd.s32 1, %s10039_s12  }
 0x621   : > { %p10_p4 = scmp.ge.s32.totalorder %s13_s12, 4  }
 0x623   :  { %12 = sbr.rel (!%p10_p4) target bundleno = 1 (0x1), region = 66 }

</bundles_post_ra>
